<compile_context>
chip_gen: v5e
topology: v5e:2x2
jax: 0.10.0
libtpu: 0.0.40
codegen_flags: <defaults>
</compile_context>

<pallas_src>
import functools

import jax
import jax.numpy as jnp
import numpy as np
from jax import lax
from jax.experimental import pallas as pl
from jax.experimental.pallas import tpu as pltpu


# ------------------------------ small helpers ------------------------------

def _round_up(x, m):
    return ((x + m - 1) // m) * m


def _num_tensorcores():
    """Best-effort TensorCores-per-device count (2 on megacore / v7x parts)."""
    try:
        dev = jax.devices()[0]
    except Exception:
        return 1
    cores = getattr(dev, "num_cores", None)
    if isinstance(cores, int) and cores > 0:
        return cores
    kind = str(getattr(dev, "device_kind", "")).lower()
    if any(tag in kind for tag in ("v4", "v5p", "v7", "7x")):
        return 2
    return 1


def _vmem_capacity_bytes():
    try:
        cap = getattr(pltpu.get_tpu_info(), "vmem_capacity_bytes", None)
        if cap:
            return int(cap)
    except Exception:
        pass
    kind = str(getattr(jax.devices()[0], "device_kind", "")).lower()
    if "7x" in kind or "v7" in kind:
        return 64 << 20          # v7x physical VMEM per TensorCore
    return 128 << 20             # v5e / v6e physical VMEM


def _row_tiling(m, tm):
    """Pick the M tile.  Prefer the biggest tile that fits (HBM roofline);
    only split into >= 2 grid steps on multi-TensorCore parts (v7x)."""
    tm = min(tm, m)
    if _num_tensorcores() >= 2 and m >= 256 and tm == m:
        tm = -(-m // 2)          # ceil(m / 2) so both TCs get work
    tm = max(8, _round_up(tm, 8))
    mp = _round_up(m, tm)
    return tm, mp


def _col_tile(cout, tn=512):
    """Column stripe for big 1x1 weights (bounds resident weight bytes on
    v7x's 64 MiB VMEM).  Full width when small or when it does not divide."""
    if cout > tn and cout % tn == 0:
        return tn
    return cout


def _pad_rows(x, mp):
    m = x.shape[0]
    return x if m == mp else jnp.pad(x, ((0, mp - m), (0, 0)))


def _compiler_params(num_axes, block_bytes, scratch_bytes=0):
    cap = _vmem_capacity_bytes()
    budget = int(cap * 85 // 100)
    need = int(2 * block_bytes + scratch_bytes + (2 << 20))
    if need > budget:
        raise ValueError(
            "Pallas block needs ~%d MiB of VMEM (double-buffered) but only ~%d MiB "
            "is usable on this chip; shrink the tile." % (need >> 20, budget >> 20))
    return pltpu.CompilerParams(
        dimension_semantics=("parallel",) * num_axes,
        vmem_limit_bytes=budget,
    )


# ------------------------------ Pallas kernels ------------------------------

def _reduce_conv3x3_kernel(x_ref, wr_ref, br_ref, w9_ref, bc_ref, o_ref,
                           hbuf, col_ref, *, H, W, d):
    """Fused: reduce 1x1 conv+BN+ReLU -> dilated 3x3 conv+BN+ReLU for one image.

    x_ref : (H, W, Cin)  bf16 input image
    wr_ref: (Cin, mid)   bf16 folded reduce weight
    w9_ref: (9*mid, mid) bf16 tap-major folded 3x3 weight
    o_ref : (H, W, mid)  bf16 output
    hbuf  : VMEM (H+2d, W+2d, mid) bf16  -- zero-halo mid activation
    col_ref: VMEM (H, W, 9*mid) bf16     -- in-VMEM im2col tile
    """
    cin = x_ref.shape[-1]
    mid = o_ref.shape[-1]

    # --- reduce: 1x1 conv + BN + ReLU (bf16 matmul, f32 accumulate) ---
    x2d = x_ref[...].reshape(H * W, cin)
    h = jnp.dot(x2d, wr_ref[...], preferred_element_type=jnp.float32)
    h = jnp.maximum(h + br_ref[...], 0.0)

    # --- zero halo built in VMEM (no HBM pad copy), place h in the centre ---
    hbuf[...] = jnp.zeros_like(hbuf)
    hbuf[pl.ds(d, H), pl.ds(d, W), :] = h.reshape(H, W, mid).astype(hbuf.dtype)

    # --- in-VMEM im2col: copy 9 dilated windows (no reshape per tap) ---
    for t in range(9):
        ky, kx = divmod(t, 3)
        col_ref[:, :, pl.ds(t * mid, mid)] = hbuf[pl.ds(ky * d, H),
                                                  pl.ds(kx * d, W), :]

    # --- single matmul with K = 9*mid, then BN + ReLU ---
    acc = jnp.dot(col_ref[...].reshape(H * W, 9 * mid), w9_ref[...],
                  preferred_element_type=jnp.float32)
    acc = jnp.maximum(acc + bc_ref[...], 0.0)
    o_ref[...] = acc.reshape(H, W, mid).astype(o_ref.dtype)


def _increase_shortcut_kernel(h_ref, wi_ref, b_ref, x_ref, ws_ref, o_ref):
    """Fused: increase 1x1 conv+BN, projection-shortcut 1x1 conv+BN,
    residual add, final ReLU (b_ref = b_increase + b_shortcut)."""
    acc = jnp.dot(h_ref[...], wi_ref[...], preferred_element_type=jnp.float32)
    acc = acc + jnp.dot(x_ref[...], ws_ref[...], preferred_element_type=jnp.float32)
    o_ref[...] = jnp.maximum(acc + b_ref[...], 0.0).astype(o_ref.dtype)


def _increase_identity_kernel(h_ref, wi_ref, b_ref, r_ref, o_ref):
    """Fused: increase 1x1 conv+BN, identity residual add, final ReLU."""
    acc = jnp.dot(h_ref[...], wi_ref[...], preferred_element_type=jnp.float32)
    acc = acc + b_ref[...] + r_ref[...].astype(jnp.float32)
    o_ref[...] = jnp.maximum(acc, 0.0).astype(o_ref.dtype)


# ------------------------------ kernel wrappers ------------------------------

def reduce_conv3x3_bn_relu(x_bf, w_r, b_r, w9flat, b_c, d):
    n, H, W, cin = x_bf.shape
    mid = w_r.shape[1]
    Hp, Wp = H + 2 * d, W + 2 * d
    block_bytes = (2 * (H * W * cin + cin * mid + 9 * mid * mid + H * W * mid)
                   + 4 * 2 * mid)
    scratch_bytes = 2 * (Hp * Wp * mid + H * W * 9 * mid)
    return pl.pallas_call(
        functools.partial(_reduce_conv3x3_kernel, H=H, W=W, d=d),
        out_shape=jax.ShapeDtypeStruct((n, H, W, mid), jnp.bfloat16),
        grid_spec=pltpu.PrefetchScalarGridSpec(
            num_scalar_prefetch=0,
            grid=(n,),
            in_specs=[
                pl.BlockSpec((None, H, W, cin), lambda i: (i, 0, 0, 0)),
                pl.BlockSpec((cin, mid), lambda i: (0, 0)),
                pl.BlockSpec((1, mid), lambda i: (0, 0)),
                pl.BlockSpec((9 * mid, mid), lambda i: (0, 0)),
                pl.BlockSpec((1, mid), lambda i: (0, 0)),
            ],
            out_specs=pl.BlockSpec((None, H, W, mid), lambda i: (i, 0, 0, 0)),
            scratch_shapes=[
                pltpu.VMEM((Hp, Wp, mid), jnp.bfloat16),
                pltpu.VMEM((H, W, 9 * mid), jnp.bfloat16),
            ],
        ),
        compiler_params=_compiler_params(1, block_bytes, scratch_bytes),
    )(x_bf, w_r, b_r.reshape(1, mid), w9flat, b_c.reshape(1, mid))


def increase_shortcut_add_relu(h2d, w_inc, x2d, w_sc, b_total, tm=1024):
    m, mid = h2d.shape
    cin = x2d.shape[1]
    cout = w_inc.shape[1]
    tm_e, mp = _row_tiling(m, tm)
    tn = _col_tile(cout)
    grid = (mp // tm_e, cout // tn)
    block_bytes = (2 * (tm_e * mid + mid * tn + tm_e * cin + cin * tn)
                   + 4 * (tn + tm_e * tn))
    out = pl.pallas_call(
        _increase_shortcut_kernel,
        out_shape=jax.ShapeDtypeStruct((mp, cout), jnp.float32),
        grid_spec=pltpu.PrefetchScalarGridSpec(
            num_scalar_prefetch=0,
            grid=grid,
            in_specs=[
                pl.BlockSpec((tm_e, mid), lambda i, j: (i, 0)),
                pl.BlockSpec((mid, tn), lambda i, j: (0, j)),
                pl.BlockSpec((1, tn), lambda i, j: (0, j)),
                pl.BlockSpec((tm_e, cin), lambda i, j: (i, 0)),
                pl.BlockSpec((cin, tn), lambda i, j: (0, j)),
            ],
            out_specs=pl.BlockSpec((tm_e, tn), lambda i, j: (i, j)),
        ),
        compiler_params=_compiler_params(2, block_bytes),
    )(_pad_rows(h2d, mp), w_inc, b_total.reshape(1, cout),
      _pad_rows(x2d, mp), w_sc)
    return out if mp == m else out[:m]


def increase_identity_add_relu(h2d, w_inc, b_inc, res2d, tm=1024):
    m, mid = h2d.shape
    cout = w_inc.shape[1]
    tm_e, mp = _row_tiling(m, tm)
    tn = _col_tile(cout)
    grid = (mp // tm_e, cout // tn)
    block_bytes = 2 * (tm_e * mid + mid * tn + tm_e * tn) + 4 * (tn + tm_e * tn)
    out = pl.pallas_call(
        _increase_identity_kernel,
        out_shape=jax.ShapeDtypeStruct((mp, cout), jnp.float32),
        grid_spec=pltpu.PrefetchScalarGridSpec(
            num_scalar_prefetch=0,
            grid=grid,
            in_specs=[
                pl.BlockSpec((tm_e, mid), lambda i, j: (i, 0)),
                pl.BlockSpec((mid, tn), lambda i, j: (0, j)),
                pl.BlockSpec((1, tn), lambda i, j: (0, j)),
                pl.BlockSpec((tm_e, tn), lambda i, j: (i, j)),
            ],
            out_specs=pl.BlockSpec((tm_e, tn), lambda i, j: (i, j)),
        ),
        compiler_params=_compiler_params(2, block_bytes),
    )(_pad_rows(h2d, mp), w_inc, b_inc.reshape(1, cout), _pad_rows(res2d, mp))
    return out if mp == m else out[:m]


# ------------------------------ parameter setup ------------------------------

def fold_bn(w_mat, gamma, beta, mean, var, eps=1e-5):
    """Fold eval-mode BN into matmul-form conv weight (..., Cout)."""
    scale = gamma / jnp.sqrt(var + eps)
    shape = (1,) * (w_mat.ndim - 1) + (-1,)
    return w_mat * scale.reshape(shape), beta - mean * scale


def make_conv_bn_params(key, cin, cout, ksize):
    kw, kg, kb, km, kv = jax.random.split(key, 5)
    w = jax.random.normal(kw, (cout, cin, ksize, ksize), jnp.float32) * 0.1  # OIHW
    gamma = 1.0 + 0.1 * jax.random.normal(kg, (cout,), jnp.float32)
    beta = 0.1 * jax.random.normal(kb, (cout,), jnp.float32)
    mean = 0.1 * jax.random.normal(km, (cout,), jnp.float32)
    var = jnp.abs(jax.random.normal(kv, (cout,), jnp.float32)) + 0.5
    return dict(w=w, gamma=gamma, beta=beta, mean=mean, var=var)


def oihw_to_mat(w):
    # 1x1: (Cout, Cin, 1, 1) -> (Cin, Cout)
    # 3x3: (Cout, Cin, 3, 3) -> (9, Cin, Cout), tap-major (ky*3 + kx)
    cout, cin, kh, kw = w.shape
    w = jnp.transpose(w, (2, 3, 1, 0))
    if kh == 1 and kw == 1:
        return w.reshape(cin, cout)
    return w.reshape(kh * kw, cin, cout)


def prepare_kernel_params(raw):
    folded = {}
    for name, p in raw.items():
        w_mat, b = fold_bn(oihw_to_mat(p["w"]), p["gamma"], p["beta"],
                           p["mean"], p["var"])
        if w_mat.ndim == 3:                        # 3x3: (9, Cin, Cout) -> (9*Cin, Cout)
            k2, ci, co = w_mat.shape
            w_mat = w_mat.reshape(k2 * ci, co)
        folded[name] = (w_mat.astype(jnp.bfloat16), b.astype(jnp.float32))
    return folded


def make_bottleneck_params(key, in_n, out_n, downsample):
    mid_n = out_n // 4
    keys = jax.random.split(key, 4)
    raw = {
        "reduce": make_conv_bn_params(keys[0], in_n, mid_n, 1),
        "conv3x3": make_conv_bn_params(keys[1], mid_n, mid_n, 3),
        "increase": make_conv_bn_params(keys[2], mid_n, out_n, 1),
    }
    if downsample:
        raw["shortcut"] = make_conv_bn_params(keys[3], in_n, out_n, 1)
    return raw, prepare_kernel_params(raw)


# ------------------------------ Bottleneck forward ------------------------------

def bottleneck_forward(x_nhwc, params, stride, dilation, downsample, tm=1024):
    if stride != 1:
        # TODO(synk): fold the stride subsampling into the kernel instead of
        # materialising a strided copy of x in HBM.
        x_nhwc = x_nhwc[:, ::stride, ::stride, :]
    x_bf = x_nhwc.astype(jnp.bfloat16)
    n, H, W, cin = x_bf.shape

    # fused reduce 1x1 (+BN+ReLU) -> dilated 3x3 (+BN+ReLU); h stays in VMEM.
    w_r, b_r = params["reduce"]
    w9, b_c = params["conv3x3"]
    mid = w_r.shape[1]
    h = reduce_conv3x3_bn_relu(x_bf, w_r, b_r, w9, b_c, dilation)

    # increase (1x1, no relu) + shortcut + residual add + final ReLU, fused.
    w_i, b_i = params["increase"]
    cout = w_i.shape[1]
    h2d = h.reshape(-1, mid)
    x2d = x_bf.reshape(-1, cin)
    if downsample:
        w_s, b_s = params["shortcut"]
        out2d = increase_shortcut_add_relu(h2d, w_i, x2d, w_s, b_i + b_s, tm=tm)
    else:
        assert stride == 1 and cin == cout, (
            "identity shortcut requires stride == 1 and in_n == out_n")
        out2d = increase_identity_add_relu(h2d, w_i, b_i, x2d, tm=tm)
    return out2d.reshape(n, H, W, cout)


bottleneck_jit = jax.jit(
    bottleneck_forward,
    static_argnames=("stride", "dilation", "downsample", "tm"))


# ------------------------------ pure-JAX reference ------------------------------

def conv_bn_ref(x, p, stride, padding, dilation, relu, eps=1e-5):
    w_hwio = jnp.transpose(p["w"], (2, 3, 1, 0))
    y = lax.conv_general_dilated(
        x, w_hwio, window_strides=(stride, stride),
        padding=((padding, padding), (padding, padding)),
        rhs_dilation=(dilation, dilation),
        dimension_numbers=("NHWC", "HWIO", "NHWC"))
    scale = p["gamma"] / jnp.sqrt(p["var"] + eps)
    y = y * scale + (p["beta"] - p["mean"] * scale)
    return jnp.maximum(y, 0.0) if relu else y


def bottleneck_ref(x, raw, stride, dilation, downsample):
    h = conv_bn_ref(x, raw["reduce"], stride, 0, 1, True)
    h = conv_bn_ref(h, raw["conv3x3"], 1, dilation, dilation, True)
    h = conv_bn_ref(h, raw["increase"], 1, 0, 1, False)
    sc = conv_bn_ref(x, raw["shortcut"], stride, 0, 1, False) if downsample else x
    return jnp.maximum(h + sc, 0.0)


# ------------------------------ main ------------------------------

if __name__ == "__main__":
    key = jax.random.PRNGKey(0)
    k_x1, k_p1, k_x2, k_p2 = jax.random.split(key, 4)

    N, H, W = 2, 16, 16
    dilation = 2

    # --- case 1: projection shortcut (downsample=True), dilation=2 ---
    in_n, out_n, stride = 8, 16, 1
    raw1, fold1 = make_bottleneck_params(k_p1, in_n, out_n, downsample=True)
    x1_nchw = jax.random.normal(k_x1, (N, in_n, H, W), jnp.float32)   # PyTorch NCHW
    x1 = jnp.transpose(x1_nchw, (0, 2, 3, 1))                         # NHWC for kernels
    out1 = jax.block_until_ready(
        bottleneck_jit(x1, fold1, stride=stride, dilation=dilation, downsample=True))
    ref1 = jax.block_until_ready(bottleneck_ref(x1, raw1, stride, dilation, True))
    assert out1.shape == ref1.shape
    # bf16 matmuls (f32 accumulation) -> looser tolerance than a pure-f32 path.
    np.testing.assert_allclose(np.asarray(out1), np.asarray(ref1), rtol=3e-2, atol=3e-2)

    # --- case 2: identity shortcut (downsample=False), in_n == out_n ---
    raw2, fold2 = make_bottleneck_params(k_p2, out_n, out_n, downsample=False)
    x2_nchw = jax.random.normal(k_x2, (N, out_n, H, W), jnp.float32)
    x2 = jnp.transpose(x2_nchw, (0, 2, 3, 1))
    out2 = jax.block_until_ready(
        bottleneck_jit(x2, fold2, stride=1, dilation=dilation, downsample=False))
    ref2 = jax.block_until_ready(bottleneck_ref(x2, raw2, 1, dilation, False))
    assert out2.shape == ref2.shape
    np.testing.assert_allclose(np.asarray(out2), np.asarray(ref2), rtol=3e-2, atol=3e-2)

    print("KERNEL_OK")
</pallas_src>

<mosaic_0001>
module attributes {stable_mosaic.version = 11 : i64} {
  func.func @_increase_shortcut_kernel(%arg0: i32, %arg1: i32, %arg2: memref<512x4xbf16, #tpu.memory_space<vmem>>, %arg3: memref<4x16xbf16, #tpu.memory_space<vmem>>, %arg4: memref<1x16xf32, #tpu.memory_space<vmem>>, %arg5: memref<512x8xbf16, #tpu.memory_space<vmem>>, %arg6: memref<8x16xbf16, #tpu.memory_space<vmem>>, %arg7: memref<512x16xf32, #tpu.memory_space<vmem>>) attributes {dimension_semantics = [#tpu.dimension_semantics<parallel>, #tpu.dimension_semantics<parallel>], iteration_bounds = array<i64: 1, 1>, scalar_prefetch = 0 : i64, scratch_operands = 0 : i64, tpu.core_type = #tpu.core_type<tc>, window_params = [{transform_indices = @transform_0, window_bounds = array<i64: 512, 4>}, {transform_indices = @transform_1, window_bounds = array<i64: 4, 16>}, {transform_indices = @transform_2, window_bounds = array<i64: 1, 16>}, {transform_indices = @transform_3, window_bounds = array<i64: 512, 8>}, {transform_indices = @transform_4, window_bounds = array<i64: 8, 16>}, {transform_indices = @transform_5, window_bounds = array<i64: 512, 16>}]} {
    %c0 = arith.constant 0 : index
    %c0_0 = arith.constant 0 : index
    %0 = vector.load %arg2[%c0, %c0_0] : memref<512x4xbf16, #tpu.memory_space<vmem>>, vector<512x4xbf16>
    %c0_1 = arith.constant 0 : index
    %c0_2 = arith.constant 0 : index
    %1 = vector.load %arg3[%c0_1, %c0_2] : memref<4x16xbf16, #tpu.memory_space<vmem>>, vector<4x16xbf16>
    %cst = arith.constant dense<0.000000e+00> : vector<512x16xf32>
    %2 = tpu.matmul %0, %1, %cst {dimension_numbers = #tpu.dot_dimension_numbers<[1], [0], [0], [1], [0, 0, 1, 1], [], []>} : vector<512x4xbf16>, vector<4x16xbf16>, vector<512x16xf32> -> vector<512x16xf32>
    %c0_3 = arith.constant 0 : index
    %c0_4 = arith.constant 0 : index
    %3 = vector.load %arg5[%c0_3, %c0_4] : memref<512x8xbf16, #tpu.memory_space<vmem>>, vector<512x8xbf16>
    %c0_5 = arith.constant 0 : index
    %c0_6 = arith.constant 0 : index
    %4 = vector.load %arg6[%c0_5, %c0_6] : memref<8x16xbf16, #tpu.memory_space<vmem>>, vector<8x16xbf16>
    %cst_7 = arith.constant dense<0.000000e+00> : vector<512x16xf32>
    %5 = tpu.matmul %3, %4, %cst_7 {dimension_numbers = #tpu.dot_dimension_numbers<[1], [0], [0], [1], [0, 0, 1, 1], [], []>} : vector<512x8xbf16>, vector<8x16xbf16>, vector<512x16xf32> -> vector<512x16xf32>
    %6 = arith.addf %2, %5 : vector<512x16xf32>
    %c0_8 = arith.constant 0 : index
    %c0_9 = arith.constant 0 : index
    %7 = vector.load %arg4[%c0_8, %c0_9] : memref<1x16xf32, #tpu.memory_space<vmem>>, vector<1x16xf32>
    %8 = vector.broadcast %7 : vector<1x16xf32> to vector<512x16xf32>
    %9 = arith.addf %6, %8 : vector<512x16xf32>
    %cst_10 = arith.constant 0.000000e+00 : f32
    %10 = vector.broadcast %cst_10 : f32 to vector<512x16xf32>
    %11 = arith.maximumf %9, %10 : vector<512x16xf32>
    %c0_11 = arith.constant 0 : index
    %c0_12 = arith.constant 0 : index
    %12 = vector.load %arg7[%c0_11, %c0_12] : memref<512x16xf32, #tpu.memory_space<vmem>>, vector<512x16xf32>
    tpu.vector_store %arg7[%c0_11, %c0_12], %11 {strides = array<i32>} : memref<512x16xf32, #tpu.memory_space<vmem>>, vector<512x16xf32>,
    return
  }
  func.func @transform_0(%arg0: i32, %arg1: i32) -> (i32, i32) {
    %c0_i32 = arith.constant 0 : i32
    %c0_i32_0 = arith.constant 0 : i32
    return %arg0, %c0_i32 : i32, i32
  }
  func.func @transform_1(%arg0: i32, %arg1: i32) -> (i32, i32) {
    %c0_i32 = arith.constant 0 : i32
    %c0_i32_0 = arith.constant 0 : i32
    return %c0_i32, %arg1 : i32, i32
  }
  func.func @transform_2(%arg0: i32, %arg1: i32) -> (i32, i32) {
    %c0_i32 = arith.constant 0 : i32
    %c0_i32_0 = arith.constant 0 : i32
    return %c0_i32, %arg1 : i32, i32
  }
  func.func @transform_3(%arg0: i32, %arg1: i32) -> (i32, i32) {
    %c0_i32 = arith.constant 0 : i32
    %c0_i32_0 = arith.constant 0 : i32
    return %arg0, %c0_i32 : i32, i32
  }
  func.func @transform_4(%arg0: i32, %arg1: i32) -> (i32, i32) {
    %c0_i32 = arith.constant 0 : i32
    %c0_i32_0 = arith.constant 0 : i32
    return %c0_i32, %arg1 : i32, i32
  }
  func.func @transform_5(%arg0: i32, %arg1: i32) -> (i32, i32) {
    %c0_i32 = arith.constant 0 : i32
    return %arg0, %arg1 : i32, i32
  }
}

module attributes {stable_mosaic.version = 11 : i64} {
  func.func @_reduce_conv3x3_kernel(%arg0: i32, %arg1: memref<1x16x16x8xbf16, #tpu.memory_space<vmem>>, %arg2: memref<8x4xbf16, #tpu.memory_space<vmem>>, %arg3: memref<1x4xf32, #tpu.memory_space<vmem>>, %arg4: memref<36x4xbf16, #tpu.memory_space<vmem>>, %arg5: memref<1x4xf32, #tpu.memory_space<vmem>>, %arg6: memref<1x16x16x4xbf16, #tpu.memory_space<vmem>>, %arg7: memref<20x20x4xbf16, #tpu.memory_space<vmem>>, %arg8: memref<16x16x36xbf16, #tpu.memory_space<vmem>>) attributes {dimension_semantics = [#tpu.dimension_semantics<parallel>], iteration_bounds = array<i64: 2>, scalar_prefetch = 0 : i64, scratch_operands = 2 : i64, tpu.core_type = #tpu.core_type<tc>, window_params = [{transform_indices = @transform_0, window_bounds = array<i64: 1, 16, 16, 8>}, {pipeline_mode = #tpu.pipeline_mode<synchronous>, transform_indices = @transform_1, window_bounds = array<i64: 8, 4>}, {pipeline_mode = #tpu.pipeline_mode<synchronous>, transform_indices = @transform_2, window_bounds = array<i64: 1, 4>}, {pipeline_mode = #tpu.pipeline_mode<synchronous>, transform_indices = @transform_3, window_bounds = array<i64: 36, 4>}, {pipeline_mode = #tpu.pipeline_mode<synchronous>, transform_indices = @transform_4, window_bounds = array<i64: 1, 4>}, {transform_indices = @transform_5, window_bounds = array<i64: 1, 16, 16, 4>}]} {
    %c0 = arith.constant 0 : index
    %c0_0 = arith.constant 0 : index
    %c0_1 = arith.constant 0 : index
    %c0_2 = arith.constant 0 : index
    %0 = vector.load %arg1[%c0, %c0_0, %c0_1, %c0_2] : memref<1x16x16x8xbf16, #tpu.memory_space<vmem>>, vector<1x16x16x8xbf16>
    %1 = vector.shape_cast %0 : vector<1x16x16x8xbf16> to vector<16x16x8xbf16>
    %2 = vector.shape_cast %1 : vector<16x16x8xbf16> to vector<256x8xbf16>
    %c0_3 = arith.constant 0 : index
    %c0_4 = arith.constant 0 : index
    %3 = vector.load %arg2[%c0_3, %c0_4] : memref<8x4xbf16, #tpu.memory_space<vmem>>, vector<8x4xbf16>
    %cst = arith.constant dense<0.000000e+00> : vector<256x4xf32>
    %4 = tpu.matmul %2, %3, %cst {dimension_numbers = #tpu.dot_dimension_numbers<[1], [0], [0], [1], [0, 0, 1, 1], [], []>} : vector<256x8xbf16>, vector<8x4xbf16>, vector<256x4xf32> -> vector<256x4xf32>
    %c0_5 = arith.constant 0 : index
    %c0_6 = arith.constant 0 : index
    %5 = vector.load %arg3[%c0_5, %c0_6] : memref<1x4xf32, #tpu.memory_space<vmem>>, vector<1x4xf32>
    %6 = vector.broadcast %5 : vector<1x4xf32> to vector<256x4xf32>
    %7 = arith.addf %4, %6 : vector<256x4xf32>
    %cst_7 = arith.constant 0.000000e+00 : f32
    %8 = vector.broadcast %cst_7 : f32 to vector<256x4xf32>
    %9 = arith.maximumf %7, %8 : vector<256x4xf32>
    %cst_8 = arith.constant 0.000000e+00 : bf16
    %10 = vector.broadcast %cst_8 : bf16 to vector<20x20x4xbf16>
    %c0_9 = arith.constant 0 : index
    %c0_10 = arith.constant 0 : index
    %c0_11 = arith.constant 0 : index
    %11 = vector.load %arg7[%c0_9, %c0_10, %c0_11] : memref<20x20x4xbf16, #tpu.memory_space<vmem>>, vector<20x20x4xbf16>
    tpu.vector_store %arg7[%c0_9, %c0_10, %c0_11], %10 {strides = array<i32>} : memref<20x20x4xbf16, #tpu.memory_space<vmem>>, vector<20x20x4xbf16>,
    %12 = vector.shape_cast %9 : vector<256x4xf32> to vector<16x16x4xf32>
    %13 = arith.truncf %12 : vector<16x16x4xf32> to vector<16x16x4xbf16>
    %c2 = arith.constant 2 : index
    %c2_12 = arith.constant 2 : index
    %c0_13 = arith.constant 0 : index
    %14 = vector.load %arg7[%c2, %c2_12, %c0_13] : memref<20x20x4xbf16, #tpu.memory_space<vmem>>, vector<16x16x4xbf16>
    tpu.vector_store %arg7[%c2, %c2_12, %c0_13], %13 {strides = array<i32>} : memref<20x20x4xbf16, #tpu.memory_space<vmem>>, vector<16x16x4xbf16>,
    %c0_14 = arith.constant 0 : index
    %c0_15 = arith.constant 0 : index
    %c0_16 = arith.constant 0 : index
    %15 = vector.load %arg7[%c0_14, %c0_15, %c0_16] : memref<20x20x4xbf16, #tpu.memory_space<vmem>>, vector<16x16x4xbf16>
    %c0_17 = arith.constant 0 : index
    %c0_18 = arith.constant 0 : index
    %c0_19 = arith.constant 0 : index
    %16 = vector.load %arg8[%c0_17, %c0_18, %c0_19] : memref<16x16x36xbf16, #tpu.memory_space<vmem>>, vector<16x16x4xbf16>
    tpu.vector_store %arg8[%c0_17, %c0_18, %c0_19], %15 {strides = array<i32>} : memref<16x16x36xbf16, #tpu.memory_space<vmem>>, vector<16x16x4xbf16>,
    %c0_20 = arith.constant 0 : index
    %c2_21 = arith.constant 2 : index
    %c0_22 = arith.constant 0 : index
    %17 = vector.load %arg7[%c0_20, %c2_21, %c0_22] : memref<20x20x4xbf16, #tpu.memory_space<vmem>>, vector<16x16x4xbf16>
    %c0_23 = arith.constant 0 : index
    %c0_24 = arith.constant 0 : index
    %c4 = arith.constant 4 : index
    %18 = vector.load %arg8[%c0_23, %c0_24, %c4] : memref<16x16x36xbf16, #tpu.memory_space<vmem>>, vector<16x16x4xbf16>
    tpu.vector_store %arg8[%c0_23, %c0_24, %c4], %17 {strides = array<i32>} : memref<16x16x36xbf16, #tpu.memory_space<vmem>>, vector<16x16x4xbf16>,
    %c0_25 = arith.constant 0 : index
    %c4_26 = arith.constant 4 : index
    %c0_27 = arith.constant 0 : index
    %19 = vector.load %arg7[%c0_25, %c4_26, %c0_27] : memref<20x20x4xbf16, #tpu.memory_space<vmem>>, vector<16x16x4xbf16>
    %c0_28 = arith.constant 0 : index
    %c0_29 = arith.constant 0 : index
    %c8 = arith.constant 8 : index
    %20 = vector.load %arg8[%c0_28, %c0_29, %c8] : memref<16x16x36xbf16, #tpu.memory_space<vmem>>, vector<16x16x4xbf16>
    tpu.vector_store %arg8[%c0_28, %c0_29, %c8], %19 {strides = array<i32>} : memref<16x16x36xbf16, #tpu.memory_space<vmem>>, vector<16x16x4xbf16>,
    %c2_30 = arith.constant 2 : index
    %c0_31 = arith.constant 0 : index
    %c0_32 = arith.constant 0 : index
    %21 = vector.load %arg7[%c2_30, %c0_31, %c0_32] : memref<20x20x4xbf16, #tpu.memory_space<vmem>>, vector<16x16x4xbf16>
    %c0_33 = arith.constant 0 : index
    %c0_34 = arith.constant 0 : index
    %c12 = arith.constant 12 : index
    %22 = vector.load %arg8[%c0_33, %c0_34, %c12] : memref<16x16x36xbf16, #tpu.memory_space<vmem>>, vector<16x16x4xbf16>
    tpu.vector_store %arg8[%c0_33, %c0_34, %c12], %21 {strides = array<i32>} : memref<16x16x36xbf16, #tpu.memory_space<vmem>>, vector<16x16x4xbf16>,
    %c2_35 = arith.constant 2 : index
    %c2_36 = arith.constant 2 : index
    %c0_37 = arith.constant 0 : index
    %23 = vector.load %arg7[%c2_35, %c2_36, %c0_37] : memref<20x20x4xbf16, #tpu.memory_space<vmem>>, vector<16x16x4xbf16>
    %c0_38 = arith.constant 0 : index
    %c0_39 = arith.constant 0 : index
    %c16 = arith.constant 16 : index
    %24 = vector.load %arg8[%c0_38, %c0_39, %c16] : memref<16x16x36xbf16, #tpu.memory_space<vmem>>, vector<16x16x4xbf16>
    tpu.vector_store %arg8[%c0_38, %c0_39, %c16], %23 {strides = array<i32>} : memref<16x16x36xbf16, #tpu.memory_space<vmem>>, vector<16x16x4xbf16>,
    %c2_40 = arith.constant 2 : index
    %c4_41 = arith.constant 4 : index
    %c0_42 = arith.constant 0 : index
    %25 = vector.load %arg7[%c2_40, %c4_41, %c0_42] : memref<20x20x4xbf16, #tpu.memory_space<vmem>>, vector<16x16x4xbf16>
    %c0_43 = arith.constant 0 : index
    %c0_44 = arith.constant 0 : index
    %c20 = arith.constant 20 : index
    %26 = vector.load %arg8[%c0_43, %c0_44, %c20] : memref<16x16x36xbf16, #tpu.memory_space<vmem>>, vector<16x16x4xbf16>
    tpu.vector_store %arg8[%c0_43, %c0_44, %c20], %25 {strides = array<i32>} : memref<16x16x36xbf16, #tpu.memory_space<vmem>>, vector<16x16x4xbf16>,
    %c4_45 = arith.constant 4 : index
    %c0_46 = arith.constant 0 : index
    %c0_47 = arith.constant 0 : index
    %27 = vector.load %arg7[%c4_45, %c0_46, %c0_47] : memref<20x20x4xbf16, #tpu.memory_space<vmem>>, vector<16x16x4xbf16>
    %c0_48 = arith.constant 0 : index
    %c0_49 = arith.constant 0 : index
    %c24 = arith.constant 24 : index
    %28 = vector.load %arg8[%c0_48, %c0_49, %c24] : memref<16x16x36xbf16, #tpu.memory_space<vmem>>, vector<16x16x4xbf16>
    tpu.vector_store %arg8[%c0_48, %c0_49, %c24], %27 {strides = array<i32>} : memref<16x16x36xbf16, #tpu.memory_space<vmem>>, vector<16x16x4xbf16>,
    %c4_50 = arith.constant 4 : index
    %c2_51 = arith.constant 2 : index
    %c0_52 = arith.constant 0 : index
    %29 = vector.load %arg7[%c4_50, %c2_51, %c0_52] : memref<20x20x4xbf16, #tpu.memory_space<vmem>>, vector<16x16x4xbf16>
    %c0_53 = arith.constant 0 : index
    %c0_54 = arith.constant 0 : index
    %c28 = arith.constant 28 : index
    %30 = vector.load %arg8[%c0_53, %c0_54, %c28] : memref<16x16x36xbf16, #tpu.memory_space<vmem>>, vector<16x16x4xbf16>
    tpu.vector_store %arg8[%c0_53, %c0_54, %c28], %29 {strides = array<i32>} : memref<16x16x36xbf16, #tpu.memory_space<vmem>>, vector<16x16x4xbf16>,
    %c4_55 = arith.constant 4 : index
    %c4_56 = arith.constant 4 : index
    %c0_57 = arith.constant 0 : index
    %31 = vector.load %arg7[%c4_55, %c4_56, %c0_57] : memref<20x20x4xbf16, #tpu.memory_space<vmem>>, vector<16x16x4xbf16>
    %c0_58 = arith.constant 0 : index
    %c0_59 = arith.constant 0 : index
    %c32 = arith.constant 32 : index
    %32 = vector.load %arg8[%c0_58, %c0_59, %c32] : memref<16x16x36xbf16, #tpu.memory_space<vmem>>, vector<16x16x4xbf16>
    tpu.vector_store %arg8[%c0_58, %c0_59, %c32], %31 {strides = array<i32>} : memref<16x16x36xbf16, #tpu.memory_space<vmem>>, vector<16x16x4xbf16>,
    %c0_60 = arith.constant 0 : index
    %c0_61 = arith.constant 0 : index
    %c0_62 = arith.constant 0 : index
    %33 = vector.load %arg8[%c0_60, %c0_61, %c0_62] : memref<16x16x36xbf16, #tpu.memory_space<vmem>>, vector<16x16x36xbf16>
    %34 = vector.shape_cast %33 : vector<16x16x36xbf16> to vector<256x36xbf16>
    %c0_63 = arith.constant 0 : index
    %c0_64 = arith.constant 0 : index
    %35 = vector.load %arg4[%c0_63, %c0_64] : memref<36x4xbf16, #tpu.memory_space<vmem>>, vector<36x4xbf16>
    %cst_65 = arith.constant dense<0.000000e+00> : vector<256x4xf32>
    %36 = tpu.matmul %34, %35, %cst_65 {dimension_numbers = #tpu.dot_dimension_numbers<[1], [0], [0], [1], [0, 0, 1, 1], [], []>} : vector<256x36xbf16>, vector<36x4xbf16>, vector<256x4xf32> -> vector<256x4xf32>
    %c0_66 = arith.constant 0 : index
    %c0_67 = arith.constant 0 : index
    %37 = vector.load %arg5[%c0_66, %c0_67] : memref<1x4xf32, #tpu.memory_space<vmem>>, vector<1x4xf32>
    %38 = vector.broadcast %37 : vector<1x4xf32> to vector<256x4xf32>
    %39 = arith.addf %36, %38 : vector<256x4xf32>
    %cst_68 = arith.constant 0.000000e+00 : f32
    %40 = vector.broadcast %cst_68 : f32 to vector<256x4xf32>
    %41 = arith.maximumf %39, %40 : vector<256x4xf32>
    %42 = vector.shape_cast %41 : vector<256x4xf32> to vector<16x16x4xf32>
    %43 = arith.truncf %42 : vector<16x16x4xf32> to vector<16x16x4xbf16>
    %c0_69 = arith.constant 0 : index
    %c0_70 = arith.constant 0 : index
    %c0_71 = arith.constant 0 : index
    %c0_72 = arith.constant 0 : index
    %44 = vector.load %arg6[%c0_69, %c0_70, %c0_71, %c0_72] : memref<1x16x16x4xbf16, #tpu.memory_space<vmem>>, vector<1x16x16x4xbf16>
    %45 = vector.shape_cast %44 : vector<1x16x16x4xbf16> to vector<16x16x4xbf16>
    %46 = vector.shape_cast %43 : vector<16x16x4xbf16> to vector<1x16x16x4xbf16>
    tpu.vector_store %arg6[%c0_69, %c0_70, %c0_71, %c0_72], %46 {strides = array<i32>} : memref<1x16x16x4xbf16, #tpu.memory_space<vmem>>, vector<1x16x16x4xbf16>,
    return
  }
  func.func @transform_0(%arg0: i32) -> (i32, i32, i32, i32) {
    %c0_i32 = arith.constant 0 : i32
    %c0_i32_0 = arith.constant 0 : i32
    %c0_i32_1 = arith.constant 0 : i32
    %c0_i32_2 = arith.constant 0 : i32
    return %arg0, %c0_i32, %c0_i32_0, %c0_i32_1 : i32, i32, i32, i32
  }
  func.func @transform_1(%arg0: i32) -> (i32, i32) {
    %c0_i32 = arith.constant 0 : i32
    %c0_i32_0 = arith.constant 0 : i32
    %c0_i32_1 = arith.constant 0 : i32
    return %c0_i32, %c0_i32_0 : i32, i32
  }
  func.func @transform_2(%arg0: i32) -> (i32, i32) {
    %c0_i32 = arith.constant 0 : i32
    %c0_i32_0 = arith.constant 0 : i32
    %c0_i32_1 = arith.constant 0 : i32
    return %c0_i32, %c0_i32_0 : i32, i32
  }
  func.func @transform_3(%arg0: i32) -> (i32, i32) {
    %c0_i32 = arith.constant 0 : i32
    %c0_i32_0 = arith.constant 0 : i32
    %c0_i32_1 = arith.constant 0 : i32
    return %c0_i32, %c0_i32_0 : i32, i32
  }
  func.func @transform_4(%arg0: i32) -> (i32, i32) {
    %c0_i32 = arith.constant 0 : i32
    %c0_i32_0 = arith.constant 0 : i32
    %c0_i32_1 = arith.constant 0 : i32
    return %c0_i32, %c0_i32_0 : i32, i32
  }
  func.func @transform_5(%arg0: i32) -> (i32, i32, i32, i32) {
    %c0_i32 = arith.constant 0 : i32
    %c0_i32_0 = arith.constant 0 : i32
    %c0_i32_1 = arith.constant 0 : i32
    %c0_i32_2 = arith.constant 0 : i32
    return %arg0, %c0_i32, %c0_i32_0, %c0_i32_1 : i32, i32, i32, i32
  }
}

</mosaic_0001>

<bundles_post_ra>
// kernel: bottleneck_forward.3
= control target key start
LH: loop header
LB: loop body
LE: loop exit
PB: predicated region body
PF: predicated region fallthrough
CT: control target
= control target key end

     0   :  { %vm409_vm0 = vcmask 1043456   ;;  %vm839_vm1 = vcmask 1041408   ;;  %vm312_vm2 = vcmask 64512   ;;  %vm742_vm3 = vcmask 31744   ;;  %s2074_s0 = inlined_call_operand.vmem [shape: bf16[512,4], index: 0, kind: input, shape index: {}]   ;;  %s2075_s1 = inlined_call_operand.vmem [shape: bf16[4,16], index: 1, kind: input, shape index: {}]   ;;  %s2076_s2 = inlined_call_operand.vmem [shape: f32[1,16], index: 2, kind: input, shape index: {}]   ;;  %s2077_s3 = inlined_call_operand.vmem [shape: bf16[512,8], index: 3, kind: input, shape index: {}]   ;;  %s2078_s4 = inlined_call_operand.vmem [shape: bf16[8,16], index: 4, kind: input, shape index: {}]   ;;  %s2079_s5 = inlined_call_operand.hbm [shape: f32[512,16], index: 5, kind: output, shape index: {}]  }
   0x1   :  { %v151_v0 = vld [vmem:[%s2078_s4] sm:$0xf] }
   0x2   :  { %v86_v1 = vld [vmem:[%s2075_s1] sm:$0x3]  ;;  %v411_v2 = vsel %vm409_vm0, %v151_v0, 0 }
   0x3   :  { %v841_v3 = vsel %vm839_vm1, %v86_v1, 0  ;;  %v1579_v4 = vld [vmem:[%s2077_s3] sm:$0xff]  ;;  %420 = vmatpush.bf16.msra.mxu0 %v411_v2  ;;  %1611 = vmatpush.bf16.msra.mxu2 %v411_v2 }
   0x4   :  { %v1595_v5 = vld [vmem:[%s2077_s3 + $0x80] sm:$0xff]  ;;  %850 = vmatpush.bf16.msra.mxu1 %v841_v3  ;;  %1612 = vmatpush.bf16.msra.mxu3 %v841_v3 }
   0x5   :  { %v1547_v6 = vld [vmem:[%s2074_s0] sm:$0xff] }
   0x6   :  { %v1563_v7 = vld [vmem:[%s2074_s0 + $0x80] sm:$0xff]  ;;  %1355 = vmatmul.msk.bf16.vlgmr.msra.gmra.mxu0 %vm312_vm2, %v1579_v4  ;;  %1371 = vmatmul.msk.bf16.vlgmr.msra.gmra.mxu2 %vm312_vm2, %v1595_v5 }
   0x7   :  { %10 = vsyncpa [#allocation3], 0  ;;  %1515 = vmatmul.msk.bf16.vlgmr.msra.gmra.mxu1 %vm742_vm3, %v1547_v6  ;;  %1531 = vmatmul.msk.bf16.vlgmr.msra.gmra.mxu3 %vm742_vm3, %v1563_v7  ;;  %v1580_v8 = vld [vmem:[%s2077_s3 + $0x8] sm:$0xff]  ;;  %v1581_v12 = vld [vmem:[%s2077_s3 + $0x10] sm:$0xff]  ;;  %vm1144_vm4 = vcmask 130048   ;;  %s1215_s16 = sshll.u32 %s2079_s5, 4  ;;  %s1216_s16 = int_to_ptr.hbm [resolvable:$true] %s1215_s16 }
   0x8   :  { %v1596_v9 = vld [vmem:[%s2077_s3 + $0x88] sm:$0xff]  ;;  %v1597_v13 = vld [vmem:[%s2077_s3 + $0x90] sm:$0xff]  ;;  %v1582_v16 = vld [vmem:[%s2077_s3 + $0x18] sm:$0xff]  ;;  %s1644_s17 = smov 128   ;;  %s1645_s18 = smov 8  }
   0x9   :  { %v1548_v10 = vld [vmem:[%s2074_s0 + $0x8] sm:$0xff]  ;;  %v1549_v14 = vld [vmem:[%s2074_s0 + $0x10] sm:$0xff]  ;;  %v1598_v17 = vld [vmem:[%s2077_s3 + $0x98] sm:$0xff] }
   0xa   :  { %v1564_v11 = vld [vmem:[%s2074_s0 + $0x88] sm:$0xff]  ;;  %v1565_v15 = vld [vmem:[%s2074_s0 + $0x90] sm:$0xff]  ;;  %v1550_v18 = vld [vmem:[%s2074_s0 + $0x18] sm:$0xff] }
   0xb   :  { %v1566_v19 = vld [vmem:[%s2074_s0 + $0x98] sm:$0xff]  ;;  %v1583_v20 = vld [vmem:[%s2077_s3 + $0x20] sm:$0xff]  ;;  %v1584_v24 = vld [vmem:[%s2077_s3 + $0x28] sm:$0xff] }
   0xc   :  { %v1599_v21 = vld [vmem:[%s2077_s3 + $0xa0] sm:$0xff]  ;;  %v1600_v25 = vld [vmem:[%s2077_s3 + $0xa8] sm:$0xff]  ;;  %v1585_v28 = vld [vmem:[%s2077_s3 + $0x30] sm:$0xff] }
   0xd   :  { %v1551_v22 = vld [vmem:[%s2074_s0 + $0x20] sm:$0xff]  ;;  %v1552_v26 = vld [vmem:[%s2074_s0 + $0x28] sm:$0xff]  ;;  %v1601_v29 = vld [vmem:[%s2077_s3 + $0xb0] sm:$0xff] }
   0xe   :  { %v1567_v23 = vld [vmem:[%s2074_s0 + $0xa0] sm:$0xff]  ;;  %v1568_v27 = vld [vmem:[%s2074_s0 + $0xa8] sm:$0xff]  ;;  %v1553_v30 = vld [vmem:[%s2074_s0 + $0x30] sm:$0xff] }
   0xf   :  { %v1569_v31 = vld [vmem:[%s2074_s0 + $0xb0] sm:$0xff]  ;;  %v1586_v32 = vld [vmem:[%s2077_s3 + $0x38] sm:$0xff]  ;;  %v1587_v36 = vld [vmem:[%s2077_s3 + $0x40] sm:$0xff] }
  0x10   :  { %v1602_v33 = vld [vmem:[%s2077_s3 + $0xb8] sm:$0xff]  ;;  %v1603_v37 = vld [vmem:[%s2077_s3 + $0xc0] sm:$0xff]  ;;  %v1588_v58 = vld [vmem:[%s2077_s3 + $0x48] sm:$0xff] }
  0x11   :  { %v1554_v34 = vld [vmem:[%s2074_s0 + $0x38] sm:$0xff]  ;;  %v1819_v39 = vld [vmem:[%s2076_s2] ss:$0 sm:$0xff]  ;;  %v1604_v59 = vld [vmem:[%s2077_s3 + $0xc8] sm:$0xff] }
  0x12   :  { %v1570_v35 = vld [vmem:[%s2074_s0 + $0xb8] sm:$0xff]  ;;  %v1555_v40 = vld [vmem:[%s2074_s0 + $0x40] sm:$0xff]  ;;  %v1556_v62 = vld [vmem:[%s2074_s0 + $0x48] sm:$0xff] }
  0x13   :  { %v1571_v41 = vld [vmem:[%s2074_s0 + $0xc0] sm:$0xff]  ;;  %v1572_v63 = vld [vmem:[%s2074_s0 + $0xc8] sm:$0xff] }
  0x16   :  { %1356 = vmatmul.msk.bf16.gmra.mxu0 %vm312_vm2, %v1580_v8  ;;  %1372 = vmatmul.msk.bf16.gmra.mxu2 %vm312_vm2, %v1596_v9 }
  0x17   :  { %1516 = vmatmul.msk.bf16.gmra.mxu1 %vm742_vm3, %v1548_v10  ;;  %1532 = vmatmul.msk.bf16.gmra.mxu3 %vm742_vm3, %v1564_v11 }
  0x26   :  { %1357 = vmatmul.msk.bf16.gmra.mxu0 %vm312_vm2, %v1581_v12  ;;  %1373 = vmatmul.msk.bf16.gmra.mxu2 %vm312_vm2, %v1597_v13 }
  0x27   :  { %1517 = vmatmul.msk.bf16.gmra.mxu1 %vm742_vm3, %v1549_v14  ;;  %1533 = vmatmul.msk.bf16.gmra.mxu3 %vm742_vm3, %v1565_v15 }
  0x36   :  { %1358 = vmatmul.msk.bf16.gmra.mxu0 %vm312_vm2, %v1582_v16  ;;  %1374 = vmatmul.msk.bf16.gmra.mxu2 %vm312_vm2, %v1598_v17 }
  0x37   :  { %1518 = vmatmul.msk.bf16.gmra.mxu1 %vm742_vm3, %v1550_v18  ;;  %1534 = vmatmul.msk.bf16.gmra.mxu3 %vm742_vm3, %v1566_v19  ;;  %v1589_v18 = vld [vmem:[%s2077_s3 + $0x50] sm:$0xff] }
  0x38   :  { %v1605_v19 = vld [vmem:[%s2077_s3 + $0xd0] sm:$0xff] }
  0x46   :  { %1359 = vmatmul.msk.bf16.gmra.mxu0 %vm312_vm2, %v1583_v20  ;;  %1375 = vmatmul.msk.bf16.gmra.mxu2 %vm312_vm2, %v1599_v21 }
  0x47   :  { %1519 = vmatmul.msk.bf16.gmra.mxu1 %vm742_vm3, %v1551_v22  ;;  %1535 = vmatmul.msk.bf16.gmra.mxu3 %vm742_vm3, %v1567_v23  ;;  %v1557_v22 = vld [vmem:[%s2074_s0 + $0x50] sm:$0xff] }
  0x48   :  { %v1573_v23 = vld [vmem:[%s2074_s0 + $0xd0] sm:$0xff] }
  0x56   :  { %1360 = vmatmul.msk.bf16.gmra.mxu0 %vm312_vm2, %v1584_v24  ;;  %1376 = vmatmul.msk.bf16.gmra.mxu2 %vm312_vm2, %v1600_v25 }
  0x57   :  { %1520 = vmatmul.msk.bf16.gmra.mxu1 %vm742_vm3, %v1552_v26  ;;  %1536 = vmatmul.msk.bf16.gmra.mxu3 %vm742_vm3, %v1568_v27 }
  0x66   :  { %1361 = vmatmul.msk.bf16.gmra.mxu0 %vm312_vm2, %v1585_v28  ;;  %1377 = vmatmul.msk.bf16.gmra.mxu2 %vm312_vm2, %v1601_v29 }
  0x67   :  { %1521 = vmatmul.msk.bf16.gmra.mxu1 %vm742_vm3, %v1553_v30  ;;  %1537 = vmatmul.msk.bf16.gmra.mxu3 %vm742_vm3, %v1569_v31 }
  0x76   :  { %1362 = vmatmul.msk.bf16.gmra.mxu0 %vm312_vm2, %v1586_v32  ;;  %1378 = vmatmul.msk.bf16.gmra.mxu2 %vm312_vm2, %v1602_v33 }
  0x77   :  { %1522 = vmatmul.msk.bf16.gmra.mxu1 %vm742_vm3, %v1554_v34  ;;  %1538 = vmatmul.msk.bf16.gmra.mxu3 %vm742_vm3, %v1570_v35 }
  0x83   :  { %v422_v38 = vpop.f32.mrf.mxu0 }
  0x84   :  { %v852_v42 = vpop.f32.mrf.mxu1 }
  0x85   :  { %v853_v43 = vadd.f32 %v852_v42, %v422_v38 }
  0x86   :  { %1363 = vmatmul.msk.bf16.gmra.mxu0 %vm312_vm2, %v1587_v36  ;;  %1379 = vmatmul.msk.bf16.gmra.mxu2 %vm312_vm2, %v1603_v37 }
  0x87   :  { %v1016_v44 = vadd.f32 %v1819_v39, %v853_v43  ;;  %1523 = vmatmul.msk.bf16.gmra.mxu1 %vm742_vm3, %v1555_v40  ;;  %1539 = vmatmul.msk.bf16.gmra.mxu3 %vm742_vm3, %v1571_v41  ;;  %v1590_v43 = vld [vmem:[%s2077_s3 + $0x58] sm:$0xff] }
  0x89   :  { %v1080_v45 = vmax.f32 %v1016_v44, 0.0  ;;  %v502_v46 = vpop.f32.mrf.mxu2  ;;  %v1606_v44 = vld [vmem:[%s2077_s3 + $0xd8] sm:$0xff] }
  0x8a   :  { %v932_v47 = vpop.f32.mrf.mxu3 }
  0x8b   :  { %1145 = vst.msk [vmem:[#allocation2] sm:$0xff] %vm1144_vm4, %v1080_v45  ;;  %v933_v48 = vadd.f32 %v932_v47, %v502_v46  ;;  %v424_v49 = vpop.f32.mrf.mxu0  ;;  %v1558_v47 = vld [vmem:[%s2074_s0 + $0x58] sm:$0xff] }
  0x8c   :  { %v854_v50 = vpop.f32.mrf.mxu1 }
  0x8d   :  { %v1048_v51 = vadd.f32 %v1819_v39, %v933_v48  ;;  %v855_v52 = vadd.f32 %v854_v50, %v424_v49  ;;  %v1574_v48 = vld [vmem:[%s2074_s0 + $0xd8] sm:$0xff] }
  0x8f   :  { %v1112_v53 = vmax.f32 %v1048_v51, 0.0  ;;  %v1017_v54 = vadd.f32 %v1819_v39, %v855_v52 }
  0x91   :  { %1177 = vst.msk [vmem:[#allocation2 + $0x100] sm:$0xff] %vm1144_vm4, %v1112_v53  ;;  %v1081_v55 = vmax.f32 %v1017_v54, 0.0  ;;  %v504_v56 = vpop.f32.mrf.mxu2 }
  0x92   :  { %v934_v57 = vpop.f32.mrf.mxu3 }
  0x93   :  { %1146 = vst.msk [vmem:[#allocation2 + $0x8] sm:$0xff] %vm1144_vm4, %v1081_v55  ;;  %v935_v60 = vadd.f32 %v934_v57, %v504_v56  ;;  %v427_v61 = vpop.f32.mrf.mxu0 }
  0x94   :  { %v857_v0 = vpop.f32.mrf.mxu1 }
  0x95   :  { %v1049_v1 = vadd.f32 %v1819_v39, %v935_v60  ;;  %v858_v2 = vadd.f32 %v857_v0, %v427_v61 }
  0x96   :  { %1364 = vmatmul.msk.bf16.gmra.mxu0 %vm312_vm2, %v1588_v58  ;;  %1380 = vmatmul.msk.bf16.gmra.mxu2 %vm312_vm2, %v1604_v59 }
  0x97   :  { %v1113_v3 = vmax.f32 %v1049_v1, 0.0  ;;  %v1018_v4 = vadd.f32 %v1819_v39, %v858_v2  ;;  %1524 = vmatmul.msk.bf16.gmra.mxu1 %vm742_vm3, %v1556_v62  ;;  %1540 = vmatmul.msk.bf16.gmra.mxu3 %vm742_vm3, %v1572_v63 }
  0x99   :  { %1178 = vst.msk [vmem:[#allocation2 + $0x108] sm:$0xff] %vm1144_vm4, %v1113_v3  ;;  %v1082_v5 = vmax.f32 %v1018_v4, 0.0  ;;  %v507_v6 = vpop.f32.mrf.mxu2  ;;  %v1591_v3 = vld [vmem:[%s2077_s3 + $0x60] sm:$0xff] }
  0x9a   :  { %v937_v7 = vpop.f32.mrf.mxu3  ;;  %v1607_v4 = vld [vmem:[%s2077_s3 + $0xe0] sm:$0xff] }
  0x9b   :  { %1147 = vst.msk [vmem:[#allocation2 + $0x10] sm:$0xff] %vm1144_vm4, %v1082_v5  ;;  %v938_v8 = vadd.f32 %v937_v7, %v507_v6  ;;  %v429_v9 = vpop.f32.mrf.mxu0  ;;  %v1559_v7 = vld [vmem:[%s2074_s0 + $0x60] sm:$0xff] }
  0x9c   :  { %v859_v10 = vpop.f32.mrf.mxu1 }
  0x9d   :  { %v1050_v11 = vadd.f32 %v1819_v39, %v938_v8  ;;  %v860_v12 = vadd.f32 %v859_v10, %v429_v9  ;;  %v1575_v8 = vld [vmem:[%s2074_s0 + $0xe0] sm:$0xff] }
  0x9f   :  { %v1114_v13 = vmax.f32 %v1050_v11, 0.0  ;;  %v1019_v14 = vadd.f32 %v1819_v39, %v860_v12 }
  0xa1   :  { %1179 = vst.msk [vmem:[#allocation2 + $0x110] sm:$0xff] %vm1144_vm4, %v1114_v13  ;;  %v1083_v15 = vmax.f32 %v1019_v14, 0.0  ;;  %v509_v16 = vpop.f32.mrf.mxu2 }
  0xa2   :  { %v939_v17 = vpop.f32.mrf.mxu3 }
  0xa3   :  { %1148 = vst.msk [vmem:[#allocation2 + $0x18] sm:$0xff] %vm1144_vm4, %v1083_v15  ;;  %v940_v20 = vadd.f32 %v939_v17, %v509_v16  ;;  %v432_v21 = vpop.f32.mrf.mxu0 }
  0xa4   :  { %v862_v24 = vpop.f32.mrf.mxu1 }
  0xa5   :  { %v1051_v25 = vadd.f32 %v1819_v39, %v940_v20  ;;  %v863_v26 = vadd.f32 %v862_v24, %v432_v21 }
  0xa6   :  { %1365 = vmatmul.msk.bf16.gmra.mxu0 %vm312_vm2, %v1589_v18  ;;  %1381 = vmatmul.msk.bf16.gmra.mxu2 %vm312_vm2, %v1605_v19 }
  0xa7   :  { %v1115_v27 = vmax.f32 %v1051_v25, 0.0  ;;  %v1020_v28 = vadd.f32 %v1819_v39, %v863_v26  ;;  %1525 = vmatmul.msk.bf16.gmra.mxu1 %vm742_vm3, %v1557_v22  ;;  %1541 = vmatmul.msk.bf16.gmra.mxu3 %vm742_vm3, %v1573_v23 }
  0xa9   :  { %1180 = vst.msk [vmem:[#allocation2 + $0x118] sm:$0xff] %vm1144_vm4, %v1115_v27  ;;  %v1084_v29 = vmax.f32 %v1020_v28, 0.0  ;;  %v512_v30 = vpop.f32.mrf.mxu2  ;;  %v1592_v27 = vld [vmem:[%s2077_s3 + $0x68] sm:$0xff] }
  0xaa   :  { %v942_v31 = vpop.f32.mrf.mxu3  ;;  %v1608_v28 = vld [vmem:[%s2077_s3 + $0xe8] sm:$0xff] }
  0xab   :  { %1149 = vst.msk [vmem:[#allocation2 + $0x20] sm:$0xff] %vm1144_vm4, %v1084_v29  ;;  %v943_v32 = vadd.f32 %v942_v31, %v512_v30  ;;  %v434_v33 = vpop.f32.mrf.mxu0  ;;  %v1560_v31 = vld [vmem:[%s2074_s0 + $0x68] sm:$0xff] }
  0xac   :  { %v864_v34 = vpop.f32.mrf.mxu1 }
  0xad   :  { %v1052_v35 = vadd.f32 %v1819_v39, %v943_v32  ;;  %v865_v36 = vadd.f32 %v864_v34, %v434_v33  ;;  %v1576_v32 = vld [vmem:[%s2074_s0 + $0xe8] sm:$0xff] }
  0xaf   :  { %v1116_v37 = vmax.f32 %v1052_v35, 0.0  ;;  %v1021_v38 = vadd.f32 %v1819_v39, %v865_v36 }
  0xb1   :  { %1181 = vst.msk [vmem:[#allocation2 + $0x120] sm:$0xff] %vm1144_vm4, %v1116_v37  ;;  %v1085_v40 = vmax.f32 %v1021_v38, 0.0  ;;  %v514_v41 = vpop.f32.mrf.mxu2 }
  0xb2   :  { %v944_v42 = vpop.f32.mrf.mxu3 }
  0xb3   :  { %1150 = vst.msk [vmem:[#allocation2 + $0x28] sm:$0xff] %vm1144_vm4, %v1085_v40  ;;  %v945_v45 = vadd.f32 %v944_v42, %v514_v41  ;;  %v437_v46 = vpop.f32.mrf.mxu0 }
  0xb4   :  { %v867_v49 = vpop.f32.mrf.mxu1 }
  0xb5   :  { %v1053_v50 = vadd.f32 %v1819_v39, %v945_v45  ;;  %v868_v51 = vadd.f32 %v867_v49, %v437_v46 }
  0xb6   :  { %1366 = vmatmul.msk.bf16.gmra.mxu0 %vm312_vm2, %v1590_v43  ;;  %1382 = vmatmul.msk.bf16.gmra.mxu2 %vm312_vm2, %v1606_v44 }
  0xb7   :  { %v1117_v52 = vmax.f32 %v1053_v50, 0.0  ;;  %v1022_v53 = vadd.f32 %v1819_v39, %v868_v51  ;;  %1526 = vmatmul.msk.bf16.gmra.mxu1 %vm742_vm3, %v1558_v47  ;;  %1542 = vmatmul.msk.bf16.gmra.mxu3 %vm742_vm3, %v1574_v48 }
  0xb9   :  { %1182 = vst.msk [vmem:[#allocation2 + $0x128] sm:$0xff] %vm1144_vm4, %v1117_v52  ;;  %v1086_v54 = vmax.f32 %v1022_v53, 0.0  ;;  %v517_v55 = vpop.f32.mrf.mxu2  ;;  %v1593_v52 = vld [vmem:[%s2077_s3 + $0x70] sm:$0xff] }
  0xba   :  { %v947_v56 = vpop.f32.mrf.mxu3  ;;  %v1609_v53 = vld [vmem:[%s2077_s3 + $0xf0] sm:$0xff] }
  0xbb   :  { %1151 = vst.msk [vmem:[#allocation2 + $0x30] sm:$0xff] %vm1144_vm4, %v1086_v54  ;;  %v948_v57 = vadd.f32 %v947_v56, %v517_v55  ;;  %v439_v58 = vpop.f32.mrf.mxu0  ;;  %v1561_v56 = vld [vmem:[%s2074_s0 + $0x70] sm:$0xff] }
  0xbc   :  { %v869_v59 = vpop.f32.mrf.mxu1 }
  0xbd   :  { %v1054_v60 = vadd.f32 %v1819_v39, %v948_v57  ;;  %v870_v61 = vadd.f32 %v869_v59, %v439_v58  ;;  %v1577_v57 = vld [vmem:[%s2074_s0 + $0xf0] sm:$0xff] }
  0xbf   :  { %v1118_v62 = vmax.f32 %v1054_v60, 0.0  ;;  %v1023_v63 = vadd.f32 %v1819_v39, %v870_v61 }
  0xc1   :  { %1183 = vst.msk [vmem:[#allocation2 + $0x130] sm:$0xff] %vm1144_vm4, %v1118_v62  ;;  %v1087_v0 = vmax.f32 %v1023_v63, 0.0  ;;  %v519_v1 = vpop.f32.mrf.mxu2 }
  0xc2   :  { %v949_v2 = vpop.f32.mrf.mxu3 }
  0xc3   :  { %1152 = vst.msk [vmem:[#allocation2 + $0x38] sm:$0xff] %vm1144_vm4, %v1087_v0  ;;  %v950_v5 = vadd.f32 %v949_v2, %v519_v1  ;;  %v442_v6 = vpop.f32.mrf.mxu0 }
  0xc4   :  { %v872_v9 = vpop.f32.mrf.mxu1 }
  0xc5   :  { %v1055_v10 = vadd.f32 %v1819_v39, %v950_v5  ;;  %v873_v11 = vadd.f32 %v872_v9, %v442_v6 }
  0xc6   :  { %1367 = vmatmul.msk.bf16.gmra.mxu0 %vm312_vm2, %v1591_v3  ;;  %1383 = vmatmul.msk.bf16.gmra.mxu2 %vm312_vm2, %v1607_v4 }
  0xc7   :  { %v1119_v12 = vmax.f32 %v1055_v10, 0.0  ;;  %v1024_v13 = vadd.f32 %v1819_v39, %v873_v11  ;;  %1527 = vmatmul.msk.bf16.gmra.mxu1 %vm742_vm3, %v1559_v7  ;;  %1543 = vmatmul.msk.bf16.gmra.mxu3 %vm742_vm3, %v1575_v8 }
  0xc9   :  { %1184 = vst.msk [vmem:[#allocation2 + $0x138] sm:$0xff] %vm1144_vm4, %v1119_v12  ;;  %v1088_v14 = vmax.f32 %v1024_v13, 0.0  ;;  %v522_v15 = vpop.f32.mrf.mxu2  ;;  %v1594_v12 = vld [vmem:[%s2077_s3 + $0x78] sm:$0xff] }
  0xca   :  { %v952_v16 = vpop.f32.mrf.mxu3  ;;  %v1610_v13 = vld [vmem:[%s2077_s3 + $0xf8] sm:$0xff] }
  0xcb   :  { %1153 = vst.msk [vmem:[#allocation2 + $0x40] sm:$0xff] %vm1144_vm4, %v1088_v14  ;;  %v953_v17 = vadd.f32 %v952_v16, %v522_v15  ;;  %v444_v18 = vpop.f32.mrf.mxu0  ;;  %v1562_v16 = vld [vmem:[%s2074_s0 + $0x78] sm:$0xff] }
  0xcc   :  { %v874_v19 = vpop.f32.mrf.mxu1 }
  0xcd   :  { %v1056_v20 = vadd.f32 %v1819_v39, %v953_v17  ;;  %v875_v21 = vadd.f32 %v874_v19, %v444_v18  ;;  %v1578_v17 = vld [vmem:[%s2074_s0 + $0xf8] sm:$0xff]  ;;  %s1643_s0 = smov [#allocation2]  }
  0xce   :  { %s1213_s3 = sshll.u32 %s1643_s0, 4  ;;  %s1214_s3 = int_to_ptr.vmem [resolvable:$true] %s1213_s3 }
  0xcf   :  { %v1120_v22 = vmax.f32 %v1056_v20, 0.0  ;;  %v1025_v23 = vadd.f32 %v1819_v39, %v875_v21 }
  0xd1   :  { %1185 = vst.msk [vmem:[#allocation2 + $0x140] sm:$0xff] %vm1144_vm4, %v1120_v22  ;;  %v1089_v24 = vmax.f32 %v1025_v23, 0.0  ;;  %v524_v25 = vpop.f32.mrf.mxu2 }
  0xd2   :  { %v954_v26 = vpop.f32.mrf.mxu3 }
  0xd3   :  { %1154 = vst.msk [vmem:[#allocation2 + $0x48] sm:$0xff] %vm1144_vm4, %v1089_v24  ;;  %v955_v29 = vadd.f32 %v954_v26, %v524_v25  ;;  %v447_v30 = vpop.f32.mrf.mxu0 }
  0xd4   :  { %v877_v33 = vpop.f32.mrf.mxu1 }
  0xd5   :  { %v1057_v34 = vadd.f32 %v1819_v39, %v955_v29  ;;  %v878_v35 = vadd.f32 %v877_v33, %v447_v30 }
  0xd6   :  { %1368 = vmatmul.msk.bf16.gmra.mxu0 %vm312_vm2, %v1592_v27  ;;  %1384 = vmatmul.msk.bf16.gmra.mxu2 %vm312_vm2, %v1608_v28 }
  0xd7   :  { %v1121_v36 = vmax.f32 %v1057_v34, 0.0  ;;  %v1026_v37 = vadd.f32 %v1819_v39, %v878_v35  ;;  %1528 = vmatmul.msk.bf16.gmra.mxu1 %vm742_vm3, %v1560_v31  ;;  %1544 = vmatmul.msk.bf16.gmra.mxu3 %vm742_vm3, %v1576_v32 }
  0xd9   :  { %1186 = vst.msk [vmem:[#allocation2 + $0x148] sm:$0xff] %vm1144_vm4, %v1121_v36  ;;  %v1090_v38 = vmax.f32 %v1026_v37, 0.0  ;;  %v527_v40 = vpop.f32.mrf.mxu2 }
  0xda   :  { %v957_v41 = vpop.f32.mrf.mxu3 }
  0xdb   :  { %1155 = vst.msk [vmem:[#allocation2 + $0x50] sm:$0xff] %vm1144_vm4, %v1090_v38  ;;  %v958_v42 = vadd.f32 %v957_v41, %v527_v40  ;;  %v449_v43 = vpop.f32.mrf.mxu0 }
  0xdc   :  { %v879_v44 = vpop.f32.mrf.mxu1 }
  0xdd   :  { %v1058_v45 = vadd.f32 %v1819_v39, %v958_v42  ;;  %v880_v46 = vadd.f32 %v879_v44, %v449_v43 }
  0xdf   :  { %v1122_v47 = vmax.f32 %v1058_v45, 0.0  ;;  %v1027_v48 = vadd.f32 %v1819_v39, %v880_v46 }
  0xe1   :  { %1187 = vst.msk [vmem:[#allocation2 + $0x150] sm:$0xff] %vm1144_vm4, %v1122_v47  ;;  %v1091_v49 = vmax.f32 %v1027_v48, 0.0  ;;  %v529_v50 = vpop.f32.mrf.mxu2 }
  0xe2   :  { %v959_v51 = vpop.f32.mrf.mxu3 }
  0xe3   :  { %1156 = vst.msk [vmem:[#allocation2 + $0x58] sm:$0xff] %vm1144_vm4, %v1091_v49  ;;  %v960_v54 = vadd.f32 %v959_v51, %v529_v50  ;;  %v452_v55 = vpop.f32.mrf.mxu0 }
  0xe4   :  { %v882_v58 = vpop.f32.mrf.mxu1 }
  0xe5   :  { %v1059_v59 = vadd.f32 %v1819_v39, %v960_v54  ;;  %v883_v60 = vadd.f32 %v882_v58, %v452_v55 }
  0xe6   :  { %1369 = vmatmul.msk.bf16.gmra.mxu0 %vm312_vm2, %v1593_v52  ;;  %1385 = vmatmul.msk.bf16.gmra.mxu2 %vm312_vm2, %v1609_v53 }
  0xe7   :  { %v1123_v61 = vmax.f32 %v1059_v59, 0.0  ;;  %v1028_v62 = vadd.f32 %v1819_v39, %v883_v60  ;;  %1529 = vmatmul.msk.bf16.gmra.mxu1 %vm742_vm3, %v1561_v56  ;;  %1545 = vmatmul.msk.bf16.gmra.mxu3 %vm742_vm3, %v1577_v57 }
  0xe9   :  { %1188 = vst.msk [vmem:[#allocation2 + $0x158] sm:$0xff] %vm1144_vm4, %v1123_v61  ;;  %v1092_v63 = vmax.f32 %v1028_v62, 0.0  ;;  %v532_v0 = vpop.f32.mrf.mxu2 }
  0xea   :  { %v962_v1 = vpop.f32.mrf.mxu3 }
  0xeb   :  { %1157 = vst.msk [vmem:[#allocation2 + $0x60] sm:$0xff] %vm1144_vm4, %v1092_v63  ;;  %v963_v2 = vadd.f32 %v962_v1, %v532_v0  ;;  %v454_v3 = vpop.f32.mrf.mxu0 }
  0xec   :  { %v884_v4 = vpop.f32.mrf.mxu1 }
  0xed   :  { %v1060_v5 = vadd.f32 %v1819_v39, %v963_v2  ;;  %v885_v6 = vadd.f32 %v884_v4, %v454_v3 }
  0xef   :  { %v1124_v7 = vmax.f32 %v1060_v5, 0.0  ;;  %v1029_v8 = vadd.f32 %v1819_v39, %v885_v6 }
  0xf1   :  { %1189 = vst.msk [vmem:[#allocation2 + $0x160] sm:$0xff] %vm1144_vm4, %v1124_v7  ;;  %v1093_v9 = vmax.f32 %v1029_v8, 0.0  ;;  %v534_v10 = vpop.f32.mrf.mxu2 }
  0xf2   :  { %v964_v11 = vpop.f32.mrf.mxu3 }
  0xf3   :  { %1158 = vst.msk [vmem:[#allocation2 + $0x68] sm:$0xff] %vm1144_vm4, %v1093_v9  ;;  %v965_v14 = vadd.f32 %v964_v11, %v534_v10  ;;  %v457_v15 = vpop.f32.mrf.mxu0 }
  0xf4   :  { %v887_v18 = vpop.f32.mrf.mxu1 }
  0xf5   :  { %v1061_v19 = vadd.f32 %v1819_v39, %v965_v14  ;;  %v888_v20 = vadd.f32 %v887_v18, %v457_v15 }
  0xf6   :  { %1370 = vmatmul.msk.bf16.gmra.mxu0 %vm312_vm2, %v1594_v12  ;;  %1386 = vmatmul.msk.bf16.gmra.mxu2 %vm312_vm2, %v1610_v13 }
  0xf7   :  { %v1125_v21 = vmax.f32 %v1061_v19, 0.0  ;;  %v1030_v22 = vadd.f32 %v1819_v39, %v888_v20  ;;  %1530 = vmatmul.msk.bf16.gmra.mxu1 %vm742_vm3, %v1562_v16  ;;  %1546 = vmatmul.msk.bf16.gmra.mxu3 %vm742_vm3, %v1578_v17 }
  0xf9   :  { %1190 = vst.msk [vmem:[#allocation2 + $0x168] sm:$0xff] %vm1144_vm4, %v1125_v21  ;;  %v1094_v23 = vmax.f32 %v1030_v22, 0.0  ;;  %v537_v24 = vpop.f32.mrf.mxu2 }
  0xfa   :  { %v967_v25 = vpop.f32.mrf.mxu3 }
  0xfb   :  { %1159 = vst.msk [vmem:[#allocation2 + $0x70] sm:$0xff] %vm1144_vm4, %v1094_v23  ;;  %v968_v26 = vadd.f32 %v967_v25, %v537_v24  ;;  %v459_v27 = vpop.f32.mrf.mxu0 }
  0xfc   :  { %v889_v28 = vpop.f32.mrf.mxu1 }
  0xfd   :  { %v1062_v29 = vadd.f32 %v1819_v39, %v968_v26  ;;  %v890_v30 = vadd.f32 %v889_v28, %v459_v27 }
  0xff   :  { %v1126_v31 = vmax.f32 %v1062_v29, 0.0  ;;  %v1031_v32 = vadd.f32 %v1819_v39, %v890_v30 }
 0x101   :  { %1191 = vst.msk [vmem:[#allocation2 + $0x170] sm:$0xff] %vm1144_vm4, %v1126_v31  ;;  %v1095_v33 = vmax.f32 %v1031_v32, 0.0  ;;  %v539_v34 = vpop.f32.mrf.mxu2 }
 0x102   :  { %v969_v35 = vpop.f32.mrf.mxu3 }
 0x103   :  { %1160 = vst.msk [vmem:[#allocation2 + $0x78] sm:$0xff] %vm1144_vm4, %v1095_v33  ;;  %v970_v36 = vadd.f32 %v969_v35, %v539_v34  ;;  %v462_v37 = vpop.f32.mrf.mxu0 }
 0x104   :  { %v892_v38 = vpop.f32.mrf.mxu1 }
 0x105   :  { %v1063_v40 = vadd.f32 %v1819_v39, %v970_v36  ;;  %v893_v41 = vadd.f32 %v892_v38, %v462_v37 }
 0x107   :  { %v1127_v42 = vmax.f32 %v1063_v40, 0.0  ;;  %v1032_v43 = vadd.f32 %v1819_v39, %v893_v41 }
 0x109   :  { %1192 = vst.msk [vmem:[#allocation2 + $0x178] sm:$0xff] %vm1144_vm4, %v1127_v42  ;;  %v1096_v44 = vmax.f32 %v1032_v43, 0.0  ;;  %v542_v45 = vpop.f32.mrf.mxu2 }
 0x10a   :  { %v972_v46 = vpop.f32.mrf.mxu3 }
 0x10b   :  { %1161 = vst.msk [vmem:[#allocation2 + $0x80] sm:$0xff] %vm1144_vm4, %v1096_v44  ;;  %v973_v47 = vadd.f32 %v972_v46, %v542_v45  ;;  %v464_v48 = vpop.f32.mrf.mxu0 }
 0x10c   :  { %v894_v49 = vpop.f32.mrf.mxu1 }
 0x10d   :  { %v1064_v50 = vadd.f32 %v1819_v39, %v973_v47  ;;  %v895_v51 = vadd.f32 %v894_v49, %v464_v48 }
 0x10f   :  { %v1128_v52 = vmax.f32 %v1064_v50, 0.0  ;;  %v1033_v53 = vadd.f32 %v1819_v39, %v895_v51 }
 0x111   :  { %1193 = vst.msk [vmem:[#allocation2 + $0x180] sm:$0xff] %vm1144_vm4, %v1128_v52  ;;  %v1097_v54 = vmax.f32 %v1033_v53, 0.0  ;;  %v544_v55 = vpop.f32.mrf.mxu2 }
 0x112   :  { %v974_v56 = vpop.f32.mrf.mxu3 }
 0x113   :  { %1162 = vst.msk [vmem:[#allocation2 + $0x88] sm:$0xff] %vm1144_vm4, %v1097_v54  ;;  %v975_v57 = vadd.f32 %v974_v56, %v544_v55  ;;  %v467_v58 = vpop.f32.mrf.mxu0 }
 0x114   :  { %v897_v59 = vpop.f32.mrf.mxu1 }
 0x115   :  { %v1065_v60 = vadd.f32 %v1819_v39, %v975_v57  ;;  %v898_v61 = vadd.f32 %v897_v59, %v467_v58 }
 0x117   :  { %v1129_v62 = vmax.f32 %v1065_v60, 0.0  ;;  %v1034_v63 = vadd.f32 %v1819_v39, %v898_v61 }
 0x119   :  { %1194 = vst.msk [vmem:[#allocation2 + $0x188] sm:$0xff] %vm1144_vm4, %v1129_v62  ;;  %v1098_v0 = vmax.f32 %v1034_v63, 0.0  ;;  %v547_v1 = vpop.f32.mrf.mxu2 }
 0x11a   :  { %v977_v2 = vpop.f32.mrf.mxu3 }
 0x11b   :  { %1163 = vst.msk [vmem:[#allocation2 + $0x90] sm:$0xff] %vm1144_vm4, %v1098_v0  ;;  %v978_v3 = vadd.f32 %v977_v2, %v547_v1  ;;  %v469_v4 = vpop.f32.mrf.mxu0 }
 0x11c   :  { %v899_v5 = vpop.f32.mrf.mxu1 }
 0x11d   :  { %v1066_v6 = vadd.f32 %v1819_v39, %v978_v3  ;;  %v900_v7 = vadd.f32 %v899_v5, %v469_v4 }
 0x11f   :  { %v1130_v8 = vmax.f32 %v1066_v6, 0.0  ;;  %v1035_v9 = vadd.f32 %v1819_v39, %v900_v7 }
 0x121   :  { %1195 = vst.msk [vmem:[#allocation2 + $0x190] sm:$0xff] %vm1144_vm4, %v1130_v8  ;;  %v1099_v10 = vmax.f32 %v1035_v9, 0.0  ;;  %v549_v11 = vpop.f32.mrf.mxu2 }
 0x122   :  { %v979_v12 = vpop.f32.mrf.mxu3 }
 0x123   :  { %1164 = vst.msk [vmem:[#allocation2 + $0x98] sm:$0xff] %vm1144_vm4, %v1099_v10  ;;  %v980_v13 = vadd.f32 %v979_v12, %v549_v11  ;;  %v472_v14 = vpop.f32.mrf.mxu0 }
 0x124   :  { %v902_v15 = vpop.f32.mrf.mxu1 }
 0x125   :  { %v1067_v16 = vadd.f32 %v1819_v39, %v980_v13  ;;  %v903_v17 = vadd.f32 %v902_v15, %v472_v14 }
 0x127   :  { %v1131_v18 = vmax.f32 %v1067_v16, 0.0  ;;  %v1036_v19 = vadd.f32 %v1819_v39, %v903_v17 }
 0x129   :  { %1196 = vst.msk [vmem:[#allocation2 + $0x198] sm:$0xff] %vm1144_vm4, %v1131_v18  ;;  %v1100_v20 = vmax.f32 %v1036_v19, 0.0  ;;  %v552_v21 = vpop.f32.mrf.mxu2 }
 0x12a   :  { %v982_v22 = vpop.f32.mrf.mxu3 }
 0x12b   :  { %1165 = vst.msk [vmem:[#allocation2 + $0xa0] sm:$0xff] %vm1144_vm4, %v1100_v20  ;;  %v983_v23 = vadd.f32 %v982_v22, %v552_v21  ;;  %v474_v24 = vpop.f32.mrf.mxu0 }
 0x12c   :  { %v904_v25 = vpop.f32.mrf.mxu1 }
 0x12d   :  { %v1068_v26 = vadd.f32 %v1819_v39, %v983_v23  ;;  %v905_v27 = vadd.f32 %v904_v25, %v474_v24 }
 0x12f   :  { %v1132_v28 = vmax.f32 %v1068_v26, 0.0  ;;  %v1037_v29 = vadd.f32 %v1819_v39, %v905_v27 }
 0x131   :  { %1197 = vst.msk [vmem:[#allocation2 + $0x1a0] sm:$0xff] %vm1144_vm4, %v1132_v28  ;;  %v1101_v30 = vmax.f32 %v1037_v29, 0.0  ;;  %v554_v31 = vpop.f32.mrf.mxu2 }
 0x132   :  { %v984_v32 = vpop.f32.mrf.mxu3 }
 0x133   :  { %1166 = vst.msk [vmem:[#allocation2 + $0xa8] sm:$0xff] %vm1144_vm4, %v1101_v30  ;;  %v985_v33 = vadd.f32 %v984_v32, %v554_v31  ;;  %v477_v34 = vpop.f32.mrf.mxu0 }
 0x134   :  { %v907_v35 = vpop.f32.mrf.mxu1 }
 0x135   :  { %v1069_v36 = vadd.f32 %v1819_v39, %v985_v33  ;;  %v908_v37 = vadd.f32 %v907_v35, %v477_v34 }
 0x137   :  { %v1133_v38 = vmax.f32 %v1069_v36, 0.0  ;;  %v1038_v40 = vadd.f32 %v1819_v39, %v908_v37 }
 0x139   :  { %1198 = vst.msk [vmem:[#allocation2 + $0x1a8] sm:$0xff] %vm1144_vm4, %v1133_v38  ;;  %v1102_v41 = vmax.f32 %v1038_v40, 0.0  ;;  %v557_v42 = vpop.f32.mrf.mxu2 }
 0x13a   :  { %v987_v43 = vpop.f32.mrf.mxu3 }
 0x13b   :  { %1167 = vst.msk [vmem:[#allocation2 + $0xb0] sm:$0xff] %vm1144_vm4, %v1102_v41  ;;  %v988_v44 = vadd.f32 %v987_v43, %v557_v42  ;;  %v479_v45 = vpop.f32.mrf.mxu0 }
 0x13c   :  { %v909_v46 = vpop.f32.mrf.mxu1 }
 0x13d   :  { %v1070_v47 = vadd.f32 %v1819_v39, %v988_v44  ;;  %v910_v48 = vadd.f32 %v909_v46, %v479_v45 }
 0x13f   :  { %v1134_v49 = vmax.f32 %v1070_v47, 0.0  ;;  %v1039_v50 = vadd.f32 %v1819_v39, %v910_v48 }
 0x141   :  { %1199 = vst.msk [vmem:[#allocation2 + $0x1b0] sm:$0xff] %vm1144_vm4, %v1134_v49  ;;  %v1103_v51 = vmax.f32 %v1039_v50, 0.0  ;;  %v559_v52 = vpop.f32.mrf.mxu2 }
 0x142   :  { %v989_v53 = vpop.f32.mrf.mxu3 }
 0x143   :  { %1168 = vst.msk [vmem:[#allocation2 + $0xb8] sm:$0xff] %vm1144_vm4, %v1103_v51  ;;  %v990_v54 = vadd.f32 %v989_v53, %v559_v52  ;;  %v482_v55 = vpop.f32.mrf.mxu0 }
 0x144   :  { %v912_v56 = vpop.f32.mrf.mxu1 }
 0x145   :  { %v1071_v57 = vadd.f32 %v1819_v39, %v990_v54  ;;  %v913_v58 = vadd.f32 %v912_v56, %v482_v55 }
 0x147   :  { %v1135_v59 = vmax.f32 %v1071_v57, 0.0  ;;  %v1040_v60 = vadd.f32 %v1819_v39, %v913_v58 }
 0x149   :  { %1200 = vst.msk [vmem:[#allocation2 + $0x1b8] sm:$0xff] %vm1144_vm4, %v1135_v59  ;;  %v1104_v61 = vmax.f32 %v1040_v60, 0.0  ;;  %v562_v62 = vpop.f32.mrf.mxu2 }
 0x14a   :  { %v992_v63 = vpop.f32.mrf.mxu3 }
 0x14b   :  { %1169 = vst.msk [vmem:[#allocation2 + $0xc0] sm:$0xff] %vm1144_vm4, %v1104_v61  ;;  %v993_v0 = vadd.f32 %v992_v63, %v562_v62  ;;  %v484_v1 = vpop.f32.mrf.mxu0 }
 0x14c   :  { %v914_v2 = vpop.f32.mrf.mxu1 }
 0x14d   :  { %v1072_v3 = vadd.f32 %v1819_v39, %v993_v0  ;;  %v915_v4 = vadd.f32 %v914_v2, %v484_v1 }
 0x14f   :  { %v1136_v5 = vmax.f32 %v1072_v3, 0.0  ;;  %v1041_v6 = vadd.f32 %v1819_v39, %v915_v4 }
 0x151   :  { %1201 = vst.msk [vmem:[#allocation2 + $0x1c0] sm:$0xff] %vm1144_vm4, %v1136_v5  ;;  %v1105_v7 = vmax.f32 %v1041_v6, 0.0  ;;  %v564_v8 = vpop.f32.mrf.mxu2 }
 0x152   :  { %v994_v9 = vpop.f32.mrf.mxu3 }
 0x153   :  { %1170 = vst.msk [vmem:[#allocation2 + $0xc8] sm:$0xff] %vm1144_vm4, %v1105_v7  ;;  %v995_v10 = vadd.f32 %v994_v9, %v564_v8  ;;  %v487_v11 = vpop.f32.mrf.mxu0 }
 0x154   :  { %v917_v12 = vpop.f32.mrf.mxu1 }
 0x155   :  { %v1073_v13 = vadd.f32 %v1819_v39, %v995_v10  ;;  %v918_v14 = vadd.f32 %v917_v12, %v487_v11 }
 0x157   :  { %v1137_v15 = vmax.f32 %v1073_v13, 0.0  ;;  %v1042_v16 = vadd.f32 %v1819_v39, %v918_v14 }
 0x159   :  { %1202 = vst.msk [vmem:[#allocation2 + $0x1c8] sm:$0xff] %vm1144_vm4, %v1137_v15  ;;  %v1106_v17 = vmax.f32 %v1042_v16, 0.0  ;;  %v567_v18 = vpop.f32.mrf.mxu2 }
 0x15a   :  { %v997_v19 = vpop.f32.mrf.mxu3 }
 0x15b   :  { %1171 = vst.msk [vmem:[#allocation2 + $0xd0] sm:$0xff] %vm1144_vm4, %v1106_v17  ;;  %v998_v20 = vadd.f32 %v997_v19, %v567_v18  ;;  %v489_v21 = vpop.f32.mrf.mxu0 }
 0x15c   :  { %v919_v22 = vpop.f32.mrf.mxu1 }
 0x15d   :  { %v1074_v23 = vadd.f32 %v1819_v39, %v998_v20  ;;  %v920_v24 = vadd.f32 %v919_v22, %v489_v21 }
 0x15f   :  { %v1138_v25 = vmax.f32 %v1074_v23, 0.0  ;;  %v1043_v26 = vadd.f32 %v1819_v39, %v920_v24 }
 0x161   :  { %1203 = vst.msk [vmem:[#allocation2 + $0x1d0] sm:$0xff] %vm1144_vm4, %v1138_v25  ;;  %v1107_v27 = vmax.f32 %v1043_v26, 0.0  ;;  %v569_v28 = vpop.f32.mrf.mxu2 }
 0x162   :  { %v999_v29 = vpop.f32.mrf.mxu3 }
 0x163   :  { %1172 = vst.msk [vmem:[#allocation2 + $0xd8] sm:$0xff] %vm1144_vm4, %v1107_v27  ;;  %v1000_v30 = vadd.f32 %v999_v29, %v569_v28  ;;  %v492_v31 = vpop.f32.mrf.mxu0 }
 0x164   :  { %v922_v32 = vpop.f32.mrf.mxu1 }
 0x165   :  { %v1075_v33 = vadd.f32 %v1819_v39, %v1000_v30  ;;  %v923_v34 = vadd.f32 %v922_v32, %v492_v31 }
 0x167   :  { %v1139_v35 = vmax.f32 %v1075_v33, 0.0  ;;  %v1044_v36 = vadd.f32 %v1819_v39, %v923_v34 }
 0x169   :  { %1204 = vst.msk [vmem:[#allocation2 + $0x1d8] sm:$0xff] %vm1144_vm4, %v1139_v35  ;;  %v1108_v37 = vmax.f32 %v1044_v36, 0.0  ;;  %v572_v38 = vpop.f32.mrf.mxu2 }
 0x16a   :  { %v1002_v40 = vpop.f32.mrf.mxu3 }
 0x16b   :  { %1173 = vst.msk [vmem:[#allocation2 + $0xe0] sm:$0xff] %vm1144_vm4, %v1108_v37  ;;  %v1003_v41 = vadd.f32 %v1002_v40, %v572_v38  ;;  %v494_v42 = vpop.f32.mrf.mxu0 }
 0x16c   :  { %v924_v43 = vpop.f32.mrf.mxu1 }
 0x16d   :  { %v1076_v44 = vadd.f32 %v1819_v39, %v1003_v41  ;;  %v925_v45 = vadd.f32 %v924_v43, %v494_v42 }
 0x16f   :  { %v1140_v46 = vmax.f32 %v1076_v44, 0.0  ;;  %v1045_v47 = vadd.f32 %v1819_v39, %v925_v45 }
 0x171   :  { %1205 = vst.msk [vmem:[#allocation2 + $0x1e0] sm:$0xff] %vm1144_vm4, %v1140_v46  ;;  %v1109_v48 = vmax.f32 %v1045_v47, 0.0  ;;  %v574_v49 = vpop.f32.mrf.mxu2 }
 0x172   :  { %v1004_v50 = vpop.f32.mrf.mxu3 }
 0x173   :  { %1174 = vst.msk [vmem:[#allocation2 + $0xe8] sm:$0xff] %vm1144_vm4, %v1109_v48  ;;  %v1005_v51 = vadd.f32 %v1004_v50, %v574_v49  ;;  %v497_v52 = vpop.f32.mrf.mxu0 }
 0x174   :  { %v927_v53 = vpop.f32.mrf.mxu1 }
 0x175   :  { %v1077_v54 = vadd.f32 %v1819_v39, %v1005_v51  ;;  %v928_v55 = vadd.f32 %v927_v53, %v497_v52 }
 0x177   :  { %v1141_v56 = vmax.f32 %v1077_v54, 0.0  ;;  %v1046_v57 = vadd.f32 %v1819_v39, %v928_v55 }
 0x179   :  { %1206 = vst.msk [vmem:[#allocation2 + $0x1e8] sm:$0xff] %vm1144_vm4, %v1141_v56  ;;  %v1110_v58 = vmax.f32 %v1046_v57, 0.0  ;;  %v577_v59 = vpop.f32.mrf.mxu2 }
 0x17a   :  { %v1007_v60 = vpop.f32.mrf.mxu3 }
 0x17b   :  { %1175 = vst.msk [vmem:[#allocation2 + $0xf0] sm:$0xff] %vm1144_vm4, %v1110_v58  ;;  %v1008_v61 = vadd.f32 %v1007_v60, %v577_v59  ;;  %v499_v62 = vpop.f32.mrf.mxu0 }
 0x17c   :  { %v929_v63 = vpop.f32.mrf.mxu1 }
 0x17d   :  { %v1078_v0 = vadd.f32 %v1819_v39, %v1008_v61  ;;  %v930_v1 = vadd.f32 %v929_v63, %v499_v62 }
 0x17f   :  { %v1142_v2 = vmax.f32 %v1078_v0, 0.0  ;;  %v1047_v3 = vadd.f32 %v1819_v39, %v930_v1 }
 0x181   :  { %1207 = vst.msk [vmem:[#allocation2 + $0x1f0] sm:$0xff] %vm1144_vm4, %v1142_v2  ;;  %v1111_v4 = vmax.f32 %v1047_v3, 0.0  ;;  %v579_v5 = vpop.f32.mrf.mxu2 }
 0x182   :  { %v1009_v6 = vpop.f32.mrf.mxu3 }
 0x183   :  { %1176 = vst.msk [vmem:[#allocation2 + $0xf8] sm:$0xff] %vm1144_vm4, %v1111_v4  ;;  %v1010_v7 = vadd.f32 %v1009_v6, %v579_v5 }
 0x185   :  { %v1079_v8 = vadd.f32 %v1819_v39, %v1010_v7 }
 0x187   :  { %v1143_v9 = vmax.f32 %v1079_v8, 0.0 }
 0x189   :  { %1208 = vst.msk [vmem:[#allocation2 + $0x1f8] sm:$0xff] %vm1144_vm4, %v1143_v9 }
 0x18a   :  { %1221 = dma.vmem_to_hbm [thread:$0]  %s1214_s3, 8192, %s1216_s16, [#allocation3], %s1644_s17, %s1644_s17, %s1645_s18  }
 0x18b   :  { %1641 = dma.done.wait [#allocation3], 8192  }
 0x18c   :  { %1642 = vsyncadd [#allocation3], 4294959104 }
 0x18d   :  { %1226 = vsyncpa [#allocation3], 1 }

// kernel: bottleneck_forward.2
= control target key start
LH: loop header
LB: loop body
LE: loop exit
PB: predicated region body
PF: predicated region fallthrough
CT: control target
= control target key end

     0   :  { %s4115_s18 = smov 0   ;;  %s5634_s0 = inlined_call_operand.vmem [shape: bf16[2,16,16,8], index: 0, kind: input, shape index: {}]   ;;  %s5635_s1 = inlined_call_operand.vmem [shape: bf16[8,4], index: 1, kind: input, shape index: {}]   ;;  %s5636_s2 = inlined_call_operand.vmem [shape: f32[1,4], index: 2, kind: input, shape index: {}]   ;;  %s5637_s3 = inlined_call_operand.vmem [shape: bf16[36,4], index: 3, kind: input, shape index: {}]   ;;  %s5638_s4 = inlined_call_operand.vmem [shape: f32[1,4], index: 4, kind: input, shape index: {}]   ;;  %s5639_s5 = inlined_call_operand.vmem [shape: bf16[2,16,16,4], index: 5, kind: output, shape index: {}]  }
   0x1 LB: > { %s3733_s19 = sadd.s32 4294967295, %s4074_s18   ;;  %p3737_p0 = scmp.ge.s32.totalorder %s4074_s18, 1  ;;  %s4074_s18 = sphi %s4115_s18, %s15_s18  }
   0x2   : > { %p187_p1 = scmp.lt.s32.totalorder %s4074_s18, 3 }
   0x4   : > { %p188_p2 = pnand %p3737_p0, %p187_p1 }
   0x5   : > { %p215_p3 = scmp.lt.s32.totalorder (!%p188_p2), %s3733_s19, 1  ;;  %s4077_s26 = smov (!%p188_p2), 4  }
   0x6   : > { %191 = sbr.rel (%p188_p2) target bundleno = 1091 (0x443), region = 40  ;;  %s4078_s27 = smov (!%p188_p2), 8  }
   0x7   : > { %s4079_s30 = smov (!%p188_p2), 12   ;;  %s4080_s6 = smov (!%p188_p2), 16  }
   0x8   : > { %s4081_s9 = smov (!%p188_p2), 20   ;;  %s4082_s10 = smov (!%p188_p2), 24  }
   0x9   : > { %s4083_s11 = smov (!%p188_p2), 32   ;;  %s4084_s12 = smov (!%p188_p2), 28  }
   0xb   : > { %v258_v0 = vld [vmem:[%s5635_s1] sm:$0xf]  ;;  %vm392_vm0 = vcmask 1043456   ;;  %s5647_s19 = smov (!%p215_p3, %s3733_s19), 1  ;;  %vm343_vm1 = vcmask 64512   ;;  %vm517_vm2 = vcmask 27648  }
   0xc   : > { %v394_v1 = vsel %vm392_vm0, %v258_v0, 0  ;;  %s4008_s22 = sshll.u32 %s5647_s19, 7  ;;  %v4076_v6 = vmov 0   ;;  %vm985_vm3 = vcmask 1042432   ;;  %vm986_vm4 = vcmask 1046532  }
   0xd   : > { %403 = vmatpush.bf16.msra.mxu0 %v394_v1  ;;  %4044 = vmatpush.bf16.msra.mxu3 %v394_v1  ;;  %s4134_s25 = scalar_lea.vmem %s5634_s0, %s4008_s22  ;;  %518 = vst.msk [vmem:[#allocation2] sm:$0xf] %vm517_vm2, %v4076_v6  ;;  %vm4160_vm5 = vmor %vm985_vm3, %vm986_vm4  ;;  %vm520_vm6 = vcmask 25600   ;;  %vm1325_vm7 = vcmask 1041408   ;;  %vm1326_vm8 = vcmask 1045508   ;;  %vm775_vm10 = vcmask 27649  }
   0xe   : > { %v4010_v2 = vld [vmem:[%s4134_s25] sm:$0xff]  ;;  %v4019_v3 = vld [vmem:[%s4134_s25 + $0x48] sm:$0xff]  ;;  %v4020_v5 = vld [vmem:[%s4134_s25 + $0x50] sm:$0xff]  ;;  %519 = vst.msk [vmem:[#allocation2 + $0x4] sm:$0xf] %vm517_vm2, %v4076_v6  ;;  %vm643_vm11 = vcmask 1040384  }
   0xf   : > { %v4011_v4 = vld [vmem:[%s4134_s25 + $0x8] sm:$0xff]  ;;  %522 = vst.msk [vmem:[#allocation2 + $0xc] sm:$0xf] %vm517_vm2, %v4076_v6  ;;  %v4012_v15 = vld [vmem:[%s4134_s25 + $0x10] sm:$0xff]  ;;  %v4021_v16 = vld [vmem:[%s4134_s25 + $0x58] sm:$0xff]  ;;  %vm644_vm12 = vcmask 1044484  }
  0x10   : > { %3806 = vmatmul.msk.bf16.vlgmr.msra.gmra.mxu0 %vm343_vm1, %v4010_v2  ;;  %3815 = vmatmul.msk.bf16.vlgmr.msra.gmra.mxu3 %vm343_vm1, %v4019_v3  ;;  %523 = vst.msk [vmem:[#allocation2 + $0x10] sm:$0xf] %vm517_vm2, %v4076_v6  ;;  %v4013_v20 = vld [vmem:[%s4134_s25 + $0x18] sm:$0xff]  ;;  %v4022_v21 = vld [vmem:[%s4134_s25 + $0x60] sm:$0xff]  ;;  %vm4293_vm9 = vmor %vm1325_vm7, %vm1326_vm8  ;;  %vm778_vm14 = vcmask 24576   ;;  %vm1196_vm15 = vcmask 60448  }
  0x11   : > { %525 = vst.msk [vmem:[#allocation2 + $0x18] sm:$0xf] %vm517_vm2, %v4076_v6  ;;  %v4014_v37 = vld [vmem:[%s4134_s25 + $0x20] sm:$0xff]  ;;  %v4023_v46 = vld [vmem:[%s4134_s25 + $0x68] sm:$0xff]  ;;  %vm4325_vm13 = vmor %vm643_vm11, %vm644_vm12  ;;  %vm1536_vm0 = vcmask 93248   ;;  %vm2066_vm3 = vcmask 158848  }
  0x12   : > { %526 = vst.msk [vmem:[#allocation2 + $0x1c] sm:$0xf] %vm517_vm2, %v4076_v6  ;;  %v4319_v51 = vld [vmem:[%s5636_s2] ss:$0 sm:$0xff]  ;;  %vm2403_vm4 = vcmask 191648   ;;  %vm3271_vm8 = vcmask 290048  }
  0x13   : > { %528 = vst.msk [vmem:[#allocation2 + $0x24] sm:$0xf] %vm517_vm2, %v4076_v6 }
  0x14   : > { %v889_v7 = vld [vmem:[#allocation2] sm:$0xe]  ;;  %529 = vst.msk [vmem:[#allocation2 + $0x28] sm:$0xf] %vm517_vm2, %v4076_v6 }
  0x15   : > { %v890_v8 = vld [vmem:[#allocation2 + $0x4] sm:$0xf]  ;;  %v3822_v10 = vrot.slane %v889_v7, 9  ;;  %531 = vst.msk [vmem:[#allocation2 + $0x30] sm:$0xf] %vm517_vm2, %v4076_v6 }
  0x16   : > { %v990_v11 = vrot.slane %v890_v8, 5  ;;  %532 = vst.msk [vmem:[#allocation2 + $0x34] sm:$0xf] %vm517_vm2, %v4076_v6  ;;  %v892_v12 = vld [vmem:[#allocation2 + $0xc] sm:$0xe] }
  0x17   : > { %534 = vst.msk [vmem:[#allocation2 + $0x3c] sm:$0xf] %vm517_vm2, %v4076_v6  ;;  %v4170_v13 = vld [vmem:[#allocation2 + $0x10] sm:$0xf]  ;;  %v3823_v14 = vrot.slane %v892_v12, 9 }
  0x18   : > { %v991_v17 = vsel %vm4160_vm5, %v3822_v10, %v990_v11  ;;  %535 = vst.msk [vmem:[#allocation2 + $0x40] sm:$0xf] %vm517_vm2, %v4076_v6  ;;  %v997_v18 = vrot.slane %v4170_v13, 5  ;;  %v992_v22 = vrot.slane %v990_v11, 4  ;;  %v1230_v26 = vld [vmem:[#allocation2 + $0x4] sm:$0xf] }
  0x19   : > { %1100 = vrot.lane.b32.xlu0 %v991_v17, %s4077_s26  ;;  %537 = vst.msk [vmem:[#allocation2 + $0x48] sm:$0xf] %vm517_vm2, %v4076_v6  ;;  %v1330_v27 = vrot.slane %v1230_v26, 6  ;;  %v1232_v38 = vld [vmem:[#allocation2 + $0xc] sm:$0xc] }
  0x1a   : > { %538 = vst.msk [vmem:[#allocation2 + $0x4c] sm:$0xf] %vm517_vm2, %v4076_v6  ;;  %v998_v19 = vsel %vm4160_vm5, %v3823_v14, %v997_v18  ;;  %v999_v30 = vrot.slane %v997_v18, 4  ;;  %v1233_v39 = vld [vmem:[#allocation2 + $0x10] sm:$0xf]  ;;  %v3839_v40 = vrot.slane %v1232_v38, 10 }
  0x1b   : > { %540 = vst.msk [vmem:[#allocation2 + $0x54] sm:$0xf] %vm517_vm2, %v4076_v6  ;;  %1104 = vrot.lane.b32.xlu1 %v998_v19, %s4077_s26  ;;  %v1332_v33 = vrot.slane %v1330_v27, 4  ;;  %v1337_v41 = vrot.slane %v1233_v39, 6  ;;  %v1229_v42 = vld [vmem:[#allocation2] sm:$0xc] }
  0x1c   : > { %541 = vst.msk [vmem:[#allocation2 + $0x58] sm:$0xf] %vm517_vm2, %v4076_v6  ;;  %v3838_v43 = vrot.slane %v1229_v42, 10 }
  0x1d   : > { %543 = vst.msk [vmem:[#allocation2 + $0x60] sm:$0xf] %vm517_vm2, %v4076_v6  ;;  %v1338_v44 = vsel %vm4293_vm9, %v3839_v40, %v1337_v41  ;;  %v1339_v48 = vrot.slane %v1337_v41, 4 }
  0x1e   : > { %544 = vst.msk [vmem:[#allocation2 + $0x64] sm:$0xf] %vm517_vm2, %v4076_v6  ;;  %v1331_v45 = vsel %vm4293_vm9, %v3838_v43, %v1330_v27 }
  0x1f   : > { %546 = vst.msk [vmem:[#allocation2 + $0x6c] sm:$0xf] %vm517_vm2, %v4076_v6  ;;  %1440 = vrot.lane.b32.xlu2 %v1331_v45, %s4078_s27 }
  0x20   : > { %3807 = vmatmul.msk.bf16.gmra.mxu0 %vm343_vm1, %v4011_v4  ;;  %3816 = vmatmul.msk.bf16.gmra.mxu3 %vm343_vm1, %v4020_v5  ;;  %547 = vst.msk [vmem:[#allocation2 + $0x70] sm:$0xf] %vm517_vm2, %v4076_v6 }
  0x21   : > { %549 = vst.msk [vmem:[#allocation2 + $0x78] sm:$0xf] %vm517_vm2, %v4076_v6 }
  0x22   : > { %550 = vst.msk [vmem:[#allocation2 + $0x7c] sm:$0xf] %vm517_vm2, %v4076_v6 }
  0x23   : > { %552 = vst.msk [vmem:[#allocation2 + $0x84] sm:$0xf] %vm517_vm2, %v4076_v6 }
  0x24   : > { %553 = vst.msk [vmem:[#allocation2 + $0x88] sm:$0xf] %vm517_vm2, %v4076_v6 }
  0x25   : > { %555 = vst.msk [vmem:[#allocation2 + $0x90] sm:$0xf] %vm517_vm2, %v4076_v6 }
  0x26   : > { %556 = vst.msk [vmem:[#allocation2 + $0x94] sm:$0xf] %vm517_vm2, %v4076_v6 }
  0x27   : > { %558 = vst.msk [vmem:[#allocation2 + $0x9c] sm:$0xf] %vm517_vm2, %v4076_v6 }
  0x28   : > { %559 = vst.msk [vmem:[#allocation2 + $0xa0] sm:$0xf] %vm517_vm2, %v4076_v6 }
  0x29   : > { %561 = vst.msk [vmem:[#allocation2 + $0xa8] sm:$0xf] %vm517_vm2, %v4076_v6 }
  0x2a   : > { %562 = vst.msk [vmem:[#allocation2 + $0xac] sm:$0xf] %vm517_vm2, %v4076_v6 }
  0x2b   : > { %564 = vst.msk [vmem:[#allocation2 + $0xb4] sm:$0xf] %vm517_vm2, %v4076_v6 }
  0x2c   : > { %565 = vst.msk [vmem:[#allocation2 + $0xb8] sm:$0xf] %vm517_vm2, %v4076_v6 }
  0x2d   : > { %567 = vst.msk [vmem:[#allocation2 + $0xc0] sm:$0xf] %vm517_vm2, %v4076_v6 }
  0x2e   : > { %568 = vst.msk [vmem:[#allocation2 + $0xc4] sm:$0xf] %vm517_vm2, %v4076_v6 }
  0x2f   : > { %570 = vst.msk [vmem:[#allocation2 + $0xcc] sm:$0xf] %vm517_vm2, %v4076_v6 }
  0x30   : > { %3808 = vmatmul.msk.bf16.gmra.mxu0 %vm343_vm1, %v4012_v15  ;;  %3817 = vmatmul.msk.bf16.gmra.mxu3 %vm343_vm1, %v4021_v16  ;;  %571 = vst.msk [vmem:[#allocation2 + $0xd0] sm:$0xf] %vm517_vm2, %v4076_v6  ;;  %v4015_v15 = vld [vmem:[%s4134_s25 + $0x28] sm:$0xff] }
  0x31   : > { %573 = vst.msk [vmem:[#allocation2 + $0xd8] sm:$0xf] %vm517_vm2, %v4076_v6 }
  0x32   : > { %574 = vst.msk [vmem:[#allocation2 + $0xdc] sm:$0xf] %vm517_vm2, %v4076_v6 }
  0x33   : > { %576 = vst.msk [vmem:[#allocation2 + $0xe4] sm:$0xf] %vm517_vm2, %v4076_v6 }
  0x34   : > { %577 = vst.msk [vmem:[#allocation2 + $0xe8] sm:$0xf] %vm517_vm2, %v4076_v6 }
  0x35   : > { %521 = vst.msk [vmem:[#allocation2 + $0x8] sm:$0x3] %vm520_vm6, %v4076_v6 }
  0x36   : > { %524 = vst.msk [vmem:[#allocation2 + $0x14] sm:$0x3] %vm520_vm6, %v4076_v6 }
  0x37   : > { %527 = vst.msk [vmem:[#allocation2 + $0x20] sm:$0x3] %vm520_vm6, %v4076_v6 }
  0x38   : > { %530 = vst.msk [vmem:[#allocation2 + $0x2c] sm:$0x3] %vm520_vm6, %v4076_v6 }
  0x39   : > { %533 = vst.msk [vmem:[#allocation2 + $0x38] sm:$0x3] %vm520_vm6, %v4076_v6 }
  0x3a   : > { %536 = vst.msk [vmem:[#allocation2 + $0x44] sm:$0x3] %vm520_vm6, %v4076_v6 }
  0x3b   : > { %539 = vst.msk [vmem:[#allocation2 + $0x50] sm:$0x3] %vm520_vm6, %v4076_v6 }
  0x3c   : > { %v891_v23 = vld [vmem:[#allocation2 + $0x8] sm:$0x1]  ;;  %542 = vst.msk [vmem:[#allocation2 + $0x5c] sm:$0x3] %vm520_vm6, %v4076_v6 }
  0x3d   : > { %v993_v24 = vrot.slane %v891_v23, 5  ;;  %545 = vst.msk [vmem:[#allocation2 + $0x68] sm:$0x3] %vm520_vm6, %v4076_v6  ;;  %v894_v28 = vld [vmem:[#allocation2 + $0x14] sm:$0x1] }
  0x3e   : > { %548 = vst.msk [vmem:[#allocation2 + $0x74] sm:$0x3] %vm520_vm6, %v4076_v6  ;;  %v1231_v29 = vld [vmem:[#allocation2 + $0x8] sm:$0x3]  ;;  %v1000_v31 = vrot.slane %v894_v28, 5 }
  0x3f   : > { %v994_v25 = vsel %vm4160_vm5, %v992_v22, %v993_v24  ;;  %551 = vst.msk [vmem:[#allocation2 + $0x80] sm:$0x3] %vm520_vm6, %v4076_v6  ;;  %v1333_v34 = vrot.slane %v1231_v29, 6  ;;  %v1234_v47 = vld [vmem:[#allocation2 + $0x14] sm:$0x3] }
  0x40   : > { %3809 = vmatmul.msk.bf16.gmra.mxu0 %vm343_vm1, %v4013_v20  ;;  %3818 = vmatmul.msk.bf16.gmra.mxu3 %vm343_vm1, %v4022_v21  ;;  %554 = vst.msk [vmem:[#allocation2 + $0x8c] sm:$0x3] %vm520_vm6, %v4076_v6  ;;  %v1001_v35 = vsel %vm4160_vm5, %v999_v30, %v1000_v31  ;;  %v1340_v49 = vrot.slane %v1234_v47, 6 }
  0x41   : > { %1102 = vrot.lane.b32.xlu0 %v994_v25, %s4077_s26  ;;  %557 = vst.msk [vmem:[#allocation2 + $0x98] sm:$0x3] %vm520_vm6, %v4076_v6  ;;  %1106 = vrot.lane.b32.xlu1 %v1001_v35, %s4077_s26  ;;  %v1334_v36 = vsel %vm4293_vm9, %v1332_v33, %v1333_v34 }
  0x42   : > { %560 = vst.msk [vmem:[#allocation2 + $0xa4] sm:$0x3] %vm520_vm6, %v4076_v6  ;;  %v1341_v50 = vsel %vm4293_vm9, %v1339_v48, %v1340_v49 }
  0x43   : > { %563 = vst.msk [vmem:[#allocation2 + $0xb0] sm:$0x3] %vm520_vm6, %v4076_v6  ;;  %1446 = vrot.lane.b32.xlu2 %v1341_v50, %s4078_s27 }
  0x44   : > { %566 = vst.msk [vmem:[#allocation2 + $0xbc] sm:$0x3] %vm520_vm6, %v4076_v6 }
  0x45   : > { %569 = vst.msk [vmem:[#allocation2 + $0xc8] sm:$0x3] %vm520_vm6, %v4076_v6 }
  0x46   : > { %572 = vst.msk [vmem:[#allocation2 + $0xd4] sm:$0x3] %vm520_vm6, %v4076_v6 }
  0x47   : > { %575 = vst.msk [vmem:[#allocation2 + $0xe0] sm:$0x3] %vm520_vm6, %v4076_v6 }
  0x48   : > { %578 = vst.msk [vmem:[#allocation2 + $0xec] sm:$0x3] %vm520_vm6, %v4076_v6  ;;  %vm2597_vm6 = vcmask 224448  }
  0x49   : > { %1442 = vrot.lane.b32.xlu0 %v1334_v36, %s4078_s27  ;;  %1444 = vrot.lane.b32.xlu1 %v1338_v44, %s4078_s27 }
  0x50   : > { %3810 = vmatmul.msk.bf16.gmra.mxu0 %vm343_vm1, %v4014_v37  ;;  %3819 = vmatmul.msk.bf16.gmra.mxu3 %vm343_vm1, %v4023_v46 }
  0x60   : > { %3811 = vmatmul.msk.bf16.gmra.mxu0 %vm343_vm1, %v4015_v15 }
  0x8d   : > { %v405_v52 = vpop.f32.mrf.mxu0 }
  0x8e   : > { %v406_v53 = vadd.f32 %v4319_v51, %v405_v52  ;;  %v4024_v52 = vld [vmem:[%s4134_s25 + $0x70] sm:$0xff] }
  0x8f   : > { %3820 = vmatmul.msk.bf16.gmra.mxu3 %vm343_vm1, %v4024_v52 }
  0x90   : > { %v485_v54 = vmax.f32 %v406_v53, 0.0 }
  0x92   : > { %v579_v55 = vpack.c.bf16 %v485_v54, %v485_v54 }
  0x93   : > { %v450_v56 = vpop.f32.mrf.mxu3 }
  0x94   : > { %v646_v57 = vrot.slane %v579_v55, 7  ;;  %v451_v58 = vadd.f32 %v4319_v51, %v450_v56 }
  0x95   : > { %v407_v59 = vpop.f32.mrf.mxu0 }
  0x96   : > { %776 = vst.msk [vmem:[#allocation2 + $0x18] sm:$0xe] %vm775_vm10, %v646_v57  ;;  %v408_v60 = vadd.f32 %v4319_v51, %v407_v59  ;;  %v503_v61 = vmax.f32 %v451_v58, 0.0  ;;  %v647_v4 = vrot.slane %v646_v57, 4 }
  0x98   : > { %v486_v62 = vmax.f32 %v408_v60, 0.0  ;;  %v597_v63 = vpack.c.bf16 %v503_v61, %v503_v61 }
  0x9a   : > { %v580_v0 = vpack.c.bf16 %v486_v62, %v486_v62  ;;  %v691_v1 = vrot.slane %v597_v63, 7 }
  0x9b   : > { %v452_v3 = vpop.f32.mrf.mxu3 }
  0x9c   : > { %v648_v5 = vrot.slane %v580_v0, 7  ;;  %804 = vst.msk [vmem:[#allocation2 + $0x84] sm:$0xe] %vm775_vm10, %v691_v1  ;;  %v453_v6 = vadd.f32 %v4319_v51, %v452_v3  ;;  %v692_v16 = vrot.slane %v691_v1, 4 }
  0x9d   : > { %v1569_v7 = vld [vmem:[#allocation2 + $0x18] sm:$0xf]  ;;  %v410_v8 = vpop.f32.mrf.mxu0 }
  0x9e   : > { %v649_v10 = vsel %vm4325_vm13, %v647_v4, %v648_v5  ;;  %v650_v11 = vrot.slane %v648_v5, 4  ;;  %1633 = vrot.lane.b32.xlu1 %v1569_v7, %s4079_s30  ;;  %v411_v12 = vadd.f32 %v4319_v51, %v410_v8  ;;  %v504_v13 = vmax.f32 %v453_v6, 0.0  ;;  %v829_v14 = vld [vmem:[#allocation2 + $0x18] sm:$0xf] }
  0x9f   : > { %777 = vst.msk [vmem:[#allocation2 + $0x1c] sm:$0xf] %vm517_vm2, %v649_v10  ;;  %v1235_v28 = vld [vmem:[#allocation2 + $0x18] sm:$0xc] }
  0xa0   : > { %779 = vst.msk [vmem:[#allocation2 + $0x20] sm:$0x1] %vm778_vm14, %v650_v11  ;;  %v487_v17 = vmax.f32 %v411_v12, 0.0  ;;  %v598_v18 = vpack.c.bf16 %v504_v13, %v504_v13  ;;  %v3840_v36 = vrot.slane %v1235_v28, 10  ;;  %v895_v42 = vld [vmem:[#allocation2 + $0x18] sm:$0xe] }
  0xa1   : > { %861 = vst.msk [vmem:[#allocation3 + $0x10] sm:$0xf] %vm517_vm2, %v829_v14  ;;  %v3824_v54 = vrot.slane %v895_v42, 9  ;;  %v1762_v56 = vld [vmem:[#allocation2 + $0x18] sm:$0xe] }
  0xa2   : > { %v581_v19 = vpack.c.bf16 %v487_v17, %v487_v17  ;;  %v693_v20 = vrot.slane %v598_v18, 7  ;;  %v3854_v4 = vrot.slane %v1762_v56, 9 }
  0xa3   : > { %v1587_v21 = vld [vmem:[#allocation2 + $0x84] sm:$0xf]  ;;  %v455_v22 = vpop.f32.mrf.mxu3 }
  0xa4   : > { %v651_v23 = vrot.slane %v581_v19, 7  ;;  %v694_v24 = vsel %vm4325_vm13, %v692_v16, %v693_v20  ;;  %v695_v25 = vrot.slane %v693_v20, 4  ;;  %v456_v26 = vadd.f32 %v4319_v51, %v455_v22  ;;  %v922_v20 = vld [vmem:[#allocation2 + $0x84] sm:$0xe] }
  0xa5   : > { %805 = vst.msk [vmem:[#allocation2 + $0x88] sm:$0xf] %vm517_vm2, %v694_v24  ;;  %v412_v27 = vpop.f32.mrf.mxu0 }
  0xa6   : > { %780 = vst.msk [vmem:[#allocation2 + $0x24] sm:$0xe] %vm775_vm10, %v651_v23  ;;  %1669 = vrot.lane.b32.xlu1 %v1587_v21, %s4079_s30  ;;  %v1570_v29 = vld [vmem:[#allocation2 + $0x1c] sm:$0xf]  ;;  %v413_v30 = vadd.f32 %v4319_v51, %v412_v27  ;;  %v505_v31 = vmax.f32 %v456_v26, 0.0  ;;  %v652_v40 = vrot.slane %v651_v23, 4 }
  0xa7   : > { %806 = vst.msk [vmem:[#allocation2 + $0x8c] sm:$0x1] %vm778_vm14, %v695_v25  ;;  %1635 = vrot.lane.b32.xlu2 %v1570_v29, %s4079_s30  ;;  %v1236_v33 = vld [vmem:[#allocation2 + $0x1c] sm:$0xf]  ;;  %v1237_v34 = vld [vmem:[#allocation2 + $0x20] sm:$0x3] }
  0xa8   : > { %v488_v35 = vmax.f32 %v413_v30, 0.0  ;;  %v1344_v37 = vrot.slane %v1236_v33, 6  ;;  %v896_v38 = vld [vmem:[#allocation2 + $0x1c] sm:$0xf]  ;;  %v599_v39 = vpack.c.bf16 %v505_v31, %v505_v31  ;;  %v1347_v41 = vrot.slane %v1237_v34, 6 }
  0xa9   : > { %v1004_v43 = vrot.slane %v896_v38, 5  ;;  %v1763_v48 = vld [vmem:[#allocation2 + $0x1c] sm:$0xf]  ;;  %v1764_v63 = vld [vmem:[#allocation2 + $0x20] sm:$0x1]  ;;  %v3833_v29 = vrot.slane %v922_v20, 9 }
  0xaa   : > { %v582_v44 = vpack.c.bf16 %v488_v35, %v488_v35  ;;  %v1345_v45 = vsel %vm4293_vm9, %v3840_v36, %v1344_v37  ;;  %v1346_v46 = vrot.slane %v1344_v37, 4  ;;  %v696_v47 = vrot.slane %v599_v39, 7  ;;  %v830_v49 = vld [vmem:[#allocation2 + $0x1c] sm:$0xf]  ;;  %v897_v0 = vld [vmem:[#allocation2 + $0x20] sm:$0x1] }
  0xab   : > { %1448 = vrot.lane.b32.xlu0 %v1345_v45, %s4078_s27  ;;  %v457_v50 = vpop.f32.mrf.mxu3  ;;  %862 = vst.msk [vmem:[#allocation3 + $0x14] sm:$0xf] %vm517_vm2, %v830_v49  ;;  %v1860_v57 = vrot.slane %v1763_v48, 5  ;;  %v1005_v62 = vsel %vm4160_vm5, %v3824_v54, %v1004_v43  ;;  %v1863_v7 = vrot.slane %v1764_v63, 5  ;;  %v1006_v11 = vrot.slane %v1004_v43, 4  ;;  %v4016_v45 = vld [vmem:[%s4134_s25 + $0x30] sm:$0xff] }
  0xac   : > { %v653_v53 = vrot.slane %v582_v44, 7  ;;  %807 = vst.msk [vmem:[#allocation2 + $0x90] sm:$0xe] %vm775_vm10, %v696_v47  ;;  %v1348_v55 = vsel %vm4293_vm9, %v1346_v46, %v1347_v41  ;;  %v458_v58 = vadd.f32 %v4319_v51, %v457_v50  ;;  %v697_v5 = vrot.slane %v696_v47, 4  ;;  %v848_v16 = vld [vmem:[#allocation2 + $0x88] sm:$0xf]  ;;  %3812 = vmatmul.msk.bf16.gmra.mxu0 %vm343_vm1, %v4016_v45 }
  0xad   : > { %v415_v59 = vpop.f32.mrf.mxu0  ;;  %v1862_v6 = vrot.slane %v1860_v57, 4  ;;  %v1861_v10 = vsel %vm4160_vm5, %v3854_v4, %v1860_v57  ;;  %v1007_v12 = vrot.slane %v897_v0, 5  ;;  %880 = vst.msk [vmem:[#allocation3 + $0x5c] sm:$0xf] %vm517_vm2, %v848_v16  ;;  %v923_v22 = vld [vmem:[#allocation2 + $0x88] sm:$0xf] }
  0xae   : > { %v654_v60 = vsel %vm4325_vm13, %v652_v40, %v653_v53  ;;  %v655_v61 = vrot.slane %v653_v53, 4  ;;  %1450 = vrot.lane.b32.xlu1 %v1348_v55, %s4078_s27  ;;  %v506_v1 = vmax.f32 %v458_v58, 0.0  ;;  %v416_v3 = vadd.f32 %v4319_v51, %v415_v59  ;;  %v847_v25 = vld [vmem:[#allocation2 + $0x84] sm:$0xf]  ;;  %v1263_v33 = vld [vmem:[#allocation2 + $0x88] sm:$0xf] }
  0xaf   : > { %781 = vst.msk [vmem:[#allocation2 + $0x28] sm:$0xf] %vm517_vm2, %v654_v60  ;;  %1108 = vrot.lane.b32.xlu2 %v1005_v62, %s4077_s26  ;;  %v1864_v17 = vsel %vm4160_vm5, %v1862_v6, %v1863_v7  ;;  %v1008_v21 = vsel %vm4160_vm5, %v1006_v11, %v1007_v12  ;;  %v1571_v26 = vld [vmem:[#allocation2 + $0x24] sm:$0xf]  ;;  %v1067_v30 = vrot.slane %v923_v22, 5  ;;  %v1407_v39 = vrot.slane %v1263_v33, 6 }
  0xb0   : > { %782 = vst.msk [vmem:[#allocation2 + $0x2c] sm:$0x1] %vm778_vm14, %v655_v61  ;;  %v600_v8 = vpack.c.bf16 %v506_v1, %v506_v1  ;;  %v489_v13 = vmax.f32 %v416_v3, 0.0  ;;  %v831_v28 = vld [vmem:[#allocation2 + $0x24] sm:$0xf]  ;;  %v4025_v49 = vld [vmem:[%s4134_s25 + $0x78] sm:$0xff] }
  0xb1   : > { %v1262_v31 = vld [vmem:[#allocation2 + $0x84] sm:$0xc]  ;;  %879 = vst.msk [vmem:[#allocation3 + $0x58] sm:$0xf] %vm517_vm2, %v847_v25  ;;  %v1068_v38 = vsel %vm4160_vm5, %v3833_v29, %v1067_v30  ;;  %v1264_v40 = vld [vmem:[#allocation2 + $0x8c] sm:$0x3]  ;;  %3821 = vmatmul.msk.bf16.gmra.mxu3 %vm343_vm1, %v4025_v49 }
  0xb2   : > { %v698_v14 = vrot.slane %v600_v8, 7  ;;  %v583_v15 = vpack.c.bf16 %v489_v13, %v489_v13  ;;  %863 = vst.msk [vmem:[#allocation3 + $0x18] sm:$0xf] %vm517_vm2, %v831_v28  ;;  %v3849_v36 = vrot.slane %v1262_v31, 10  ;;  %v1588_v43 = vld [vmem:[#allocation2 + $0x88] sm:$0xf] }
  0xb3   : > { %1970 = vrot.lane.b32.xlu0 %v1861_v10, %s4080_s6  ;;  %v460_v35 = vpop.f32.mrf.mxu3  ;;  %v924_v47 = vld [vmem:[#allocation2 + $0x8c] sm:$0x1]  ;;  %v1410_v50 = vrot.slane %v1264_v40, 6  ;;  %v1409_v53 = vrot.slane %v1407_v39, 4  ;;  %v1069_v54 = vrot.slane %v1067_v30, 4 }
  0xb4   : > { %v699_v18 = vsel %vm4325_vm13, %v697_v5, %v698_v14  ;;  %v700_v19 = vrot.slane %v698_v14, 4  ;;  %v656_v23 = vrot.slane %v583_v15, 7  ;;  %v461_v37 = vadd.f32 %v4319_v51, %v460_v35  ;;  %v849_v61 = vld [vmem:[#allocation2 + $0x90] sm:$0xf]  ;;  %v1238_v0 = vld [vmem:[#allocation2 + $0x24] sm:$0xc] }
  0xb5   : > { %808 = vst.msk [vmem:[#allocation2 + $0x94] sm:$0xf] %vm517_vm2, %v699_v18  ;;  %v417_v24 = vpop.f32.mrf.mxu0  ;;  %v1408_v57 = vsel %vm4293_vm9, %v3849_v36, %v1407_v39  ;;  %v1070_v58 = vrot.slane %v924_v47, 5  ;;  %v1411_v62 = vsel %vm4293_vm9, %v1409_v53, %v1410_v50  ;;  %v1589_v3 = vld [vmem:[#allocation2 + $0x90] sm:$0xf]  ;;  %v3841_v4 = vrot.slane %v1238_v0, 10 }
  0xb6   : > { %1972 = vrot.lane.b32.xlu1 %v1864_v17, %s4080_s6  ;;  %809 = vst.msk [vmem:[#allocation2 + $0x98] sm:$0x1] %vm778_vm14, %v700_v19  ;;  %v418_v27 = vadd.f32 %v4319_v51, %v417_v24  ;;  %v657_v41 = vrot.slane %v656_v23, 4  ;;  %v507_v44 = vmax.f32 %v461_v37, 0.0  ;;  %v832_v46 = vld [vmem:[#allocation2 + $0x28] sm:$0xf] }
  0xb7   : > { %1110 = vrot.lane.b32.xlu2 %v1008_v21, %s4077_s26  ;;  %783 = vst.msk [vmem:[#allocation2 + $0x30] sm:$0xe] %vm775_vm10, %v656_v23  ;;  %v1071_v63 = vsel %vm4160_vm5, %v1069_v54, %v1070_v58  ;;  %v1239_v1 = vld [vmem:[#allocation2 + $0x28] sm:$0xf]  ;;  %v898_v7 = vld [vmem:[#allocation2 + $0x24] sm:$0xe]  ;;  %v1101_v21 = vpop.permute.xlu0 %1100 }
  0xb8   : > { %v490_v34 = vmax.f32 %v418_v27, 0.0  ;;  %v4394_v52 = vpack.c.bf16 %v507_v44, %v507_v44  ;;  %864 = vst.msk [vmem:[#allocation3 + $0x1c] sm:$0xf] %vm517_vm2, %v832_v46  ;;  %v1351_v5 = vrot.slane %v1239_v1, 6  ;;  %v899_v6 = vld [vmem:[#allocation2 + $0x28] sm:$0xf]  ;;  %v1441_v27 = vpop.permute.xlu2 %1440  ;;  %v1105_v44 = vpop.permute.xlu1 %1104 }
  0xb9   : > { %881 = vst.msk [vmem:[#allocation3 + $0x60] sm:$0xf] %vm517_vm2, %v849_v61  ;;  %v1572_v11 = vld [vmem:[#allocation2 + $0x28] sm:$0xf]  ;;  %v1011_v12 = vrot.slane %v899_v6, 5  ;;  %v3825_v14 = vrot.slane %v898_v7, 9 }
  0xba   : > { %v584_v42 = vpack.c.bf16 %v490_v34, %v490_v34  ;;  %v701_v59 = vrot.slane %v4394_v52, 7  ;;  %v1352_v13 = vsel %vm4293_vm9, %v3841_v4, %v1351_v5  ;;  %v900_v15 = vld [vmem:[#allocation2 + $0x2c] sm:$0x1]  ;;  %v1765_v18 = vld [vmem:[#allocation2 + $0x24] sm:$0xe]  ;;  %v1353_v39 = vrot.slane %v1351_v5, 4 }
  0xbb   : > { %1637 = vrot.lane.b32.xlu0 %v1571_v26, %s4079_s30  ;;  %v462_v17 = vpop.f32.mrf.mxu3  ;;  %v1766_v19 = vld [vmem:[#allocation2 + $0x28] sm:$0xf]  ;;  %v825_v22 = vld [vmem:[#allocation2] sm:$0xf]  ;;  %v1013_v24 = vrot.slane %v1011_v12, 4  ;;  %v1014_v25 = vrot.slane %v900_v15, 5  ;;  %v1012_v28 = vsel %vm4160_vm5, %v3825_v14, %v1011_v12 }
  0xbc   : > { %v658_v48 = vrot.slane %v584_v42, 7  ;;  %v850_v60 = vld [vmem:[#allocation2 + $0x94] sm:$0xf]  ;;  %810 = vst.msk [vmem:[#allocation2 + $0x9c] sm:$0xe] %vm775_vm10, %v701_v59  ;;  %v463_v20 = vadd.f32 %v4319_v51, %v462_v17  ;;  %v3855_v29 = vrot.slane %v1765_v18, 9 }
  0xbd   : > { %882 = vst.msk [vmem:[#allocation3 + $0x64] sm:$0xf] %vm517_vm2, %v850_v60  ;;  %v420_v8 = vpop.f32.mrf.mxu0  ;;  %v1867_v30 = vrot.slane %v1766_v19, 5  ;;  %v1240_v33 = vld [vmem:[#allocation2 + $0x2c] sm:$0x3]  ;;  %v702_v34 = vrot.slane %v701_v59, 4  ;;  %v1015_v36 = vsel %vm4160_vm5, %v1013_v24, %v1014_v25 }
  0xbe   : > { %1144 = vrot.lane.b32.xlu1 %v1068_v38, %s4077_s26  ;;  %v659_v55 = vsel %vm4325_vm13, %v657_v41, %v658_v48  ;;  %v660_v56 = vrot.slane %v658_v48, 4  ;;  %v421_v10 = vadd.f32 %v4319_v51, %v420_v8  ;;  %857 = vst.msk [vmem:[#allocation3] sm:$0xf] %vm517_vm2, %v825_v22  ;;  %v508_v26 = vmax.f32 %v463_v20, 0.0  ;;  %v4017_v41 = vld [vmem:[%s4134_s25 + $0x38] sm:$0xff] }
  0xbf   : > { %1671 = vrot.lane.b32.xlu2 %v1588_v43, %s4079_s30  ;;  %784 = vst.msk [vmem:[#allocation2 + $0x34] sm:$0xf] %vm517_vm2, %v659_v55  ;;  %v1868_v38 = vsel %vm4160_vm5, %v3855_v29, %v1867_v30  ;;  %v1354_v40 = vrot.slane %v1240_v33, 6  ;;  %v827_v45 = vld [vmem:[#allocation2 + $0xc] sm:$0xf]  ;;  %v1103_v46 = vpop.permute.xlu0 %1102  ;;  %3813 = vmatmul.msk.bf16.gmra.mxu0 %vm343_vm1, %v4017_v41 }
  0xc0   : > { %785 = vst.msk [vmem:[#allocation2 + $0x38] sm:$0x1] %vm778_vm14, %v660_v56  ;;  %v491_v16 = vmax.f32 %v421_v10, 0.0  ;;  %v602_v35 = vpack.c.bf16 %v508_v26, %v508_v26  ;;  %v1767_v47 = vld [vmem:[#allocation2 + $0x2c] sm:$0x1]  ;;  %v1107_v10 = vpop.permute.xlu1 %1106  ;;  %v1447_v14 = vpop.permute.xlu2 %1446 }
  0xc1   : > { %1197 = vst.msk [vmem:[#allocation3] sm:$0xf] %vm1196_vm15, %v1101_v21  ;;  %v826_v48 = vld [vmem:[#allocation2 + $0x4] sm:$0xf]  ;;  %v1355_v49 = vsel %vm4293_vm9, %v1353_v39, %v1354_v40  ;;  %v4447_v50 = vld [vmem:[#allocation2 + $0x94] sm:$0xf] }
  0xc2   : > { %v4423_v23 = vpack.c.bf16 %v491_v16, %v491_v16  ;;  %1537 = vst.msk [vmem:[#allocation3] sm:$0xf] %vm1536_vm0, %v1441_v27  ;;  %v703_v37 = vrot.slane %v602_v35, 7  ;;  %v1870_v52 = vrot.slane %v1767_v47, 5  ;;  %v833_v55 = vld [vmem:[#allocation2 + $0x30] sm:$0xf] }
  0xc3   : > { %1484 = vrot.lane.b32.xlu0 %v1408_v57, %s4078_s27  ;;  %859 = vst.msk [vmem:[#allocation3 + $0x8] sm:$0xf] %vm517_vm2, %v827_v45  ;;  %v465_v54 = vpop.f32.mrf.mxu3  ;;  %v1573_v56 = vld [vmem:[#allocation2 + $0x30] sm:$0xf]  ;;  %v1590_v61 = vld [vmem:[#allocation2 + $0x94] sm:$0xf] }
  0xc4   : > { %v661_v31 = vrot.slane %v4423_v23, 7  ;;  %v704_v42 = vsel %vm4325_vm13, %v702_v34, %v703_v37  ;;  %v705_v43 = vrot.slane %v703_v37, 4  ;;  %1199 = vst.msk [vmem:[#allocation3 + $0x8] sm:$0xf] %vm1196_vm15, %v1105_v44  ;;  %v1265_v57 = vld [vmem:[#allocation2 + $0x90] sm:$0xc]  ;;  %v466_v59 = vadd.f32 %v4319_v51, %v465_v54 }
  0xc5   : > { %811 = vst.msk [vmem:[#allocation2 + $0xa0] sm:$0xf] %vm517_vm2, %v704_v42  ;;  %v422_v53 = vpop.f32.mrf.mxu0  ;;  %v927_v0 = vld [vmem:[#allocation2 + $0x98] sm:$0x1]  ;;  %v1266_v4 = vld [vmem:[#allocation2 + $0x94] sm:$0xf] }
  0xc6   : > { %1486 = vrot.lane.b32.xlu1 %v1411_v62, %s4078_s27  ;;  %786 = vst.msk [vmem:[#allocation2 + $0x3c] sm:$0xe] %vm775_vm10, %v661_v31  ;;  %v423_v58 = vadd.f32 %v4319_v51, %v422_v53  ;;  %v834_v60 = vld [vmem:[#allocation2 + $0x34] sm:$0xf]  ;;  %v1869_v62 = vrot.slane %v1867_v30, 4  ;;  %v662_v6 = vrot.slane %v661_v31, 4 }
  0xc7   : > { %1146 = vrot.lane.b32.xlu2 %v1071_v63, %s4077_s26  ;;  %812 = vst.msk [vmem:[#allocation2 + $0xa4] sm:$0x1] %vm778_vm14, %v705_v43  ;;  %v1074_v63 = vrot.slane %v4447_v50, 5  ;;  %v828_v5 = vld [vmem:[#allocation2 + $0x10] sm:$0xf]  ;;  %v1077_v12 = vrot.slane %v927_v0, 5  ;;  %v1443_v15 = vpop.permute.xlu0 %1442 }
  0xc8   : > { %858 = vst.msk [vmem:[#allocation3 + $0x4] sm:$0xf] %vm517_vm2, %v826_v48  ;;  %v492_v1 = vmax.f32 %v423_v58, 0.0  ;;  %v1871_v16 = vsel %vm4160_vm5, %v1869_v62, %v1870_v52  ;;  %v1414_v17 = vrot.slane %v1266_v4, 6  ;;  %v925_v20 = vld [vmem:[#allocation2 + $0x90] sm:$0xe]  ;;  %v1445_v30 = vpop.permute.xlu1 %1444 }
  0xc9   : > { %1198 = vst.msk [vmem:[#allocation3 + $0x4] sm:$0xf] %vm1196_vm15, %v1103_v46  ;;  %v1241_v21 = vld [vmem:[#allocation2 + $0x30] sm:$0xc]  ;;  %v4471_v22 = vld [vmem:[#allocation2 + $0x34] sm:$0xf] }
  0xca   : > { %865 = vst.msk [vmem:[#allocation3 + $0x20] sm:$0xf] %vm517_vm2, %v833_v55  ;;  %v586_v7 = vpack.c.bf16 %v492_v1, %v492_v1  ;;  %v3834_v27 = vrot.slane %v925_v20, 9  ;;  %v1358_v29 = vrot.slane %v4471_v22, 6  ;;  %v851_v31 = vld [vmem:[#allocation2 + $0x9c] sm:$0xf] }
  0xcb   : > { %1673 = vrot.lane.b32.xlu0 %v1589_v3, %s4079_s30  ;;  %v509_v3 = vmax.f32 %v466_v59, 0.0  ;;  %866 = vst.msk [vmem:[#allocation3 + $0x24] sm:$0xf] %vm517_vm2, %v834_v60  ;;  %v4018_v35 = vld [vmem:[%s4134_s25 + $0x40] sm:$0xff]  ;;  %v1267_v37 = vld [vmem:[#allocation2 + $0x98] sm:$0x3]  ;;  %v467_v43 = vpop.f32.mrf.mxu3 }
  0xcc   : > { %860 = vst.msk [vmem:[#allocation3 + $0xc] sm:$0xf] %vm517_vm2, %v828_v5  ;;  %v663_v18 = vrot.slane %v586_v7, 7  ;;  %v852_v33 = vld [vmem:[#allocation2 + $0xa0] sm:$0xf]  ;;  %v1075_v34 = vsel %vm4160_vm5, %v3834_v27, %v1074_v63  ;;  %v1416_v39 = vrot.slane %v1414_v17, 4  ;;  %v468_v46 = vadd.f32 %v4319_v51, %v467_v43 }
  0xcd   : > { %v4461_v8 = vpack.c.bf16 %v509_v3, %v509_v3  ;;  %1200 = vst.msk [vmem:[#allocation3 + $0xc] sm:$0xf] %vm1196_vm15, %v1107_v10  ;;  %v1417_v40 = vrot.slane %v1267_v37, 6  ;;  %v1768_v41 = vld [vmem:[#allocation2 + $0x30] sm:$0xe]  ;;  %v425_v47 = vpop.f32.mrf.mxu0  ;;  %v1360_v10 = vrot.slane %v1358_v29, 4 }
  0xce   : > { %1639 = vrot.lane.b32.xlu1 %v1572_v11, %s4079_s30  ;;  %v1076_v11 = vrot.slane %v1074_v63, 4  ;;  %1540 = vst.msk [vmem:[#allocation3 + $0xc] sm:$0xf] %vm1536_vm0, %v1447_v14  ;;  %v664_v23 = vsel %vm4325_vm13, %v662_v6, %v663_v18  ;;  %v665_v24 = vrot.slane %v663_v18, 4  ;;  %v4496_v42 = vld [vmem:[#allocation2 + $0x34] sm:$0xf]  ;;  %v426_v52 = vadd.f32 %v4319_v51, %v425_v47 }
  0xcf   : > { %1452 = vrot.lane.b32.xlu2 %v1352_v13, %s4078_s27  ;;  %v3850_v13 = vrot.slane %v1265_v57, 10  ;;  %v706_v19 = vrot.slane %v4461_v8, 7  ;;  %1538 = vst.msk [vmem:[#allocation3 + $0x4] sm:$0xf] %vm1536_vm0, %v1443_v15  ;;  %3814 = vmatmul.msk.bf16.gmra.mxu0 %vm343_vm1, %v4018_v35  ;;  %v901_v44 = vld [vmem:[#allocation2 + $0x30] sm:$0xe]  ;;  %v1418_v53 = vsel %vm4293_vm9, %v1416_v39, %v1417_v40 }
  0xd0   : > { %v1078_v25 = vsel %vm4160_vm5, %v1076_v11, %v1077_v12  ;;  %787 = vst.msk [vmem:[#allocation2 + $0x40] sm:$0xf] %vm517_vm2, %v664_v23  ;;  %v902_v45 = vld [vmem:[#allocation2 + $0x34] sm:$0xf]  ;;  %v3856_v48 = vrot.slane %v1768_v41, 9  ;;  %v510_v50 = vmax.f32 %v468_v46, 0.0 }
  0xd1   : > { %813 = vst.msk [vmem:[#allocation2 + $0xa8] sm:$0xe] %vm775_vm10, %v706_v19  ;;  %v1415_v26 = vsel %vm4293_vm9, %v3850_v13, %v1414_v17  ;;  %v3826_v54 = vrot.slane %v901_v44, 9  ;;  %v1018_v55 = vrot.slane %v902_v45, 5  ;;  %v493_v58 = vmax.f32 %v426_v52, 0.0 }
  0xd2   : > { %788 = vst.msk [vmem:[#allocation2 + $0x44] sm:$0x1] %vm778_vm14, %v665_v24  ;;  %v604_v57 = vpack.c.bf16 %v510_v50, %v510_v50  ;;  %v1243_v63 = vld [vmem:[#allocation2 + $0x38] sm:$0x3]  ;;  %v1574_v6 = vld [vmem:[#allocation2 + $0x34] sm:$0xf] }
  0xd3   : > { %1112 = vrot.lane.b32.xlu0 %v1012_v28, %s4077_s26  ;;  %v3842_v28 = vrot.slane %v1241_v21, 10  ;;  %1539 = vst.msk [vmem:[#allocation3 + $0x8] sm:$0xf] %vm1536_vm0, %v1445_v30  ;;  %v1019_v62 = vsel %vm4160_vm5, %v3826_v54, %v1018_v55  ;;  %v835_v8 = vld [vmem:[#allocation2 + $0x3c] sm:$0xf]  ;;  %v1361_v11 = vrot.slane %v1243_v63, 6 }
  0xd4   : > { %883 = vst.msk [vmem:[#allocation3 + $0x68] sm:$0xf] %vm517_vm2, %v851_v31  ;;  %v708_v60 = vrot.slane %v604_v57, 7  ;;  %v903_v12 = vld [vmem:[#allocation2 + $0x38] sm:$0x1]  ;;  %vm1729_vm1 = vcmask 126048  }
  0xd5   : > { %884 = vst.msk [vmem:[#allocation3 + $0x6c] sm:$0xf] %vm517_vm2, %v852_v33  ;;  %v427_v4 = vpop.f32.mrf.mxu0  ;;  %v1575_v13 = vld [vmem:[#allocation2 + $0x3c] sm:$0xf]  ;;  %v1362_v18 = vsel %vm4293_vm9, %v1360_v10, %v1361_v11  ;;  %v1021_v20 = vrot.slane %v903_v12, 5 }
  0xd6   : > { %1114 = vrot.lane.b32.xlu1 %v1015_v36, %s4077_s26  ;;  %v1359_v36 = vsel %vm4293_vm9, %v3842_v28, %v1358_v29  ;;  %v710_v1 = vrot.slane %v708_v60, 4  ;;  %v428_v7 = vadd.f32 %v4319_v51, %v427_v4  ;;  %867 = vst.msk [vmem:[#allocation3 + $0x28] sm:$0xf] %vm517_vm2, %v835_v8  ;;  %v1268_v15 = vld [vmem:[#allocation2 + $0x9c] sm:$0xc] }
  0xd7   : > { %1974 = vrot.lane.b32.xlu2 %v1868_v38, %s4080_s6  ;;  %v1591_v38 = vld [vmem:[#allocation2 + $0x9c] sm:$0xf]  ;;  %v836_v5 = vld [vmem:[#allocation2 + $0x40] sm:$0xf]  ;;  %v1770_v22 = vld [vmem:[#allocation2 + $0x38] sm:$0x1] }
  0xd8   : > { %815 = vst.msk [vmem:[#allocation2 + $0xb0] sm:$0x1] %vm778_vm14, %v710_v1  ;;  %v494_v14 = vmax.f32 %v428_v7, 0.0  ;;  %v4523_v21 = vld [vmem:[#allocation2 + $0xa0] sm:$0xf]  ;;  %v3851_v24 = vrot.slane %v1268_v15, 10 }
  0xd9   : > { %868 = vst.msk [vmem:[#allocation3 + $0x2c] sm:$0xf] %vm517_vm2, %v836_v5  ;;  %v1421_v27 = vrot.slane %v4523_v21, 6  ;;  %v928_v39 = vld [vmem:[#allocation2 + $0x9c] sm:$0xe] }
  0xda   : > { %v588_v17 = vpack.c.bf16 %v494_v14, %v494_v14  ;;  %v929_v40 = vld [vmem:[#allocation2 + $0xa0] sm:$0xf]  ;;  %v853_v47 = vld [vmem:[#allocation2 + $0xa8] sm:$0xf]  ;;  %v930_v50 = vld [vmem:[#allocation2 + $0xa4] sm:$0x1] }
  0xdb   : > { %1454 = vrot.lane.b32.xlu0 %v1355_v49, %s4078_s27  ;;  %v1874_v49 = vrot.slane %v4496_v42, 5  ;;  %v1592_v45 = vld [vmem:[#allocation2 + $0xa0] sm:$0xf]  ;;  %v1593_v52 = vld [vmem:[#allocation2 + $0xa8] sm:$0xf]  ;;  %v1423_v7 = vrot.slane %v1421_v27, 4 }
  0xdc   : > { %v668_v23 = vrot.slane %v588_v17, 7  ;;  %885 = vst.msk [vmem:[#allocation3 + $0x70] sm:$0xf] %vm517_vm2, %v853_v47  ;;  %v1245_v10 = vld [vmem:[#allocation2 + $0x40] sm:$0xf] }
  0xdd   : > { %v1875_v59 = vsel %vm4160_vm5, %v3856_v48, %v1874_v49  ;;  %v1876_v33 = vrot.slane %v1874_v49, 4  ;;  %v3835_v48 = vrot.slane %v928_v39, 9  ;;  %v1081_v49 = vrot.slane %v929_v40, 5  ;;  %v1244_v11 = vld [vmem:[#allocation2 + $0x3c] sm:$0xc] }
  0xde   : > { %1675 = vrot.lane.b32.xlu1 %v1590_v61, %s4079_s30  ;;  %v587_v61 = vpack.c.bf16 %v493_v58, %v493_v58  ;;  %v670_v29 = vrot.slane %v668_v23, 4  ;;  %v1084_v58 = vrot.slane %v930_v50, 5  ;;  %v1365_v14 = vrot.slane %v1245_v10, 6  ;;  %v1246_v17 = vld [vmem:[#allocation2 + $0x44] sm:$0x3] }
  0xdf   : > { %1641 = vrot.lane.b32.xlu2 %v1573_v56, %s4079_s30  ;;  %v707_v56 = vrot.slane %v706_v19, 4  ;;  %v1020_v19 = vrot.slane %v1018_v55, 4  ;;  %v1083_v57 = vrot.slane %v1081_v49, 4 }
  0xe0   : > { %v666_v3 = vrot.slane %v587_v61, 7  ;;  %791 = vst.msk [vmem:[#allocation2 + $0x50] sm:$0x1] %vm778_vm14, %v670_v29  ;;  %v1270_v61 = vld [vmem:[#allocation2 + $0xa4] sm:$0x3]  ;;  %v1367_v21 = vrot.slane %v1365_v14, 4 }
  0xe1   : > { %v709_v0 = vsel %vm4325_vm13, %v707_v56, %v708_v60  ;;  %v1022_v31 = vsel %vm4160_vm5, %v1020_v19, %v1021_v20  ;;  %v1082_v56 = vsel %vm4160_vm5, %v3835_v48, %v1081_v49  ;;  %v905_v60 = vld [vmem:[#allocation2 + $0x40] sm:$0xf]  ;;  %v1424_v8 = vrot.slane %v1270_v61, 6  ;;  %v931_v49 = vld [vmem:[#allocation2 + $0xa8] sm:$0xe] }
  0xe2   : > { %814 = vst.msk [vmem:[#allocation2 + $0xac] sm:$0xf] %vm517_vm2, %v709_v0 }
  0xe3   : > { %1976 = vrot.lane.b32.xlu0 %v1871_v16, %s4080_s6  ;;  %789 = vst.msk [vmem:[#allocation2 + $0x48] sm:$0xe] %vm775_vm10, %v666_v3  ;;  %v667_v16 = vrot.slane %v666_v3, 4  ;;  %v1025_v3 = vrot.slane %v905_v60, 5  ;;  %v1425_v15 = vsel %vm4293_vm9, %v1423_v7, %v1424_v8  ;;  %v933_v8 = vld [vmem:[#allocation2 + $0xb0] sm:$0x1] }
  0xe5   : > { %v669_v28 = vsel %vm4325_vm13, %v667_v16, %v668_v23  ;;  %v3843_v16 = vrot.slane %v1244_v11, 10 }
  0xe6   : > { %1150 = vrot.lane.b32.xlu1 %v1078_v25, %s4077_s26  ;;  %v470_v25 = vpop.f32.mrf.mxu3  ;;  %790 = vst.msk [vmem:[#allocation2 + $0x4c] sm:$0xf] %vm517_vm2, %v669_v28  ;;  %v1576_v28 = vld [vmem:[#allocation2 + $0x40] sm:$0xf] }
  0xe7   : > { %1488 = vrot.lane.b32.xlu2 %v1415_v26, %s4078_s27  ;;  %v471_v30 = vadd.f32 %v4319_v51, %v470_v25  ;;  %v1366_v23 = vsel %vm4293_vm9, %v3843_v16, %v1365_v14  ;;  %v1771_v25 = vld [vmem:[#allocation2 + $0x3c] sm:$0xe] }
  0xe9   : > { %v511_v35 = vmax.f32 %v471_v30, 0.0  ;;  %v854_v43 = vld [vmem:[#allocation2 + $0xac] sm:$0xf]  ;;  %v3857_v30 = vrot.slane %v1771_v25, 9 }
  0xea   : > { %886 = vst.msk [vmem:[#allocation3 + $0x74] sm:$0xf] %vm517_vm2, %v854_v43  ;;  %v837_v12 = vld [vmem:[#allocation2 + $0x48] sm:$0xf]  ;;  %v932_v50 = vld [vmem:[#allocation2 + $0xac] sm:$0xf] }
  0xeb   : > { %1148 = vrot.lane.b32.xlu0 %v1075_v34, %s4077_s26  ;;  %v1877_v34 = vrot.slane %v1770_v22, 5  ;;  %v605_v37 = vpack.c.bf16 %v511_v35, %v511_v35  ;;  %869 = vst.msk [vmem:[#allocation3 + $0x30] sm:$0xf] %vm517_vm2, %v837_v12  ;;  %v1368_v22 = vrot.slane %v1246_v17, 6  ;;  %v1272_v60 = vld [vmem:[#allocation2 + $0xac] sm:$0xf] }
  0xec   : > { %v4611_v17 = vld [vmem:[%s5636_s2] ss:$0 sm:$0xff] }
  0xed   : > { %v711_v41 = vrot.slane %v605_v37, 7  ;;  %v838_v19 = vld [vmem:[#allocation2 + $0x4c] sm:$0xf] }
  0xee   : > { %1456 = vrot.lane.b32.xlu1 %v1359_v36, %s4078_s27  ;;  %v1422_v36 = vsel %vm4293_vm9, %v3851_v24, %v1421_v27  ;;  %v472_v42 = vpop.f32.mrf.mxu3  ;;  %870 = vst.msk [vmem:[#allocation3 + $0x34] sm:$0xf] %vm517_vm2, %v838_v19  ;;  %v1772_v24 = vld [vmem:[#allocation2 + $0x40] sm:$0xf]  ;;  %v1369_v27 = vsel %vm4293_vm9, %v1367_v21, %v1368_v22  ;;  %v1091_v22 = vrot.slane %v933_v8, 5 }
  0xef   : > { %1677 = vrot.lane.b32.xlu2 %v1591_v38, %s4079_s30  ;;  %v1878_v38 = vsel %vm4160_vm5, %v1876_v33, %v1877_v34  ;;  %816 = vst.msk [vmem:[#allocation2 + $0xb4] sm:$0xe] %vm775_vm10, %v711_v41  ;;  %v473_v46 = vadd.f32 %v4319_v51, %v472_v42  ;;  %v712_v54 = vrot.slane %v711_v41, 4  ;;  %v1881_v29 = vrot.slane %v1772_v24, 5  ;;  %v430_v33 = vpop.f32.mrf.mxu0  ;;  %v906_v34 = vld [vmem:[#allocation2 + $0x44] sm:$0x1] }
  0xf0   : > { %v431_v35 = vadd.f32 %v4319_v51, %v430_v33  ;;  %v1027_v42 = vrot.slane %v1025_v3, 4  ;;  %v1028_v43 = vrot.slane %v906_v34, 5 }
  0xf1   : > { %v1882_v41 = vsel %vm4160_vm5, %v3857_v30, %v1881_v29  ;;  %v1247_v30 = vld [vmem:[#allocation2 + $0x48] sm:$0xc] }
  0xf2   : > { %v495_v40 = vmax.f32 %v431_v35, 0.0  ;;  %v1029_v48 = vsel %vm4160_vm5, %v1027_v42, %v1028_v43  ;;  %v1578_v42 = vld [vmem:[#allocation2 + $0x4c] sm:$0xf] }
  0xf3   : > { %1490 = vrot.lane.b32.xlu0 %v1418_v53, %s4078_s27  ;;  %v512_v53 = vmax.f32 %v473_v46, 0.0 }
  0xf5   : > { %v606_v55 = vpack.c.bf16 %v512_v53, %v512_v53 }
  0xf6   : > { %1978 = vrot.lane.b32.xlu1 %v1875_v59, %s4080_s6  ;;  %v904_v59 = vld [vmem:[#allocation2 + $0x3c] sm:$0xe]  ;;  %v1595_v35 = vld [vmem:[#allocation2 + $0xb4] sm:$0xf] }
  0xf7   : > { %1116 = vrot.lane.b32.xlu2 %v1019_v62, %s4077_s26  ;;  %v713_v62 = vrot.slane %v606_v55, 7  ;;  %v3827_v1 = vrot.slane %v904_v59, 9  ;;  %v432_v59 = vpop.f32.mrf.mxu0 }
  0xf8   : > { %v433_v61 = vadd.f32 %v4319_v51, %v432_v59 }
  0xf9   : > { %v714_v4 = vsel %vm4325_vm13, %v712_v54, %v713_v62  ;;  %v715_v5 = vrot.slane %v713_v62, 4  ;;  %v1577_v54 = vld [vmem:[#allocation2 + $0x48] sm:$0xf] }
  0xfa   : > { %817 = vst.msk [vmem:[#allocation2 + $0xb8] sm:$0xf] %vm517_vm2, %v714_v4  ;;  %v1271_v62 = vld [vmem:[#allocation2 + $0xa8] sm:$0xc]  ;;  %v1428_v4 = vrot.slane %v1272_v60, 6 }
  0xfb   : > { %1643 = vrot.lane.b32.xlu0 %v1574_v6, %s4079_s30  ;;  %v1085_v6 = vsel %vm4160_vm5, %v1083_v57, %v1084_v58  ;;  %818 = vst.msk [vmem:[#allocation2 + $0xbc] sm:$0x1] %vm778_vm14, %v715_v5  ;;  %v3836_v57 = vrot.slane %v931_v49, 9  ;;  %v1088_v58 = vrot.slane %v932_v50, 5  ;;  %v3852_v5 = vrot.slane %v1271_v62, 10 }
  0xfc   : > { %v1430_v14 = vrot.slane %v1428_v4, 4  ;;  %v1774_v49 = vld [vmem:[#allocation2 + $0x48] sm:$0xe]  ;;  %v1775_v50 = vld [vmem:[#allocation2 + $0x4c] sm:$0xf] }
  0xfd   : > { %v1090_v16 = vrot.slane %v1088_v58, 4  ;;  %v1429_v21 = vsel %vm4293_vm9, %v3852_v5, %v1428_v4  ;;  %v1888_v62 = vrot.slane %v1775_v50, 5 }
  0xfe   : > { %1645 = vrot.lane.b32.xlu1 %v1575_v13, %s4079_s30  ;;  %v1026_v13 = vsel %vm4160_vm5, %v3827_v1, %v1025_v3  ;;  %v1089_v1 = vsel %vm4160_vm5, %v3836_v57, %v1088_v58  ;;  %v1594_v3 = vld [vmem:[#allocation2 + $0xac] sm:$0xf] }
  0xff   : > { %1458 = vrot.lane.b32.xlu2 %v1362_v18, %s4078_s27 }
 0x101   : > { %v1636_v26 = vpop.permute.xlu2 %1635  ;;  %v856_v55 = vld [vmem:[#allocation2 + $0xb8] sm:$0xf] }
 0x102   : > { %1731 = vst.msk [vmem:[#allocation3 + $0x4] sm:$0xf] %vm1729_vm1, %v1636_v26 }
 0x103   : > { %1118 = vrot.lane.b32.xlu0 %v1022_v31, %s4077_s26  ;;  %v1773_v31 = vld [vmem:[#allocation2 + $0x44] sm:$0x1]  ;;  %888 = vst.msk [vmem:[#allocation3 + $0x7c] sm:$0xf] %vm517_vm2, %v856_v55 }
 0x104   : > { %v1884_v39 = vrot.slane %v1773_v31, 5  ;;  %v1248_v31 = vld [vmem:[#allocation2 + $0x4c] sm:$0xf] }
 0x106   : > { %1492 = vrot.lane.b32.xlu1 %v1422_v36, %s4078_s27 }
 0x107   : > { %1980 = vrot.lane.b32.xlu2 %v1878_v38, %s4080_s6  ;;  %v1883_v38 = vrot.slane %v1881_v29, 4  ;;  %v1092_v29 = vsel %vm4160_vm5, %v1090_v16, %v1091_v22 }
 0x109   : > { %v1109_v44 = vpop.permute.xlu2 %1108  ;;  %v1885_v46 = vsel %vm4160_vm5, %v1883_v38, %v1884_v39  ;;  %v3844_v38 = vrot.slane %v1247_v30, 10  ;;  %v1372_v39 = vrot.slane %v1248_v31, 6 }
 0x10a   : > { %1201 = vst.msk [vmem:[#allocation3 + $0x10] sm:$0xf] %vm1196_vm15, %v1109_v44  ;;  %v589_v44 = vpack.c.bf16 %v495_v40, %v495_v40  ;;  %v908_v40 = vld [vmem:[#allocation2 + $0x4c] sm:$0xf] }
 0x10b   : > { %1679 = vrot.lane.b32.xlu0 %v1592_v45, %s4079_s30 }
 0x10c   : > { %v671_v47 = vrot.slane %v589_v44, 7  ;;  %v1032_v44 = vrot.slane %v908_v40, 5 }
 0x10e   : > { %1681 = vrot.lane.b32.xlu1 %v1593_v52, %s4079_s30  ;;  %792 = vst.msk [vmem:[#allocation2 + $0x54] sm:$0xe] %vm775_vm10, %v671_v47  ;;  %v855_v52 = vld [vmem:[#allocation2 + $0xb4] sm:$0xf]  ;;  %v672_v7 = vrot.slane %v671_v47, 4  ;;  %v1034_v59 = vrot.slane %v1032_v44, 4 }
 0x10f   : > { %1152 = vrot.lane.b32.xlu2 %v1082_v56, %s4077_s26  ;;  %887 = vst.msk [vmem:[#allocation3 + $0x78] sm:$0xf] %vm517_vm2, %v855_v52  ;;  %v909_v47 = vld [vmem:[#allocation2 + $0x50] sm:$0x1] }
 0x110   : > { %v1634_v63 = vpop.permute.xlu1 %1633  ;;  %v1035_v60 = vrot.slane %v909_v47, 5 }
 0x111   : > { %1730 = vst.msk [vmem:[#allocation3] sm:$0xf] %vm1729_vm1, %v1634_v63  ;;  %v1111_v0 = vpop.permute.xlu2 %1110  ;;  %v496_v63 = vmax.f32 %v433_v61, 0.0  ;;  %v3858_v61 = vrot.slane %v1774_v49, 9 }
 0x112   : > { %1202 = vst.msk [vmem:[#allocation3 + $0x14] sm:$0xf] %vm1196_vm15, %v1111_v0  ;;  %v475_v12 = vpop.f32.mrf.mxu3 }
 0x113   : > { %1154 = vrot.lane.b32.xlu0 %v1085_v6, %s4077_s26  ;;  %v1273_v6 = vld [vmem:[#allocation2 + $0xb0] sm:$0x3]  ;;  %v590_v51 = vpack.c.bf16 %v496_v63, %v496_v63  ;;  %v476_v19 = vadd.f32 %v4611_v17, %v475_v12 }
 0x115   : > { %v673_v11 = vrot.slane %v590_v51, 7  ;;  %v513_v25 = vmax.f32 %v476_v19, 0.0  ;;  %v1374_v51 = vrot.slane %v1372_v39, 4 }
 0x116   : > { %1120 = vrot.lane.b32.xlu1 %v1026_v13, %s4077_s26 }
 0x117   : > { %1494 = vrot.lane.b32.xlu2 %v1425_v15, %s4078_s27  ;;  %v1431_v15 = vrot.slane %v1273_v6, 6  ;;  %v675_v24 = vrot.slane %v673_v11, 4 }
 0x118   : > { %v4568_v18 = vpop.permute.xlu1 %1669 }
 0x119   : > { %v4570_v20 = vpop.permute.xlu2 %1671  ;;  %794 = vst.msk [vmem:[#allocation2 + $0x5c] sm:$0x1] %vm778_vm14, %v675_v24  ;;  %v1776_v24 = vld [vmem:[#allocation2 + $0x50] sm:$0x1] }
 0x11a   : > { %v477_v52 = vpop.f32.mrf.mxu3 }
 0x11b   : > { %1460 = vrot.lane.b32.xlu0 %v1366_v23, %s4078_s27  ;;  %v674_v23 = vsel %vm4325_vm13, %v672_v7, %v673_v11  ;;  %v478_v55 = vadd.f32 %v4611_v17, %v477_v52  ;;  %v1036_v7 = vsel %vm4160_vm5, %v1034_v59, %v1035_v60 }
 0x11c   : > { %793 = vst.msk [vmem:[#allocation2 + $0x58] sm:$0xf] %vm517_vm2, %v674_v23 }
 0x11d   : > { %v1449_v26 = vpop.permute.xlu0 %1448 }
 0x11e   : > { %1541 = vst.msk [vmem:[#allocation3 + $0x10] sm:$0xf] %vm1536_vm0, %v1449_v26  ;;  %1462 = vrot.lane.b32.xlu1 %v1369_v27, %s4078_s27  ;;  %v1432_v27 = vsel %vm4293_vm9, %v1430_v14, %v1431_v15 }
 0x11f   : > { %1647 = vrot.lane.b32.xlu2 %v1576_v28, %s4079_s30  ;;  %v607_v28 = vpack.c.bf16 %v513_v25, %v513_v25  ;;  %v935_v25 = vld [vmem:[#allocation2 + $0xb8] sm:$0xf] }
 0x120   : > { %v1451_v36 = vpop.permute.xlu1 %1450 }
 0x121   : > { %1542 = vst.msk [vmem:[#allocation3 + $0x14] sm:$0xf] %vm1536_vm0, %v1451_v36  ;;  %v1147_v37 = vpop.permute.xlu2 %1146  ;;  %v716_v33 = vrot.slane %v607_v28, 7 }
 0x122   : > { %1220 = vst.msk [vmem:[#allocation3 + $0x5c] sm:$0xf] %vm1196_vm15, %v1147_v37  ;;  %v907_v37 = vld [vmem:[#allocation2 + $0x48] sm:$0xe] }
 0x123   : > { %1982 = vrot.lane.b32.xlu0 %v1882_v41, %s4080_s6  ;;  %819 = vst.msk [vmem:[#allocation2 + $0xc0] sm:$0xe] %vm775_vm10, %v716_v33  ;;  %v3828_v43 = vrot.slane %v907_v37, 9  ;;  %v1095_v37 = vrot.slane %v935_v25, 5  ;;  %v840_v50 = vld [vmem:[#allocation2 + $0x58] sm:$0xf] }
 0x124   : > { %v4683_v59 = vld [vmem:[#allocation2 + $0x58] sm:$0xf]  ;;  %872 = vst.msk [vmem:[#allocation3 + $0x3c] sm:$0xf] %vm517_vm2, %v840_v50 }
 0x125   : > { %v1971_v45 = vpop.permute.xlu0 %1970  ;;  %v1033_v58 = vsel %vm4160_vm5, %v3828_v43, %v1032_v44  ;;  %v1274_v43 = vld [vmem:[#allocation2 + $0xb4] sm:$0xc]  ;;  %v1275_v44 = vld [vmem:[#allocation2 + $0xb8] sm:$0xf] }
 0x126   : > { %2067 = vst.msk [vmem:[#allocation3] sm:$0xf] %vm2066_vm3, %v1971_v45  ;;  %1984 = vrot.lane.b32.xlu1 %v1885_v46, %s4080_s6  ;;  %v1373_v46 = vsel %vm4293_vm9, %v3844_v38, %v1372_v39  ;;  %v936_v38 = vld [vmem:[#allocation2 + $0xbc] sm:$0x1]  ;;  %v4708_v25 = vld [vmem:[#allocation2 + $0x58] sm:$0xf] }
 0x127   : > { %1122 = vrot.lane.b32.xlu2 %v1029_v48, %s4077_s26  ;;  %v1098_v49 = vrot.slane %v936_v38, 5 }
 0x128   : > { %v1973_v53 = vpop.permute.xlu1 %1972 }
 0x129   : > { %2068 = vst.msk [vmem:[#allocation3 + $0x4] sm:$0xf] %vm2066_vm3, %v1973_v53  ;;  %v4597_v56 = vpop.permute.xlu2 %1452  ;;  %v435_v45 = vpop.f32.mrf.mxu0 }
 0x12a   : > { %v436_v48 = vadd.f32 %v4611_v17, %v435_v45 }
 0x12b   : > { %1649 = vrot.lane.b32.xlu0 %v1577_v54, %s4079_s30 }
 0x12c   : > { %v497_v54 = vmax.f32 %v436_v48, 0.0  ;;  %v1097_v48 = vrot.slane %v1095_v37, 4 }
 0x12d   : > { %v1638_v0 = vpop.permute.xlu0 %1637 }
 0x12e   : > { %1732 = vst.msk [vmem:[#allocation3 + $0x8] sm:$0xf] %vm1729_vm1, %v1638_v0  ;;  %1156 = vrot.lane.b32.xlu1 %v1089_v1, %s4077_s26  ;;  %v591_v63 = vpack.c.bf16 %v497_v54, %v497_v54  ;;  %v514_v0 = vmax.f32 %v478_v55, 0.0  ;;  %v1249_v1 = vld [vmem:[#allocation2 + $0x50] sm:$0x3]  ;;  %v1435_v54 = vrot.slane %v1275_v44, 6 }
 0x12f   : > { %1683 = vrot.lane.b32.xlu2 %v1594_v3, %s4079_s30  ;;  %v717_v3 = vrot.slane %v716_v33, 4  ;;  %v1375_v11 = vrot.slane %v1249_v1, 6  ;;  %v934_v55 = vld [vmem:[#allocation2 + $0xb4] sm:$0xe] }
 0x130   : > { %v1145_v10 = vpop.permute.xlu1 %1144  ;;  %v676_v4 = vrot.slane %v591_v63, 7  ;;  %v608_v5 = vpack.c.bf16 %v514_v0, %v514_v0  ;;  %v3837_v0 = vrot.slane %v934_v55, 9 }
 0x131   : > { %1219 = vst.msk [vmem:[#allocation3 + $0x58] sm:$0xf] %vm1196_vm15, %v1145_v10  ;;  %v1975_v13 = vpop.permute.xlu2 %1974  ;;  %v437_v8 = vpop.f32.mrf.mxu0  ;;  %v1889_v10 = vsel %vm4160_vm5, %v3858_v61, %v1888_v62  ;;  %v1099_v61 = vsel %vm4160_vm5, %v1097_v48, %v1098_v49 }
 0x132   : > { %2069 = vst.msk [vmem:[#allocation3 + $0x8] sm:$0xf] %vm2066_vm3, %v1975_v13  ;;  %v718_v12 = vrot.slane %v608_v5, 7  ;;  %v438_v13 = vadd.f32 %v4611_v17, %v437_v8 }
 0x133   : > { %1496 = vrot.lane.b32.xlu0 %v1429_v21, %s4078_s27  ;;  %795 = vst.msk [vmem:[#allocation2 + $0x60] sm:$0xe] %vm775_vm10, %v676_v4 }
 0x134   : > { %v480_v14 = vpop.f32.mrf.mxu3  ;;  %v719_v16 = vsel %vm4325_vm13, %v717_v3, %v718_v12  ;;  %v720_v19 = vrot.slane %v718_v12, 4  ;;  %v498_v21 = vmax.f32 %v438_v13, 0.0 }
 0x135   : > { %v1485_v26 = vpop.permute.xlu0 %1484  ;;  %v481_v22 = vadd.f32 %v4611_v17, %v480_v14  ;;  %820 = vst.msk [vmem:[#allocation2 + $0xc4] sm:$0xf] %vm517_vm2, %v719_v16 }
 0x136   : > { %1559 = vst.msk [vmem:[#allocation3 + $0x58] sm:$0xf] %vm1536_vm0, %v1485_v26  ;;  %1498 = vrot.lane.b32.xlu1 %v1432_v27, %s4078_s27  ;;  %v677_v26 = vrot.slane %v676_v4, 4  ;;  %v592_v27 = vpack.c.bf16 %v498_v21, %v498_v21  ;;  %v1379_v4 = vrot.slane %v4683_v59, 6 }
 0x137   : > { %1158 = vrot.lane.b32.xlu2 %v1092_v29, %s4077_s26  ;;  %v515_v28 = vmax.f32 %v481_v22, 0.0  ;;  %v1579_v29 = vld [vmem:[#allocation2 + $0x54] sm:$0xf]  ;;  %821 = vst.msk [vmem:[#allocation2 + $0xc8] sm:$0x1] %vm778_vm14, %v720_v19  ;;  %v1437_v22 = vrot.slane %v1435_v54, 4 }
 0x138   : > { %v1487_v34 = vpop.permute.xlu1 %1486  ;;  %v678_v30 = vrot.slane %v592_v27, 7 }
 0x139   : > { %1560 = vst.msk [vmem:[#allocation3 + $0x5c] sm:$0xf] %vm1536_vm0, %v1487_v34  ;;  %v1642_v36 = vpop.permute.xlu2 %1641  ;;  %v609_v31 = vpack.c.bf16 %v515_v28, %v515_v28  ;;  %v1596_v34 = vld [vmem:[#allocation2 + $0xb8] sm:$0xf] }
 0x13a   : > { %1734 = vst.msk [vmem:[#allocation3 + $0x10] sm:$0xf] %vm1729_vm1, %v1642_v36  ;;  %v1891_v36 = vrot.slane %v1776_v24, 5  ;;  %v679_v39 = vsel %vm4325_vm13, %v677_v26, %v678_v30  ;;  %v680_v40 = vrot.slane %v678_v30, 4  ;;  %v1777_v24 = vld [vmem:[#allocation2 + $0x54] sm:$0xe] }
 0x13b   : > { %1685 = vrot.lane.b32.xlu0 %v1595_v35, %s4079_s30  ;;  %v1890_v35 = vrot.slane %v1888_v62, 4  ;;  %796 = vst.msk [vmem:[#allocation2 + $0x64] sm:$0xf] %vm517_vm2, %v679_v39  ;;  %v911_v30 = vld [vmem:[#allocation2 + $0x58] sm:$0xf]  ;;  %v3859_v38 = vrot.slane %v1777_v24, 9 }
 0x13c   : > { %797 = vst.msk [vmem:[#allocation2 + $0x68] sm:$0x1] %vm778_vm14, %v680_v40  ;;  %v440_v62 = vpop.f32.mrf.mxu0  ;;  %v482_v5 = vpop.f32.mrf.mxu3  ;;  %v1039_v40 = vrot.slane %v911_v30, 5  ;;  %v913_v24 = vld [vmem:[#allocation2 + $0x60] sm:$0xe] }
 0x13d   : > { %v4633_v41 = vpop.permute.xlu0 %1673  ;;  %v1892_v52 = vsel %vm4160_vm5, %v1890_v35, %v1891_v36  ;;  %v441_v1 = vadd.f32 %v4611_v17, %v440_v62  ;;  %v1598_v30 = vld [vmem:[#allocation2 + $0xc4] sm:$0xf] }
 0x13e   : > { %1651 = vrot.lane.b32.xlu1 %v1578_v42, %s4079_s30  ;;  %v721_v42 = vrot.slane %v609_v31, 7  ;;  %v1041_v59 = vrot.slane %v1039_v40, 4 }
 0x13f   : > { %1464 = vrot.lane.b32.xlu2 %v1373_v46, %s4078_s27  ;;  %v839_v46 = vld [vmem:[#allocation2 + $0x54] sm:$0xf] }
 0x140   : > { %v1640_v53 = vpop.permute.xlu1 %1639  ;;  %822 = vst.msk [vmem:[#allocation2 + $0xcc] sm:$0xe] %vm775_vm10, %v721_v42  ;;  %v722_v16 = vrot.slane %v721_v42, 4 }
 0x141   : > { %1733 = vst.msk [vmem:[#allocation3 + $0xc] sm:$0xf] %vm1729_vm1, %v1640_v53  ;;  %v4642_v57 = vpop.permute.xlu2 %1488  ;;  %v3853_v53 = vrot.slane %v1274_v43, 10 }
 0x142   : > { %871 = vst.msk [vmem:[#allocation3 + $0x38] sm:$0xf] %vm517_vm2, %v839_v46 }
 0x143   : > { %1124 = vrot.lane.b32.xlu0 %v1033_v58, %s4077_s26  ;;  %v1250_v58 = vld [vmem:[#allocation2 + $0x54] sm:$0xc]  ;;  %v1436_v63 = vsel %vm4293_vm9, %v3853_v53, %v1435_v54  ;;  %v842_v54 = vld [vmem:[#allocation2 + $0x64] sm:$0xf] }
 0x144   : > { %v3845_v3 = vrot.slane %v1250_v58, 10  ;;  %874 = vst.msk [vmem:[#allocation3 + $0x44] sm:$0xf] %vm517_vm2, %v842_v54  ;;  %v1781_v54 = vld [vmem:[#allocation2 + $0x64] sm:$0xf] }
 0x145   : > { %v1113_v6 = vpop.permute.xlu0 %1112 }
 0x146   : > { %1203 = vst.msk [vmem:[#allocation3 + $0x18] sm:$0xf] %vm1196_vm15, %v1113_v6  ;;  %1126 = vrot.lane.b32.xlu1 %v1036_v7, %s4077_s26  ;;  %v499_v7 = vmax.f32 %v441_v1, 0.0  ;;  %v1380_v14 = vsel %vm4293_vm9, %v3845_v3, %v1379_v4  ;;  %v912_v1 = vld [vmem:[#allocation2 + $0x5c] sm:$0x1] }
 0x147   : > { %1543 = vst.msk [vmem:[#allocation3 + $0x18] sm:$0xf] %vm1536_vm0, %v4597_v56  ;;  %1986 = vrot.lane.b32.xlu2 %v1889_v10, %s4080_s6  ;;  %v1376_v56 = vsel %vm4293_vm9, %v1374_v51, %v1375_v11  ;;  %v483_v51 = vadd.f32 %v4611_v17, %v482_v5  ;;  %v1096_v10 = vsel %vm4160_vm5, %v3837_v0, %v1095_v37  ;;  %v1276_v11 = vld [vmem:[#allocation2 + $0xbc] sm:$0x3]  ;;  %v1581_v0 = vld [vmem:[#allocation2 + $0x60] sm:$0xf] }
 0x148   : > { %v1115_v15 = vpop.permute.xlu1 %1114  ;;  %v593_v12 = vpack.c.bf16 %v499_v7, %v499_v7 }
 0x149   : > { %1204 = vst.msk [vmem:[#allocation3 + $0x1c] sm:$0xf] %vm1196_vm15, %v1115_v15  ;;  %v1678_v23 = vpop.permute.xlu2 %1677  ;;  %v516_v13 = vmax.f32 %v483_v51, 0.0  ;;  %v1597_v15 = vld [vmem:[#allocation2 + $0xc0] sm:$0xf] }
 0x14a   : > { %1752 = vst.msk [vmem:[#allocation3 + $0x58] sm:$0xf] %vm1729_vm1, %v1678_v23  ;;  %v1438_v23 = vrot.slane %v1276_v11, 6  ;;  %v681_v26 = vrot.slane %v593_v12, 7  ;;  %v1779_v51 = vld [vmem:[#allocation2 + $0x5c] sm:$0x1] }
 0x14b   : > { %1466 = vrot.lane.b32.xlu0 %v1376_v56, %s4078_s27  ;;  %v610_v19 = vpack.c.bf16 %v516_v13, %v516_v13  ;;  %v442_v56 = vpop.f32.mrf.mxu0 }
 0x14c   : > { %v443_v28 = vadd.f32 %v4611_v17, %v442_v56  ;;  %798 = vst.msk [vmem:[#allocation2 + $0x6c] sm:$0xe] %vm775_vm10, %v681_v26  ;;  %v1439_v37 = vsel %vm4293_vm9, %v1437_v22, %v1438_v23  ;;  %v682_v42 = vrot.slane %v681_v26, 4 }
 0x14d   : > { %v1455_v33 = vpop.permute.xlu0 %1454  ;;  %v723_v27 = vrot.slane %v610_v19, 7 }
 0x14e   : > { %1544 = vst.msk [vmem:[#allocation3 + $0x1c] sm:$0xf] %vm1536_vm0, %v1455_v33  ;;  %1687 = vrot.lane.b32.xlu1 %v1596_v34, %s4079_s30  ;;  %v500_v35 = vmax.f32 %v443_v28, 0.0 }
 0x14f   : > { %1653 = vrot.lane.b32.xlu2 %v1579_v29, %s4079_s30  ;;  %v910_v29 = vld [vmem:[#allocation2 + $0x54] sm:$0xe]  ;;  %v724_v33 = vsel %vm4325_vm13, %v722_v16, %v723_v27  ;;  %v725_v34 = vrot.slane %v723_v27, 4  ;;  %v1898_v16 = vrot.slane %v1779_v51, 5 }
 0x150   : > { %v4674_v45 = vpop.permute.xlu1 %1675  ;;  %v3829_v39 = vrot.slane %v910_v29, 9  ;;  %823 = vst.msk [vmem:[#allocation2 + $0xd0] sm:$0xf] %vm517_vm2, %v724_v33  ;;  %v594_v43 = vpack.c.bf16 %v500_v35, %v500_v35 }
 0x151   : > { %v1117_v47 = vpop.permute.xlu2 %1116  ;;  %824 = vst.msk [vmem:[#allocation2 + $0xd4] sm:$0x1] %vm778_vm14, %v725_v34  ;;  %v1254_v34 = vld [vmem:[#allocation2 + $0x64] sm:$0xf] }
 0x152   : > { %1205 = vst.msk [vmem:[#allocation3 + $0x20] sm:$0xf] %vm1196_vm15, %v1117_v47  ;;  %v683_v44 = vrot.slane %v594_v43, 7  ;;  %v1040_v48 = vsel %vm4160_vm5, %v3829_v39, %v1039_v40  ;;  %v1582_v39 = vld [vmem:[#allocation2 + $0x64] sm:$0xf]  ;;  %v1386_v40 = vrot.slane %v1254_v34, 6 }
 0x153   : > { %1988 = vrot.lane.b32.xlu0 %v1892_v52, %s4080_s6  ;;  %v1252_v52 = vld [vmem:[#allocation2 + $0x5c] sm:$0x3]  ;;  %v445_v58 = vpop.f32.mrf.mxu0  ;;  %v915_v43 = vld [vmem:[#allocation2 + $0x68] sm:$0x1]  ;;  %v1256_v51 = vld [vmem:[#allocation2 + $0x6c] sm:$0xc] }
 0x154   : > { %v684_v49 = vsel %vm4325_vm13, %v682_v42, %v683_v44  ;;  %v685_v50 = vrot.slane %v683_v44, 4  ;;  %v1382_v62 = vrot.slane %v1252_v52, 6  ;;  %v1255_v42 = vld [vmem:[#allocation2 + $0x68] sm:$0x3]  ;;  %v1049_v52 = vrot.slane %v915_v43, 5 }
 0x155   : > { %v1977_v60 = vpop.permute.xlu0 %1976  ;;  %799 = vst.msk [vmem:[#allocation2 + $0x70] sm:$0xf] %vm517_vm2, %v684_v49 }
 0x156   : > { %2070 = vst.msk [vmem:[#allocation3 + $0xc] sm:$0xf] %vm2066_vm3, %v1977_v60  ;;  %1162 = vrot.lane.b32.xlu1 %v1099_v61, %s4077_s26  ;;  %v1580_v60 = vld [vmem:[#allocation2 + $0x58] sm:$0xf]  ;;  %v1381_v61 = vrot.slane %v1379_v4, 4  ;;  %v1042_v4 = vrot.slane %v912_v1, 5 }
 0x157   : > { %1500 = vrot.lane.b32.xlu2 %v1436_v63, %s4078_s27  ;;  %800 = vst.msk [vmem:[#allocation2 + $0x74] sm:$0x1] %vm778_vm14, %v685_v50  ;;  %v446_v63 = vadd.f32 %v4611_v17, %v445_v58 }
 0x158   : > { %v1151_v6 = vpop.permute.xlu1 %1150 }
 0x159   : > { %1222 = vst.msk [vmem:[#allocation3 + $0x64] sm:$0xf] %vm1196_vm15, %v1151_v6  ;;  %v4697_v8 = vpop.permute.xlu2 %1458  ;;  %v501_v3 = vmax.f32 %v446_v63, 0.0  ;;  %v1383_v6 = vsel %vm4293_vm9, %v1381_v61, %v1382_v62  ;;  %v1902_v62 = vrot.slane %v1781_v54, 5 }
 0x15b   : > { %1160 = vrot.lane.b32.xlu0 %v1096_v10, %s4077_s26  ;;  %v595_v7 = vpack.c.bf16 %v501_v3, %v501_v3  ;;  %v447_v13 = vpop.f32.mrf.mxu0 }
 0x15c   : > { %v448_v19 = vadd.f32 %v4611_v17, %v447_v13  ;;  %v917_v3 = vld [vmem:[#allocation2 + $0x70] sm:$0xf] }
 0x15d   : > { %v1149_v21 = vpop.permute.xlu0 %1148  ;;  %v686_v11 = vrot.slane %v595_v7, 7 }
 0x15e   : > { %1221 = vst.msk [vmem:[#allocation3 + $0x60] sm:$0xf] %vm1196_vm15, %v1149_v21  ;;  %1468 = vrot.lane.b32.xlu1 %v1380_v14, %s4078_s27  ;;  %v1043_v14 = vsel %vm4160_vm5, %v1041_v59, %v1042_v4  ;;  %v1599_v21 = vld [vmem:[#allocation2 + $0xcc] sm:$0xf]  ;;  %v502_v22 = vmax.f32 %v448_v19, 0.0  ;;  %v1053_v59 = vrot.slane %v917_v3, 5 }
 0x15f   : > { %1561 = vst.msk [vmem:[#allocation3 + $0x60] sm:$0xf] %vm1536_vm0, %v4642_v57  ;;  %1689 = vrot.lane.b32.xlu2 %v1597_v15, %s4079_s30  ;;  %v1895_v57 = vrot.slane %v4708_v25, 5  ;;  %v914_v25 = vld [vmem:[#allocation2 + $0x64] sm:$0xf]  ;;  %v687_v26 = vrot.slane %v686_v11, 4 }
 0x160   : > { %v1457_v31 = vpop.permute.xlu1 %1456  ;;  %801 = vst.msk [vmem:[#allocation2 + $0x78] sm:$0xe] %vm775_vm10, %v686_v11  ;;  %v596_v27 = vpack.c.bf16 %v502_v22, %v502_v22  ;;  %v1046_v33 = vrot.slane %v914_v25, 5  ;;  %v1600_v4 = vld [vmem:[#allocation2 + $0xd0] sm:$0xf]  ;;  %v3847_v19 = vrot.slane %v1256_v51, 10 }
 0x161   : > { %1545 = vst.msk [vmem:[#allocation3 + $0x20] sm:$0xf] %vm1536_vm0, %v1457_v31  ;;  %v1981_v36 = vpop.permute.xlu2 %1980  ;;  %v1896_v47 = vsel %vm4160_vm5, %v3859_v38, %v1895_v57  ;;  %v1897_v15 = vrot.slane %v1895_v57, 4  ;;  %v3830_v31 = vrot.slane %v913_v24, 9  ;;  %v918_v7 = vld [vmem:[#allocation2 + $0x74] sm:$0x1] }
 0x162   : > { %v688_v28 = vrot.slane %v596_v27, 7  ;;  %v1048_v50 = vrot.slane %v1046_v33, 4  ;;  %v844_v22 = vld [vmem:[#allocation2 + $0x70] sm:$0xf]  ;;  %v1782_v27 = vld [vmem:[#allocation2 + $0x68] sm:$0x1] }
 0x163   : > { %1502 = vrot.lane.b32.xlu0 %v1439_v37, %s4078_s27  ;;  %v1899_v56 = vsel %vm4160_vm5, %v1897_v15, %v1898_v16  ;;  %v841_v37 = vld [vmem:[#allocation2 + $0x60] sm:$0xf]  ;;  %v1047_v57 = vsel %vm4160_vm5, %v3830_v31, %v1046_v33  ;;  %v1056_v15 = vrot.slane %v918_v7, 5  ;;  %v843_v16 = vld [vmem:[#allocation2 + $0x6c] sm:$0xf]  ;;  %v1904_v31 = vrot.slane %v1902_v62, 4 }
 0x164   : > { %v689_v35 = vsel %vm4325_vm13, %v687_v26, %v688_v28  ;;  %873 = vst.msk [vmem:[#allocation3 + $0x40] sm:$0xf] %vm517_vm2, %v841_v37  ;;  %v1905_v33 = vrot.slane %v1782_v27, 5  ;;  %v4841_v3 = vld [vmem:[#allocation2 + $0x88] sm:$0xf]  ;;  %vm3440_vm10 = vcmask 293888  }
 0x165   : > { %v1491_v46 = vpop.permute.xlu0 %1490  ;;  %802 = vst.msk [vmem:[#allocation2 + $0x7c] sm:$0xf] %vm517_vm2, %v689_v35 }
 0x166   : > { %1562 = vst.msk [vmem:[#allocation3 + $0x64] sm:$0xf] %vm1536_vm0, %v1491_v46  ;;  %1990 = vrot.lane.b32.xlu1 %v1896_v47, %s4080_s6  ;;  %v1388_v47 = vrot.slane %v1386_v40, 4 }
 0x167   : > { %1128 = vrot.lane.b32.xlu2 %v1040_v48, %s4077_s26  ;;  %v1389_v48 = vrot.slane %v1255_v42, 6  ;;  %876 = vst.msk [vmem:[#allocation3 + $0x4c] sm:$0xf] %vm517_vm2, %v844_v22  ;;  %v1585_v54 = vld [vmem:[#allocation2 + $0x78] sm:$0xf] }
 0x168   : > { %v1979_v53 = vpop.permute.xlu1 %1978  ;;  %875 = vst.msk [vmem:[#allocation3 + $0x48] sm:$0xf] %vm517_vm2, %v843_v16 }
 0x169   : > { %2071 = vst.msk [vmem:[#allocation3 + $0x10] sm:$0xf] %vm2066_vm3, %v1979_v53  ;;  %v1153_v55 = vpop.permute.xlu2 %1152  ;;  %v1780_v53 = vld [vmem:[#allocation2 + $0x60] sm:$0xe]  ;;  %v1390_v58 = vsel %vm4293_vm9, %v1388_v47, %v1389_v48 }
 0x16a   : > { %1223 = vst.msk [vmem:[#allocation3 + $0x68] sm:$0xf] %vm1196_vm15, %v1153_v55  ;;  %v3860_v61 = vrot.slane %v1780_v53, 9 }
 0x16b   : > { %1655 = vrot.lane.b32.xlu0 %v1580_v60, %s4079_s30  ;;  %v1050_v60 = vsel %vm4160_vm5, %v1048_v50, %v1049_v52 }
 0x16c   : > { %v1903_v1 = vsel %vm4160_vm5, %v3860_v61, %v1902_v62  ;;  %v1260_v42 = vld [vmem:[#allocation2 + $0x7c] sm:$0xf] }
 0x16d   : > { %v1644_v5 = vpop.permute.xlu0 %1643  ;;  %v1400_v47 = vrot.slane %v1260_v42, 6  ;;  %v846_v50 = vld [vmem:[#allocation2 + $0x7c] sm:$0xf] }
 0x16e   : > { %1735 = vst.msk [vmem:[#allocation3 + $0x14] sm:$0xf] %vm1729_vm1, %v1644_v5  ;;  %1657 = vrot.lane.b32.xlu1 %v1581_v0, %s4079_s30  ;;  %v1584_v5 = vld [vmem:[#allocation2 + $0x70] sm:$0xf]  ;;  %v920_v61 = vld [vmem:[#allocation2 + $0x7c] sm:$0xf] }
 0x16f   : > { %2072 = vst.msk [vmem:[#allocation3 + $0x14] sm:$0xf] %vm2066_vm3, %v1981_v36  ;;  %1470 = vrot.lane.b32.xlu2 %v1383_v6, %s4078_s27  ;;  %v690_v36 = vrot.slane %v688_v28, 4  ;;  %v4810_v28 = vld [vmem:[#allocation2 + $0x70] sm:$0xf] }
 0x170   : > { %v1646_v10 = vpop.permute.xlu1 %1645  ;;  %878 = vst.msk [vmem:[#allocation3 + $0x54] sm:$0xf] %vm517_vm2, %v846_v50 }
 0x171   : > { %1736 = vst.msk [vmem:[#allocation3 + $0x18] sm:$0xf] %vm1729_vm1, %v1646_v10  ;;  %v4749_v12 = vpop.permute.xlu2 %1494  ;;  %v1257_v10 = vld [vmem:[#allocation2 + $0x70] sm:$0xf] }
 0x172   : > { %803 = vst.msk [vmem:[#allocation2 + $0x80] sm:$0x1] %vm778_vm14, %v690_v36  ;;  %v1909_v36 = vrot.slane %v4810_v28, 5 }
 0x173   : > { %1130 = vrot.lane.b32.xlu0 %v1043_v14, %s4077_s26  ;;  %v1055_v14 = vrot.slane %v1053_v59, 4 }
 0x175   : > { %v1119_v23 = vpop.permute.xlu0 %1118 }
 0x176   : > { %1206 = vst.msk [vmem:[#allocation3 + $0x24] sm:$0xf] %vm1196_vm15, %v1119_v23  ;;  %1693 = vrot.lane.b32.xlu1 %v1599_v21, %s4079_s30  ;;  %v1393_v21 = vrot.slane %v1257_v10, 6  ;;  %v916_v23 = vld [vmem:[#allocation2 + $0x6c] sm:$0xe]  ;;  %v1923_v10 = vrot.slane %v4841_v3, 5 }
 0x177   : > { %1546 = vst.msk [vmem:[#allocation3 + $0x24] sm:$0xf] %vm1536_vm0, %v4697_v8  ;;  %1992 = vrot.lane.b32.xlu2 %v1899_v56, %s4080_s6  ;;  %v1253_v8 = vld [vmem:[#allocation2 + $0x60] sm:$0xc]  ;;  %v1057_v56 = vsel %vm4160_vm5, %v1055_v14, %v1056_v15  ;;  %v3831_v26 = vrot.slane %v916_v23, 9 }
 0x178   : > { %v1493_v17 = vpop.permute.xlu1 %1492  ;;  %v3846_v2 = vrot.slane %v1253_v8, 10  ;;  %v1394_v25 = vsel %vm4293_vm9, %v3847_v19, %v1393_v21  ;;  %v1258_v8 = vld [vmem:[#allocation2 + $0x74] sm:$0x3]  ;;  %v1791_v14 = vld [vmem:[#allocation2 + $0x8c] sm:$0x1] }
 0x179   : > { %1563 = vst.msk [vmem:[#allocation3 + $0x68] sm:$0xf] %vm1536_vm0, %v1493_v17  ;;  %v1648_v29 = vpop.permute.xlu2 %1647  ;;  %v1783_v17 = vld [vmem:[#allocation2 + $0x6c] sm:$0xe]  ;;  %v1054_v34 = vsel %vm4160_vm5, %v3831_v26, %v1053_v59  ;;  %v1060_v59 = vrot.slane %v920_v61, 5  ;;  %v1926_v22 = vrot.slane %v1791_v14, 5 }
 0x17a   : > { %1737 = vst.msk [vmem:[#allocation3 + $0x1c] sm:$0xf] %vm1729_vm1, %v1648_v29  ;;  %v1387_v49 = vsel %vm4293_vm9, %v3846_v2, %v1386_v40  ;;  %v3861_v35 = vrot.slane %v1783_v17, 9  ;;  %v1259_v2 = vld [vmem:[#allocation2 + $0x78] sm:$0xc] }
 0x17b   : > { %1691 = vrot.lane.b32.xlu0 %v1598_v30, %s4079_s30  ;;  %v1261_v15 = vld [vmem:[#allocation2 + $0x80] sm:$0x3]  ;;  %v1795_v17 = vld [vmem:[#allocation2 + $0x9c] sm:$0xe]  ;;  %v1794_v61 = vld [vmem:[#allocation2 + $0x98] sm:$0x1] }
 0x17c   : > { %v1910_v40 = vsel %vm4160_vm5, %v3861_v35, %v1909_v36  ;;  %v1788_v35 = vld [vmem:[#allocation2 + $0x80] sm:$0x1]  ;;  %v4902_v14 = vld [vmem:[#allocation2 + $0xd0] sm:$0xf] }
 0x17d   : > { %v1680_v38 = vpop.permute.xlu0 %1679 }
 0x17e   : > { %1753 = vst.msk [vmem:[#allocation3 + $0x5c] sm:$0xf] %vm1729_vm1, %v1680_v38  ;;  %1132 = vrot.lane.b32.xlu1 %v1047_v57, %s4077_s26  ;;  %v1906_v38 = vsel %vm4160_vm5, %v1904_v31, %v1905_v33  ;;  %v1395_v57 = vrot.slane %v1393_v21, 4  ;;  %v1925_v21 = vrot.slane %v1923_v10, 4  ;;  %v1911_v31 = vrot.slane %v1909_v36, 4 }
 0x17f   : > { %1659 = vrot.lane.b32.xlu2 %v1582_v39, %s4079_s30  ;;  %v1396_v39 = vrot.slane %v1258_v8, 6 }
 0x180   : > { %v1682_v44 = vpop.permute.xlu1 %1681  ;;  %v1927_v27 = vsel %vm4160_vm5, %v1925_v21, %v1926_v22  ;;  %v1965_v22 = vrot.slane %v4902_v14, 5  ;;  %v2111_v14 = vld [vmem:[#allocation2 + $0x48] sm:$0xc] }
 0x181   : > { %1754 = vst.msk [vmem:[#allocation3 + $0x60] sm:$0xf] %vm1729_vm1, %v1682_v44  ;;  %v1123_v46 = vpop.permute.xlu2 %1122  ;;  %v1397_v48 = vsel %vm4293_vm9, %v1395_v57, %v1396_v39  ;;  %v1789_v39 = vld [vmem:[#allocation2 + $0x84] sm:$0xe] }
 0x182   : > { %1208 = vst.msk [vmem:[#allocation3 + $0x2c] sm:$0xf] %vm1196_vm15, %v1123_v46  ;;  %v3848_v46 = vrot.slane %v1259_v2, 10  ;;  %v4874_v2 = vld [vmem:[#allocation2 + $0xac] sm:$0xf] }
 0x183   : > { %1472 = vrot.lane.b32.xlu0 %v1387_v49, %s4078_s27  ;;  %v845_v49 = vld [vmem:[#allocation2 + $0x78] sm:$0xf] }
 0x184   : > { %877 = vst.msk [vmem:[#allocation3 + $0x50] sm:$0xf] %vm517_vm2, %v845_v49  ;;  %v1401_v53 = vsel %vm4293_vm9, %v3848_v46, %v1400_v47  ;;  %v1792_v49 = vld [vmem:[#allocation2 + $0x90] sm:$0xe] }
 0x185   : > { %v1155_v55 = vpop.permute.xlu0 %1154 }
 0x186   : > { %1224 = vst.msk [vmem:[#allocation3 + $0x6c] sm:$0xf] %vm1196_vm15, %v1155_v55  ;;  %1474 = vrot.lane.b32.xlu1 %v1390_v58, %s4078_s27  ;;  %v1786_v55 = vld [vmem:[#allocation2 + $0x78] sm:$0xe]  ;;  %v1787_v58 = vld [vmem:[#allocation2 + $0x7c] sm:$0xf] }
 0x187   : > { %1564 = vst.msk [vmem:[#allocation3 + $0x6c] sm:$0xf] %vm1536_vm0, %v4749_v12  ;;  %1134 = vrot.lane.b32.xlu2 %v1050_v60, %s4077_s26  ;;  %v1583_v12 = vld [vmem:[#allocation2 + $0x6c] sm:$0xf]  ;;  %v919_v60 = vld [vmem:[#allocation2 + $0x78] sm:$0xe] }
 0x188   : > { %v1121_v63 = vpop.permute.xlu1 %1120 }
 0x189   : > { %1207 = vst.msk [vmem:[#allocation3 + $0x28] sm:$0xf] %vm1196_vm15, %v1121_v63  ;;  %v1684_v0 = vpop.permute.xlu2 %1683 }
 0x18a   : > { %1755 = vst.msk [vmem:[#allocation3 + $0x64] sm:$0xf] %vm1729_vm1, %v1684_v0  ;;  %v3862_v0 = vrot.slane %v1786_v55, 9 }
 0x18b   : > { %1994 = vrot.lane.b32.xlu0 %v1903_v1, %s4080_s6  ;;  %v1916_v1 = vrot.slane %v1787_v58, 5 }
 0x18d   : > { %v1461_v6 = vpop.permute.xlu0 %1460  ;;  %v1917_v51 = vsel %vm4160_vm5, %v3862_v0, %v1916_v1  ;;  %v1918_v36 = vrot.slane %v1916_v1, 4  ;;  %v1933_v1 = vrot.slane %v1794_v61, 5 }
 0x18e   : > { %1547 = vst.msk [vmem:[#allocation3 + $0x28] sm:$0xf] %vm1536_vm0, %v1461_v6  ;;  %1663 = vrot.lane.b32.xlu1 %v1584_v5, %s4079_s30  ;;  %v1586_v5 = vld [vmem:[#allocation2 + $0x7c] sm:$0xf]  ;;  %v3832_v6 = vrot.slane %v919_v60, 9  ;;  %v3864_v60 = vrot.slane %v1792_v49, 9 }
 0x18f   : > { %1695 = vrot.lane.b32.xlu2 %v1600_v4, %s4079_s30  ;;  %v921_v4 = vld [vmem:[#allocation2 + $0x80] sm:$0x1]  ;;  %v1807_v49 = vld [vmem:[#allocation2 + $0xcc] sm:$0xe] }
 0x190   : > { %v1463_v11 = vpop.permute.xlu1 %1462 }
 0x191   : > { %1548 = vst.msk [vmem:[#allocation3 + $0x2c] sm:$0xf] %vm1536_vm0, %v1463_v11  ;;  %v1159_v13 = vpop.permute.xlu2 %1158  ;;  %v1061_v11 = vsel %vm4160_vm5, %v3832_v6, %v1060_v59  ;;  %v1805_v6 = vld [vmem:[#allocation2 + $0xc4] sm:$0xf] }
 0x192   : > { %1226 = vst.msk [vmem:[#allocation3 + $0x74] sm:$0xf] %vm1196_vm15, %v1159_v13  ;;  %v1063_v13 = vrot.slane %v921_v4, 5 }
 0x193   : > { %1661 = vrot.lane.b32.xlu0 %v1583_v12, %s4079_s30  ;;  %v1062_v12 = vrot.slane %v1060_v59, 4  ;;  %v1797_v59 = vld [vmem:[#allocation2 + $0xa4] sm:$0x1] }
 0x195   : > { %v1983_v24 = vpop.permute.xlu0 %1982  ;;  %v1064_v23 = vsel %vm4160_vm5, %v1062_v12, %v1063_v13  ;;  %v1940_v13 = vrot.slane %v1797_v59, 5 }
 0x196   : > { %2073 = vst.msk [vmem:[#allocation3 + $0x18] sm:$0xf] %vm2066_vm3, %v1983_v24  ;;  %1138 = vrot.lane.b32.xlu1 %v1057_v56, %s4077_s26  ;;  %v1402_v24 = vrot.slane %v1400_v47, 4  ;;  %v1403_v56 = vrot.slane %v1261_v15, 6  ;;  %v1800_v47 = vld [vmem:[#allocation2 + $0xb0] sm:$0x1] }
 0x197   : > { %1476 = vrot.lane.b32.xlu2 %v1394_v25, %s4078_s27  ;;  %v1785_v25 = vld [vmem:[#allocation2 + $0x74] sm:$0x1]  ;;  %v1798_v15 = vld [vmem:[#allocation2 + $0xa8] sm:$0xe] }
 0x198   : > { %v1985_v29 = vpop.permute.xlu1 %1984  ;;  %v1912_v33 = vrot.slane %v1785_v25, 5  ;;  %v1801_v25 = vld [vmem:[#allocation2 + $0xb4] sm:$0xe] }
 0x199   : > { %2074 = vst.msk [vmem:[#allocation3 + $0x1c] sm:$0xf] %vm2066_vm3, %v1985_v29  ;;  %v4813_v30 = vpop.permute.xlu2 %1464  ;;  %v1404_v29 = vsel %vm4293_vm9, %v1402_v24, %v1403_v56  ;;  %v3866_v24 = vrot.slane %v1798_v15, 9  ;;  %v1809_v56 = vld [vmem:[#allocation2 + $0xd4] sm:$0x1] }
 0x19a   : > { %v1913_v28 = vsel %vm4160_vm5, %v1911_v31, %v1912_v33  ;;  %v1968_v31 = vrot.slane %v1809_v56, 5  ;;  %v2112_v15 = vld [vmem:[#allocation2 + $0x4c] sm:$0xf] }
 0x19b   : > { %1136 = vrot.lane.b32.xlu0 %v1054_v34, %s4077_s26  ;;  %v1796_v34 = vld [vmem:[#allocation2 + $0xa0] sm:$0xf] }
 0x19c   : > { %v1937_v57 = vrot.slane %v1796_v34, 5  ;;  %v3867_v34 = vrot.slane %v1801_v25, 9 }
 0x19d   : > { %v1650_v37 = vpop.permute.xlu0 %1649 }
 0x19e   : > { %1738 = vst.msk [vmem:[#allocation3 + $0x20] sm:$0xf] %vm1729_vm1, %v1650_v37  ;;  %1996 = vrot.lane.b32.xlu1 %v1906_v38, %s4080_s6  ;;  %v3865_v38 = vrot.slane %v1795_v17, 9  ;;  %v1939_v12 = vrot.slane %v1937_v57, 4 }
 0x19f   : > { %1998 = vrot.lane.b32.xlu2 %v1910_v40, %s4080_s6  ;;  %v1919_v40 = vrot.slane %v1788_v35, 5 }
 0x1a0   : > { %v1157_v43 = vpop.permute.xlu1 %1156  ;;  %v1938_v42 = vsel %vm4160_vm5, %v3865_v38, %v1937_v57  ;;  %v2102_v38 = vld [vmem:[#allocation2 + $0x24] sm:$0xc] }
 0x1a1   : > { %1225 = vst.msk [vmem:[#allocation3 + $0x70] sm:$0xf] %vm1196_vm15, %v1157_v43  ;;  %v1987_v44 = vpop.permute.xlu2 %1986  ;;  %v3863_v43 = vrot.slane %v1789_v39, 9  ;;  %v1920_v46 = vsel %vm4160_vm5, %v1918_v36, %v1919_v40  ;;  %v2103_v36 = vld [vmem:[#allocation2 + $0x28] sm:$0xf] }
 0x1a2   : > { %2075 = vst.msk [vmem:[#allocation3 + $0x20] sm:$0xf] %vm2066_vm3, %v1987_v44  ;;  %v1944_v44 = vrot.slane %v4874_v2, 5  ;;  %v1806_v40 = vld [vmem:[#allocation2 + $0xc8] sm:$0x1] }
 0x1a3   : > { %1478 = vrot.lane.b32.xlu0 %v1397_v48, %s4078_s27  ;;  %v1793_v48 = vld [vmem:[#allocation2 + $0x94] sm:$0xf]  ;;  %v1924_v58 = vsel %vm4160_vm5, %v3863_v43, %v1923_v10  ;;  %v1958_v10 = vrot.slane %v1805_v6, 5  ;;  %v2204_v43 = vrot.slane %v2103_v36, 6  ;;  %v2101_v6 = vld [vmem:[#allocation2 + $0x20] sm:$0x3] }
 0x1a4   : > { %v1930_v55 = vrot.slane %v1793_v48, 5  ;;  %v1945_v33 = vsel %vm4160_vm5, %v3866_v24, %v1944_v44  ;;  %v4932_v48 = vld [vmem:[#allocation2 + $0x34] sm:$0xf] }
 0x1a5   : > { %v1497_v52 = vpop.permute.xlu0 %1496  ;;  %v2206_v24 = vrot.slane %v2204_v43, 4 }
 0x1a6   : > { %1565 = vst.msk [vmem:[#allocation3 + $0x70] sm:$0xf] %vm1536_vm0, %v1497_v52  ;;  %1480 = vrot.lane.b32.xlu1 %v1401_v53, %s4078_s27  ;;  %v1946_v53 = vrot.slane %v1944_v44, 4  ;;  %v1932_v0 = vrot.slane %v1930_v55, 4  ;;  %v1931_v3 = vsel %vm4160_vm5, %v3864_v60, %v1930_v55  ;;  %v2107_v60 = vld [vmem:[#allocation2 + $0x38] sm:$0x3] }
 0x1a7   : > { %1665 = vrot.lane.b32.xlu2 %v1585_v54, %s4079_s30  ;;  %v1947_v54 = vrot.slane %v1800_v47, 5  ;;  %v1961_v47 = vrot.slane %v1806_v40, 5  ;;  %v2110_v40 = vld [vmem:[#allocation2 + $0x44] sm:$0x3] }
 0x1a8   : > { %v1499_v62 = vpop.permute.xlu1 %1498 }
 0x1a9   : > { %1566 = vst.msk [vmem:[#allocation3 + $0x74] sm:$0xf] %vm1536_vm0, %v1499_v62  ;;  %v1654_v63 = vpop.permute.xlu2 %1653 }
 0x1aa   : > { %1740 = vst.msk [vmem:[#allocation3 + $0x28] sm:$0xf] %vm1729_vm1, %v1654_v63  ;;  %v1948_v63 = vsel %vm4160_vm5, %v1946_v53, %v1947_v54  ;;  %v2211_v53 = vrot.slane %v4932_v48, 6  ;;  %v2100_v54 = vld [vmem:[#allocation2 + $0x1c] sm:$0xf] }
 0x1ab   : > { %1667 = vrot.lane.b32.xlu0 %v1586_v5, %s4079_s30  ;;  %v1804_v5 = vld [vmem:[#allocation2 + $0xc0] sm:$0xe]  ;;  %v2113_v48 = vld [vmem:[#allocation2 + $0x50] sm:$0x3] }
 0x1ad   : > { %v1686_v7 = vpop.permute.xlu0 %1685 }
 0x1ae   : > { %1756 = vst.msk [vmem:[#allocation3 + $0x68] sm:$0xf] %vm1729_vm1, %v1686_v7  ;;  %2002 = vrot.lane.b32.xlu1 %v1917_v51, %s4080_s6  ;;  %v3868_v51 = vrot.slane %v1804_v5, 9 }
 0x1af   : > { %1140 = vrot.lane.b32.xlu2 %v1061_v11, %s4077_s26  ;;  %v1934_v11 = vsel %vm4160_vm5, %v1932_v0, %v1933_v1  ;;  %v2213_v0 = vrot.slane %v2211_v53, 4  ;;  %v2214_v1 = vrot.slane %v2107_v60, 6  ;;  %v4995_v60 = vld [vmem:[#allocation2 + $0x7c] sm:$0xf] }
 0x1b0   : > { %v1652_v16 = vpop.permute.xlu1 %1651  ;;  %v1959_v21 = vsel %vm4160_vm5, %v3868_v51, %v1958_v10 }
 0x1b1   : > { %1739 = vst.msk [vmem:[#allocation3 + $0x24] sm:$0xf] %vm1729_vm1, %v1652_v16  ;;  %v4854_v19 = vpop.permute.xlu2 %1500  ;;  %v2215_v51 = vsel %vm4293_vm9, %v2213_v0, %v2214_v1  ;;  %v2253_v0 = vrot.slane %v4995_v60, 6 }
 0x1b3   : > { %1142 = vrot.lane.b32.xlu0 %v1064_v23, %s4077_s26  ;;  %v1941_v23 = vsel %vm4160_vm5, %v1939_v12, %v1940_v13  ;;  %v2104_v12 = vld [vmem:[#allocation2 + $0x2c] sm:$0x3]  ;;  %s5480_s26 = scalar_lea.vmem %s5639_s5, %s4008_s22 }
 0x1b4   : > { %v2207_v56 = vrot.slane %v2104_v12, 6 }
 0x1b5   : > { %v1125_v26 = vpop.permute.xlu0 %1124 }
 0x1b6   : > { %1209 = vst.msk [vmem:[#allocation3 + $0x30] sm:$0xf] %vm1196_vm15, %v1125_v26  ;;  %2008 = vrot.lane.b32.xlu1 %v1927_v27, %s4080_s6  ;;  %v1802_v26 = vld [vmem:[#allocation2 + $0xb8] sm:$0xf] }
 0x1b7   : > { %1549 = vst.msk [vmem:[#allocation3 + $0x30] sm:$0xf] %vm1536_vm0, %v4813_v30  ;;  %1482 = vrot.lane.b32.xlu2 %v1404_v29, %s4078_s27  ;;  %v1967_v29 = vrot.slane %v1965_v22, 4  ;;  %v1951_v35 = vrot.slane %v1802_v26, 5  ;;  %v2105_v26 = vld [vmem:[#allocation2 + $0x30] sm:$0xc] }
 0x1b8   : > { %v1127_v8 = vpop.permute.xlu1 %1126 }
 0x1b9   : > { %1210 = vst.msk [vmem:[#allocation3 + $0x34] sm:$0xf] %vm1196_vm15, %v1127_v8  ;;  %v1690_v37 = vpop.permute.xlu2 %1689  ;;  %v1952_v57 = vsel %vm4160_vm5, %v3867_v34, %v1951_v35  ;;  %v1953_v39 = vrot.slane %v1951_v35, 4  ;;  %v2116_v34 = vld [vmem:[#allocation2 + $0x5c] sm:$0x3] }
 0x1ba   : > { %1758 = vst.msk [vmem:[#allocation3 + $0x70] sm:$0xf] %vm1729_vm1, %v1690_v37  ;;  %v1969_v37 = vsel %vm4160_vm5, %v1967_v29, %v1968_v31  ;;  %v3872_v29 = vrot.slane %v2105_v26, 10  ;;  %v2109_v35 = vld [vmem:[#allocation2 + $0x40] sm:$0xf] }
 0x1bb   : > { %2000 = vrot.lane.b32.xlu0 %v1913_v28, %s4080_s6  ;;  %v2122_v26 = vld [vmem:[#allocation2 + $0x74] sm:$0x3] }
 0x1bd   : > { %v1467_v30 = vpop.permute.xlu0 %1466 }
 0x1be   : > { %1550 = vst.msk [vmem:[#allocation3 + $0x34] sm:$0xf] %vm1536_vm0, %v1467_v30  ;;  %2014 = vrot.lane.b32.xlu1 %v1938_v42, %s4080_s6  ;;  %v3871_v42 = vrot.slane %v2102_v38, 10 }
 0x1bf   : > { %2004 = vrot.lane.b32.xlu2 %v1920_v46, %s4080_s6  ;;  %v1960_v46 = vrot.slane %v1958_v10, 4 }
 0x1c0   : > { %v1688_v50 = vpop.permute.xlu1 %1687 }
 0x1c1   : > { %1757 = vst.msk [vmem:[#allocation3 + $0x6c] sm:$0xf] %vm1729_vm1, %v1688_v50  ;;  %v1129_v52 = vpop.permute.xlu2 %1128  ;;  %v1962_v55 = vsel %vm4160_vm5, %v1960_v46, %v1961_v47  ;;  %v2120_v46 = vld [vmem:[#allocation2 + $0x6c] sm:$0xc]  ;;  %v2121_v47 = vld [vmem:[#allocation2 + $0x70] sm:$0xf] }
 0x1c2   : > { %1211 = vst.msk [vmem:[#allocation3 + $0x38] sm:$0xf] %vm1196_vm15, %v1129_v52  ;;  %v2205_v52 = vsel %vm4293_vm9, %v3871_v42, %v2204_v43  ;;  %v2221_v43 = vrot.slane %v2110_v40, 6  ;;  %v2126_v40 = vld [vmem:[#allocation2 + $0x84] sm:$0xc] }
 0x1c3   : > { %2006 = vrot.lane.b32.xlu0 %v1924_v58, %s4080_s6  ;;  %v3869_v58 = vrot.slane %v1807_v49, 9 }
 0x1c5   : > { %v1989_v62 = vpop.permute.xlu0 %1988  ;;  %v1966_v5 = vsel %vm4160_vm5, %v3869_v58, %v1965_v22  ;;  %v3874_v22 = vrot.slane %v2111_v14, 10  ;;  %v2228_v58 = vrot.slane %v2113_v48, 6  ;;  %v2128_v48 = vld [vmem:[#allocation2 + $0x8c] sm:$0x3] }
 0x1c6   : > { %2076 = vst.msk [vmem:[#allocation3 + $0x24] sm:$0xf] %vm2066_vm3, %v1989_v62  ;;  %2020 = vrot.lane.b32.xlu1 %v1948_v63, %s4080_s6  ;;  %v2099_v62 = vld [vmem:[#allocation2 + $0x18] sm:$0xc] }
 0x1c7   : > { %2010 = vrot.lane.b32.xlu2 %v1931_v3, %s4080_s6  ;;  %v2197_v3 = vrot.slane %v2100_v54, 6  ;;  %v3870_v59 = vrot.slane %v2099_v62, 10 }
 0x1c8   : > { %v1163_v4 = vpop.permute.xlu1 %1162 }
 0x1c9   : > { %1228 = vst.msk [vmem:[#allocation3 + $0x7c] sm:$0xf] %vm1196_vm15, %v1163_v4  ;;  %v4898_v7 = vpop.permute.xlu2 %1470  ;;  %v2199_v10 = vrot.slane %v2197_v3, 4  ;;  %v2198_v13 = vsel %vm4293_vm9, %v3870_v59, %v2197_v3  ;;  %v2118_v59 = vld [vmem:[#allocation2 + $0x64] sm:$0xf] }
 0x1ca   : > { %v2239_v14 = vrot.slane %v2118_v59, 6  ;;  %v5067_v59 = vld [vmem:[#allocation2 + $0xac] sm:$0xf] }
 0x1cb   : > { %2012 = vrot.lane.b32.xlu0 %v1934_v11, %s4080_s6  ;;  %v2200_v11 = vrot.slane %v2101_v6, 6  ;;  %v2117_v6 = vld [vmem:[#allocation2 + $0x60] sm:$0xc] }
 0x1cd   : > { %v1161_v16 = vpop.permute.xlu0 %1160  ;;  %v2201_v25 = vsel %vm4293_vm9, %v2199_v10, %v2200_v11  ;;  %v2255_v10 = vrot.slane %v2253_v0, 4 }
 0x1ce   : > { %1227 = vst.msk [vmem:[#allocation3 + $0x78] sm:$0xf] %vm1196_vm15, %v1161_v16  ;;  %2026 = vrot.lane.b32.xlu1 %v1959_v21, %s4080_s6 }
 0x1cf   : > { %1567 = vst.msk [vmem:[#allocation3 + $0x78] sm:$0xf] %vm1536_vm0, %v4854_v19  ;;  %2016 = vrot.lane.b32.xlu2 %v1941_v23, %s4080_s6  ;;  %v1803_v19 = vld [vmem:[#allocation2 + $0xbc] sm:$0x1]  ;;  %v2225_v23 = vrot.slane %v2112_v15, 6 }
 0x1d0   : > { %v1469_v27 = vpop.permute.xlu1 %1468  ;;  %v1954_v28 = vrot.slane %v1803_v19, 5  ;;  %v2108_v19 = vld [vmem:[#allocation2 + $0x3c] sm:$0xc]  ;;  %v2119_v15 = vld [vmem:[#allocation2 + $0x68] sm:$0x3] }
 0x1d1   : > { %1551 = vst.msk [vmem:[#allocation3 + $0x38] sm:$0xf] %vm1536_vm0, %v1469_v27  ;;  %v1993_v17 = vpop.permute.xlu2 %1992  ;;  %v4966_v27 = vld [vmem:[#allocation2 + $0x58] sm:$0xf]  ;;  %v3873_v36 = vrot.slane %v2108_v19, 10 }
 0x1d2   : > { %v1955_v44 = vsel %vm4160_vm5, %v1953_v39, %v1954_v28  ;;  %v2232_v31 = vrot.slane %v4966_v27, 6  ;;  %v2218_v39 = vrot.slane %v2109_v35, 6  ;;  %v2212_v28 = vsel %vm4293_vm9, %v3872_v29, %v2211_v53  ;;  %v5025_v35 = vld [vmem:[#allocation2 + $0xa0] sm:$0xf]  ;;  %v2123_v19 = vld [vmem:[#allocation2 + $0x78] sm:$0xc] }
 0x1d3   : > { %2018 = vrot.lane.b32.xlu0 %v1945_v33, %s4080_s6  ;;  %v2208_v33 = vsel %vm4293_vm9, %v2206_v24, %v2207_v56  ;;  %v2246_v53 = vrot.slane %v2121_v47, 6  ;;  %v2241_v24 = vrot.slane %v2239_v14, 4  ;;  %v2242_v56 = vrot.slane %v2119_v15, 6 }
 0x1d4   : > { %v2234_v38 = vrot.slane %v2232_v31, 4  ;;  %v2220_v42 = vrot.slane %v2218_v39, 4  ;;  %v3879_v47 = vrot.slane %v2126_v40, 10 }
 0x1d5   : > { %v1503_v8 = vpop.permute.xlu0 %1502 }
 0x1d6   : > { %1568 = vst.msk [vmem:[#allocation3 + $0x7c] sm:$0xf] %vm1536_vm0, %v1503_v8  ;;  %2032 = vrot.lane.b32.xlu1 %v1969_v37, %s4080_s6  ;;  %v2222_v54 = vsel %vm4293_vm9, %v2220_v42, %v2221_v43 }
 0x1d7   : > { %2022 = vrot.lane.b32.xlu2 %v1952_v57, %s4080_s6  ;;  %v2235_v57 = vrot.slane %v2116_v34, 6  ;;  %v2249_v34 = vrot.slane %v2122_v26, 6 }
 0x1d8   : > { %v1991_v2 = vpop.permute.xlu1 %1990 }
 0x1d9   : > { %2077 = vst.msk [vmem:[#allocation3 + $0x28] sm:$0xf] %vm2066_vm3, %v1991_v2  ;;  %v1660_v30 = vpop.permute.xlu2 %1659 }
 0x1da   : > { %1743 = vst.msk [vmem:[#allocation3 + $0x34] sm:$0xf] %vm1729_vm1, %v1660_v30  ;;  %v2236_v30 = vsel %vm4293_vm9, %v2234_v38, %v2235_v57  ;;  %v2274_v57 = vrot.slane %v5025_v35, 6  ;;  %v2968_v35 = vld [vmem:[#allocation2 + $0x34] sm:$0xf] }
 0x1db   : > { %2024 = vrot.lane.b32.xlu0 %v1955_v44, %s4080_s6  ;;  %v2219_v44 = vsel %vm4293_vm9, %v3873_v36, %v2218_v39  ;;  %v2134_v36 = vld [vmem:[#allocation2 + $0xa4] sm:$0x3] }
 0x1dc   : > { %v2276_v43 = vrot.slane %v2274_v57, 4 }
 0x1dd   : > { %v1656_v50 = vpop.permute.xlu0 %1655 }
 0x1de   : > { %1741 = vst.msk [vmem:[#allocation3 + $0x2c] sm:$0xf] %vm1729_vm1, %v1656_v50  ;;  %2311 = vrot.lane.b32.xlu1 %v2205_v52, %s4081_s9  ;;  %v3877_v52 = vrot.slane %v2120_v46, 10 }
 0x1df   : > { %2078 = vst.msk [vmem:[#allocation3 + $0x2c] sm:$0xf] %vm2066_vm3, %v1993_v17  ;;  %2028 = vrot.lane.b32.xlu2 %v1962_v55, %s4080_s6  ;;  %v2226_v17 = vsel %vm4293_vm9, %v3874_v22, %v2225_v23  ;;  %v2227_v55 = vrot.slane %v2225_v23, 4  ;;  %v2129_v22 = vld [vmem:[#allocation2 + $0x90] sm:$0xc] }
 0x1e0   : > { %v1658_v61 = vpop.permute.xlu1 %1657 }
 0x1e1   : > { %1742 = vst.msk [vmem:[#allocation3 + $0x30] sm:$0xf] %vm1729_vm1, %v1658_v61  ;;  %v1135_v63 = vpop.permute.xlu2 %1134  ;;  %v2114_v61 = vld [vmem:[#allocation2 + $0x54] sm:$0xc]  ;;  %v2229_v1 = vsel %vm4293_vm9, %v2227_v55, %v2228_v58 }
 0x1e2   : > { %1214 = vst.msk [vmem:[#allocation3 + $0x44] sm:$0xf] %vm1196_vm15, %v1135_v63  ;;  %v2247_v63 = vsel %vm4293_vm9, %v3877_v52, %v2246_v53  ;;  %v3875_v3 = vrot.slane %v2114_v61, 10 }
 0x1e3   : > { %2030 = vrot.lane.b32.xlu0 %v1966_v5, %s4080_s6  ;;  %v2125_v5 = vld [vmem:[#allocation2 + $0x80] sm:$0x3] }
 0x1e4   : > { %v2256_v11 = vrot.slane %v2125_v5, 6  ;;  %v2233_v12 = vsel %vm4293_vm9, %v3875_v3, %v2232_v31  ;;  %v2243_v31 = vsel %vm4293_vm9, %v2241_v24, %v2242_v56  ;;  %v2992_v5 = vld [vmem:[#allocation2 + $0x94] sm:$0xf] }
 0x1e5   : > { %v1131_v4 = vpop.permute.xlu0 %1130 }
 0x1e6   : > { %1212 = vst.msk [vmem:[#allocation3 + $0x3c] sm:$0xf] %vm1196_vm15, %v1131_v4  ;;  %2317 = vrot.lane.b32.xlu1 %v2215_v51, %s4081_s9 }
 0x1e7   : > { %1552 = vst.msk [vmem:[#allocation3 + $0x3c] sm:$0xf] %vm1536_vm0, %v4898_v7  ;;  %2307 = vrot.lane.b32.xlu2 %v2198_v13, %s4081_s9  ;;  %v3876_v13 = vrot.slane %v2117_v6, 10  ;;  %v2135_v6 = vld [vmem:[#allocation2 + $0xa8] sm:$0xc] }
 0x1e8   : > { %v1694_v16 = vpop.permute.xlu1 %1693 }
 0x1e9   : > { %1760 = vst.msk [vmem:[#allocation3 + $0x78] sm:$0xf] %vm1729_vm1, %v1694_v16  ;;  %v1696_v21 = vpop.permute.xlu2 %1695  ;;  %v2240_v23 = vsel %vm4293_vm9, %v3876_v13, %v2239_v14  ;;  %v3882_v13 = vrot.slane %v2135_v6, 10  ;;  %v2281_v14 = vrot.slane %v5067_v59, 6 }
 0x1ea   : > { %1761 = vst.msk [vmem:[#allocation3 + $0x7c] sm:$0xf] %vm1729_vm1, %v1696_v21  ;;  %v2257_v21 = vsel %vm4293_vm9, %v2255_v10, %v2256_v11  ;;  %v3121_v11 = vrot.slane %v2992_v5, 6 }
 0x1eb   : > { %2309 = vrot.lane.b32.xlu0 %v2201_v25, %s4081_s9  ;;  %v2130_v25 = vld [vmem:[#allocation2 + $0x94] sm:$0xf] }
 0x1ec   : > { %v2267_v29 = vrot.slane %v2130_v25, 6  ;;  %v2453_v25 = vld [vmem:[#allocation2 + $0x90] sm:$0xf] }
 0x1ed   : > { %v1692_v7 = vpop.permute.xlu0 %1691 }
 0x1ee   : > { %1759 = vst.msk [vmem:[#allocation3 + $0x74] sm:$0xf] %vm1729_vm1, %v1692_v7  ;;  %2323 = vrot.lane.b32.xlu1 %v2226_v17, %s4081_s9  ;;  %v3880_v17 = vrot.slane %v2129_v22, 10  ;;  %v2269_v61 = vrot.slane %v2267_v29, 4  ;;  %v2655_v22 = vld [vmem:[#allocation2 + $0x94] sm:$0xf] }
 0x1ef   : > { %2313 = vrot.lane.b32.xlu2 %v2208_v33, %s4081_s9  ;;  %v2248_v33 = vrot.slane %v2246_v53, 4  ;;  %v2263_v53 = vrot.slane %v2128_v48, 6  ;;  %v2784_v26 = vrot.slane %v2655_v22, 5 }
 0x1f0   : > { %v1133_v8 = vpop.permute.xlu1 %1132  ;;  %v2268_v38 = vsel %vm4293_vm9, %v3880_v17, %v2267_v29  ;;  %v2438_v29 = vld [vmem:[#allocation2 + $0x34] sm:$0xf] }
 0x1f1   : > { %1213 = vst.msk [vmem:[#allocation3 + $0x40] sm:$0xf] %vm1196_vm15, %v1133_v8  ;;  %v4978_v37 = vpop.permute.xlu2 %1476  ;;  %v2250_v39 = vsel %vm4293_vm9, %v2248_v33, %v2249_v34  ;;  %v2967_v34 = vld [vmem:[#allocation2 + $0x30] sm:$0xc] }
 0x1f3   : > { %2315 = vrot.lane.b32.xlu0 %v2212_v28, %s4081_s9  ;;  %v3878_v28 = vrot.slane %v2123_v19, 10  ;;  %v2993_v19 = vld [vmem:[#allocation2 + $0x98] sm:$0x3] }
 0x1f4   : > { %v3124_v40 = vrot.slane %v2993_v19, 6 }
 0x1f5   : > { %v1473_v2 = vpop.permute.xlu0 %1472  ;;  %v2254_v46 = vsel %vm4293_vm9, %v3878_v28, %v2253_v0 }
 0x1f6   : > { %1553 = vst.msk [vmem:[#allocation3 + $0x40] sm:$0xf] %vm1536_vm0, %v1473_v2  ;;  %2329 = vrot.lane.b32.xlu1 %v2236_v30, %s4081_s9  ;;  %v2127_v2 = vld [vmem:[#allocation2 + $0x88] sm:$0xf] }
 0x1f7   : > { %2319 = vrot.lane.b32.xlu2 %v2219_v44, %s4081_s9  ;;  %v2277_v44 = vrot.slane %v2134_v36, 6  ;;  %v3123_v36 = vrot.slane %v3121_v11, 4 }
 0x1f8   : > { %v1475_v49 = vpop.permute.xlu1 %1474 }
 0x1f9   : > { %1554 = vst.msk [vmem:[#allocation3 + $0x44] sm:$0xf] %vm1536_vm0, %v1475_v49  ;;  %v1999_v50 = vpop.permute.xlu2 %1998 }
 0x1fb   : > { %2321 = vrot.lane.b32.xlu0 %v2222_v54, %s4081_s9  ;;  %v2131_v54 = vld [vmem:[#allocation2 + $0x98] sm:$0x3] }
 0x1fd   : > { %v1995_v62 = vpop.permute.xlu0 %1994 }
 0x1fe   : > { %2079 = vst.msk [vmem:[#allocation3 + $0x30] sm:$0xf] %vm2066_vm3, %v1995_v62  ;;  %2335 = vrot.lane.b32.xlu1 %v2247_v63, %s4081_s9  ;;  %v2270_v62 = vrot.slane %v2131_v54, 6  ;;  %v2132_v63 = vld [vmem:[#allocation2 + $0x9c] sm:$0xc] }
 0x1ff   : > { %2325 = vrot.lane.b32.xlu2 %v2229_v1, %s4081_s9  ;;  %v2991_v1 = vld [vmem:[#allocation2 + $0x90] sm:$0xc] }
 0x200   : > { %v1664_v4 = vpop.permute.xlu1 %1663  ;;  %v2271_v3 = vsel %vm4293_vm9, %v2269_v61, %v2270_v62  ;;  %v3910_v10 = vrot.slane %v2991_v1, 10  ;;  %v2969_v61 = vld [vmem:[#allocation2 + $0x38] sm:$0x3] }
 0x201   : > { %1745 = vst.msk [vmem:[#allocation3 + $0x3c] sm:$0xf] %vm1729_vm1, %v1664_v4  ;;  %v1666_v51 = vpop.permute.xlu2 %1665 }
 0x202   : > { %1746 = vst.msk [vmem:[#allocation3 + $0x40] sm:$0xf] %vm1729_vm1, %v1666_v51 }
 0x203   : > { %2327 = vrot.lane.b32.xlu0 %v2233_v12, %s4081_s9 }
 0x205   : > { %v1662_v16 = vpop.permute.xlu0 %1661 }
 0x206   : > { %1744 = vst.msk [vmem:[#allocation3 + $0x38] sm:$0xf] %vm1729_vm1, %v1662_v16  ;;  %2341 = vrot.lane.b32.xlu1 %v2257_v21, %s4081_s9  ;;  %v3122_v16 = vsel %vm4293_vm9, %v3910_v10, %v3121_v11  ;;  %v2282_v21 = vsel %vm4293_vm9, %v3882_v13, %v2281_v14  ;;  %v2658_v10 = vld [vmem:[#allocation2 + $0xa0] sm:$0xf]  ;;  %v2455_v13 = vld [vmem:[#allocation2 + $0x9c] sm:$0xf] }
 0x207   : > { %2081 = vst.msk [vmem:[#allocation3 + $0x38] sm:$0xf] %vm2066_vm3, %v1999_v50  ;;  %2331 = vrot.lane.b32.xlu2 %v2240_v23, %s4081_s9  ;;  %v2654_v23 = vld [vmem:[#allocation2 + $0x90] sm:$0xe] }
 0x208   : > { %v1139_v27 = vpop.permute.xlu1 %1138 }
 0x209   : > { %1216 = vst.msk [vmem:[#allocation3 + $0x4c] sm:$0xf] %vm1196_vm15, %v1139_v27  ;;  %v1141_v7 = vpop.permute.xlu2 %1140  ;;  %v3894_v27 = vrot.slane %v2654_v23, 9  ;;  %v2440_v23 = vld [vmem:[#allocation2 + $0x40] sm:$0xf] }
 0x20a   : > { %1217 = vst.msk [vmem:[#allocation3 + $0x50] sm:$0xf] %vm1196_vm15, %v1141_v7  ;;  %v2656_v7 = vld [vmem:[#allocation2 + $0x98] sm:$0x1] }
 0x20b   : > { %2333 = vrot.lane.b32.xlu0 %v2243_v31, %s4081_s9  ;;  %v2786_v31 = vrot.slane %v2784_v26, 4  ;;  %v2787_v33 = vrot.slane %v2656_v7, 5  ;;  %v2996_v7 = vld [vmem:[#allocation2 + $0xa4] sm:$0x3] }
 0x20d   : > { %v1137_v8 = vpop.permute.xlu0 %1136  ;;  %v2788_v28 = vsel %vm4160_vm5, %v2786_v31, %v2787_v33 }
 0x20e   : > { %1215 = vst.msk [vmem:[#allocation3 + $0x48] sm:$0xf] %vm1196_vm15, %v1137_v8  ;;  %2347 = vrot.lane.b32.xlu1 %v2268_v38, %s4081_s9 }
 0x20f   : > { %1555 = vst.msk [vmem:[#allocation3 + $0x48] sm:$0xf] %vm1536_vm0, %v4978_v37  ;;  %2337 = vrot.lane.b32.xlu2 %v2250_v39, %s4081_s9  ;;  %v2260_v37 = vrot.slane %v2127_v2, 6  ;;  %v3065_v39 = vrot.slane %v2968_v35, 6  ;;  %v3131_v35 = vrot.slane %v2996_v7, 6 }
 0x210   : > { %1748 = vst.msk [vmem:[#allocation3 + $0x48] sm:$0xf] %vm1729_vm1, %v4568_v18  ;;  %v1997_v30 = vpop.permute.xlu1 %1996  ;;  %v2278_v18 = vsel %vm4293_vm9, %v2276_v43, %v2277_v44  ;;  %v2631_v43 = vld [vmem:[#allocation2 + $0x34] sm:$0xf]  ;;  %v2630_v44 = vld [vmem:[#allocation2 + $0x30] sm:$0xe] }
 0x211   : > { %2080 = vst.msk [vmem:[#allocation3 + $0x34] sm:$0xf] %vm2066_vm3, %v1997_v30  ;;  %v1483_v42 = vpop.permute.xlu2 %1482  ;;  %v2261_v50 = vsel %vm4293_vm9, %v3879_v47, %v2260_v37  ;;  %v2262_v52 = vrot.slane %v2260_v37, 4  ;;  %v2437_v37 = vld [vmem:[#allocation2 + $0x30] sm:$0xf]  ;;  %v2728_v48 = vrot.slane %v2631_v43, 5 }
 0x213   : > { %2339 = vrot.lane.b32.xlu0 %v2254_v46, %s4081_s9  ;;  %v2264_v60 = vsel %vm4293_vm9, %v2262_v52, %v2263_v53  ;;  %v2456_v52 = vld [vmem:[#allocation2 + $0xa0] sm:$0xf]  ;;  %v2730_v53 = vrot.slane %v2728_v48, 4 }
 0x215   : > { %v1479_v49 = vpop.permute.xlu0 %1478 }
 0x216   : > { %1556 = vst.msk [vmem:[#allocation3 + $0x4c] sm:$0xf] %vm1536_vm0, %v1479_v49  ;;  %2353 = vrot.lane.b32.xlu1 %v2278_v18, %s4081_s9  ;;  %v3886_v49 = vrot.slane %v2630_v44, 9  ;;  %v2632_v18 = vld [vmem:[#allocation2 + $0x38] sm:$0x1] }
 0x217   : > { %1749 = vst.msk [vmem:[#allocation3 + $0x4c] sm:$0xf] %vm1729_vm1, %v4570_v20  ;;  %2343 = vrot.lane.b32.xlu2 %v2261_v50, %s4081_s9  ;;  %v2454_v20 = vld [vmem:[#allocation2 + $0x94] sm:$0xf]  ;;  %v2731_v54 = vrot.slane %v2632_v18, 5 }
 0x218   : > { %v1481_v55 = vpop.permute.xlu1 %1480  ;;  %v2458_v44 = vld [vmem:[#allocation2 + $0xac] sm:$0xf]  ;;  %v2972_v18 = vld [vmem:[#allocation2 + $0x44] sm:$0x3] }
 0x219   : > { %1557 = vst.msk [vmem:[#allocation3 + $0x50] sm:$0xf] %vm1536_vm0, %v1481_v55  ;;  %v2005_v58 = vpop.permute.xlu2 %2004  ;;  %v2729_v55 = vsel %vm4160_vm5, %v3886_v49, %v2728_v48  ;;  %v2732_v1 = vsel %vm4160_vm5, %v2730_v53, %v2731_v54  ;;  %v2997_v48 = vld [vmem:[#allocation2 + $0xa8] sm:$0xc]  ;;  %v2998_v49 = vld [vmem:[#allocation2 + $0xac] sm:$0xf] }
 0x21a   : > { %1750 = vst.msk [vmem:[#allocation3 + $0x50] sm:$0xf] %vm1729_vm1, %v4633_v41  ;;  %v3881_v41 = vrot.slane %v2132_v63, 10  ;;  %v3912_v53 = vrot.slane %v2997_v48, 10  ;;  %v3135_v54 = vrot.slane %v2998_v49, 6 }
 0x21b   : > { %2345 = vrot.lane.b32.xlu0 %v2264_v60, %s4081_s9  ;;  %v2995_v60 = vld [vmem:[#allocation2 + $0xa0] sm:$0xf] }
 0x21c   : > { %v2275_v12 = vsel %vm4293_vm9, %v3881_v41, %v2274_v57  ;;  %v3902_v57 = vrot.slane %v2967_v34, 10  ;;  %v3068_v41 = vrot.slane %v2969_v61, 6 }
 0x21d   : > { %v1668_v0 = vpop.permute.xlu0 %1667 }
 0x21e   : > { %1747 = vst.msk [vmem:[#allocation3 + $0x44] sm:$0xf] %vm1729_vm1, %v1668_v0  ;;  %2535 = vrot.lane.b32.xlu1 %v2454_v20, %s4082_s10  ;;  %v3066_v30 = vsel %vm4293_vm9, %v3902_v57, %v3065_v39  ;;  %v3128_v20 = vrot.slane %v2995_v60, 6  ;;  %v2634_v57 = vld [vmem:[#allocation2 + $0x40] sm:$0xf]  ;;  %v3075_v60 = vrot.slane %v2972_v18, 6 }
 0x21f   : > { %2084 = vst.msk [vmem:[#allocation3 + $0x44] sm:$0xf] %vm2066_vm3, %v2005_v58  ;;  %2349 = vrot.lane.b32.xlu2 %v2271_v3, %s4081_s9  ;;  %v2994_v58 = vld [vmem:[#allocation2 + $0x9c] sm:$0xc]  ;;  %v3067_v3 = vrot.slane %v3065_v39, 4 }
 0x220   : > { %v2003_v4 = vpop.permute.xlu1 %2002  ;;  %v3911_v0 = vrot.slane %v2994_v58, 10  ;;  %v3130_v34 = vrot.slane %v3128_v20, 4  ;;  %v2633_v39 = vld [vmem:[#allocation2 + $0x3c] sm:$0xe] }
 0x221   : > { %2083 = vst.msk [vmem:[#allocation3 + $0x40] sm:$0xf] %vm2066_vm3, %v2003_v4  ;;  %v2011_v51 = vpop.permute.xlu2 %2010  ;;  %v3069_v4 = vsel %vm4293_vm9, %v3067_v3, %v3068_v41  ;;  %v2457_v41 = vld [vmem:[#allocation2 + $0xa8] sm:$0xf] }
 0x222   : > { %2087 = vst.msk [vmem:[#allocation3 + $0x50] sm:$0xf] %vm2066_vm3, %v2011_v51  ;;  %v3129_v6 = vsel %vm4293_vm9, %v3911_v0, %v3128_v20  ;;  %v2657_v51 = vld [vmem:[#allocation2 + $0x9c] sm:$0xe]  ;;  %v2660_v0 = vld [vmem:[#allocation2 + $0xa8] sm:$0xe] }
 0x223   : > { %2351 = vrot.lane.b32.xlu0 %v2275_v12, %s4081_s9  ;;  %v2661_v20 = vld [vmem:[#allocation2 + $0xac] sm:$0xf] }
 0x225   : > { %v1143_v15 = vpop.permute.xlu0 %1142 }
 0x226   : > { %1218 = vst.msk [vmem:[#allocation3 + $0x54] sm:$0xf] %vm1196_vm15, %v1143_v15  ;;  %3207 = vrot.lane.b32.xlu1 %v3122_v16, %s4083_s11  ;;  %v3895_v15 = vrot.slane %v2657_v51, 9  ;;  %v2791_v16 = vrot.slane %v2658_v10, 5  ;;  %v2442_v10 = vld [vmem:[#allocation2 + $0x4c] sm:$0xf] }
 0x227   : > { %1558 = vst.msk [vmem:[#allocation3 + $0x54] sm:$0xf] %vm1536_vm0, %v1483_v42  ;;  %2355 = vrot.lane.b32.xlu2 %v2282_v21, %s4081_s9  ;;  %v3125_v42 = vsel %vm4293_vm9, %v3123_v36, %v3124_v40  ;;  %v2659_v21 = vld [vmem:[#allocation2 + $0xa4] sm:$0x1]  ;;  %v2439_v40 = vld [vmem:[#allocation2 + $0x3c] sm:$0xf] }
 0x228   : > { %1751 = vst.msk [vmem:[#allocation3 + $0x54] sm:$0xf] %vm1729_vm1, %v4674_v45  ;;  %v2009_v24 = vpop.permute.xlu1 %2008  ;;  %v2785_v45 = vsel %vm4160_vm5, %v3894_v27, %v2784_v26  ;;  %v2794_v26 = vrot.slane %v2659_v21, 5  ;;  %v2971_v27 = vld [vmem:[#allocation2 + $0x40] sm:$0xf] }
 0x229   : > { %2086 = vst.msk [vmem:[#allocation3 + $0x4c] sm:$0xf] %vm2066_vm3, %v2009_v24  ;;  %v2017_v56 = vpop.permute.xlu2 %2016  ;;  %v2970_v24 = vld [vmem:[#allocation2 + $0x3c] sm:$0xc]  ;;  %v3072_v33 = vrot.slane %v2971_v27, 6 }
 0x22a   : > { %2090 = vst.msk [vmem:[#allocation3 + $0x5c] sm:$0xf] %vm2066_vm3, %v2017_v56  ;;  %v2792_v56 = vsel %vm4160_vm5, %v3895_v15, %v2791_v16  ;;  %v3903_v31 = vrot.slane %v2970_v24, 10  ;;  %v2999_v21 = vld [vmem:[#allocation2 + $0xb0] sm:$0x3] }
 0x22b   : > { %2533 = vrot.lane.b32.xlu0 %v2453_v25, %s4082_s10  ;;  %v2793_v25 = vrot.slane %v2791_v16, 4  ;;  %v3074_v58 = vrot.slane %v3072_v33, 4  ;;  %v2974_v16 = vld [vmem:[#allocation2 + $0x4c] sm:$0xf]  ;;  %v3138_v27 = vrot.slane %v2999_v21, 6 }
 0x22d   : > { %v2001_v17 = vpop.permute.xlu0 %2000 }
 0x22e   : > { %2082 = vst.msk [vmem:[#allocation3 + $0x3c] sm:$0xf] %vm2066_vm3, %v2001_v17  ;;  %2503 = vrot.lane.b32.xlu1 %v2438_v29, %s4082_s10 }
 0x22f   : > { %2870 = vrot.lane.b32.xlu2 %v2785_v45, %s4084_s12  ;;  %v2795_v45 = vsel %vm4160_vm5, %v2793_v25, %v2794_v26  ;;  %v3137_v26 = vrot.slane %v3135_v54, 4 }
 0x230   : > { %v2015_v8 = vpop.permute.xlu1 %2014 }
 0x231   : > { %2089 = vst.msk [vmem:[#allocation3 + $0x58] sm:$0xf] %vm2066_vm3, %v2015_v8  ;;  %v2023_v38 = vpop.permute.xlu2 %2022  ;;  %v3073_v8 = vsel %vm4293_vm9, %v3903_v31, %v3072_v33  ;;  %v2637_v31 = vld [vmem:[#allocation2 + $0x4c] sm:$0xf]  ;;  %v2636_v33 = vld [vmem:[#allocation2 + $0x48] sm:$0xe] }
 0x232   : > { %2093 = vst.msk [vmem:[#allocation3 + $0x68] sm:$0xf] %vm2066_vm3, %v2023_v38  ;;  %v3132_v38 = vsel %vm4293_vm9, %v3130_v34, %v3131_v35  ;;  %v2441_v35 = vld [vmem:[#allocation2 + $0x48] sm:$0xf] }
 0x233   : > { %2872 = vrot.lane.b32.xlu0 %v2788_v28, %s4084_s12 }
 0x235   : > { %v2007_v2 = vpop.permute.xlu0 %2006 }
 0x236   : > { %2085 = vst.msk [vmem:[#allocation3 + $0x48] sm:$0xf] %vm2066_vm3, %v2007_v2  ;;  %3175 = vrot.lane.b32.xlu1 %v3066_v30, %s4083_s11  ;;  %v2735_v2 = vrot.slane %v2634_v57, 5  ;;  %v3887_v30 = vrot.slane %v2633_v39, 9  ;;  %v2460_v39 = vld [vmem:[#allocation2 + $0xb8] sm:$0xf] }
 0x237   : > { %3209 = vrot.lane.b32.xlu2 %v3125_v42, %s4083_s11  ;;  %v2635_v42 = vld [vmem:[#allocation2 + $0x44] sm:$0x1] }
 0x238   : > { %v2021_v46 = vpop.permute.xlu1 %2020 }
 0x239   : > { %2092 = vst.msk [vmem:[#allocation3 + $0x64] sm:$0xf] %vm2066_vm3, %v2021_v46  ;;  %v2029_v47 = vpop.permute.xlu2 %2028  ;;  %v2737_v46 = vrot.slane %v2735_v2, 4 }
 0x23a   : > { %2096 = vst.msk [vmem:[#allocation3 + $0x74] sm:$0xf] %vm2066_vm3, %v2029_v47  ;;  %v2738_v47 = vrot.slane %v2635_v42, 5  ;;  %v2975_v42 = vld [vmem:[#allocation2 + $0x50] sm:$0x3] }
 0x23b   : > { %2501 = vrot.lane.b32.xlu0 %v2437_v37, %s4082_s10  ;;  %v2736_v37 = vsel %vm4160_vm5, %v3887_v30, %v2735_v2  ;;  %v3000_v2 = vld [vmem:[#allocation2 + $0xb4] sm:$0xc]  ;;  %v3001_v30 = vld [vmem:[#allocation2 + $0xb8] sm:$0xf]  ;;  %v3082_v49 = vrot.slane %v2975_v42, 6 }
 0x23d   : > { %v2013_v50 = vpop.permute.xlu0 %2012 }
 0x23e   : > { %2088 = vst.msk [vmem:[#allocation3 + $0x54] sm:$0xf] %vm2066_vm3, %v2013_v50  ;;  %2539 = vrot.lane.b32.xlu1 %v2456_v52, %s4082_s10 }
 0x23f   : > { %2838 = vrot.lane.b32.xlu2 %v2729_v55, %s4084_s12  ;;  %v2739_v55 = vsel %vm4160_vm5, %v2737_v46, %v2738_v47  ;;  %v3913_v46 = vrot.slane %v3000_v2, 10  ;;  %v3142_v47 = vrot.slane %v3001_v30, 6  ;;  %v2668_v2 = vld [vmem:[#allocation2 + $0xc8] sm:$0x1]  ;;  %v2978_v30 = vld [vmem:[#allocation2 + $0x5c] sm:$0x3] }
 0x240   : > { %v2027_v62 = vpop.permute.xlu1 %2026 }
 0x241   : > { %2095 = vst.msk [vmem:[#allocation3 + $0x70] sm:$0xf] %vm2066_vm3, %v2027_v62  ;;  %v2308_v63 = vpop.permute.xlu2 %2307  ;;  %v3136_v62 = vsel %vm4293_vm9, %v3912_v53, %v3135_v54  ;;  %v2663_v53 = vld [vmem:[#allocation2 + $0xb4] sm:$0xe]  ;;  %v2664_v54 = vld [vmem:[#allocation2 + $0xb8] sm:$0xf] }
 0x242   : > { %2404 = vst.msk [vmem:[#allocation3] sm:$0xf] %vm2403_vm4, %v2308_v63  ;;  %v3076_v63 = vsel %vm4293_vm9, %v3074_v58, %v3075_v60 }
 0x243   : > { %2840 = vrot.lane.b32.xlu0 %v2732_v1, %s4084_s12 }
 0x245   : > { %v2019_v5 = vpop.permute.xlu0 %2018 }
 0x246   : > { %2091 = vst.msk [vmem:[#allocation3 + $0x60] sm:$0xf] %vm2066_vm3, %v2019_v5  ;;  %3211 = vrot.lane.b32.xlu1 %v3129_v6, %s4083_s11  ;;  %v3896_v5 = vrot.slane %v2660_v0, 9  ;;  %v2798_v6 = vrot.slane %v2661_v20, 5  ;;  %v2805_v0 = vrot.slane %v2664_v54, 5 }
 0x247   : > { %3177 = vrot.lane.b32.xlu2 %v3069_v4, %s4083_s11  ;;  %v2662_v4 = vld [vmem:[#allocation2 + $0xb0] sm:$0x1]  ;;  %v2665_v20 = vld [vmem:[#allocation2 + $0xbc] sm:$0x1] }
 0x248   : > { %v2033_v11 = vpop.permute.xlu1 %2032  ;;  %v2801_v15 = vrot.slane %v2662_v4, 5  ;;  %v2976_v4 = vld [vmem:[#allocation2 + $0x54] sm:$0xc] }
 0x249   : > { %2098 = vst.msk [vmem:[#allocation3 + $0x7c] sm:$0xf] %vm2066_vm3, %v2033_v11  ;;  %v2314_v12 = vpop.permute.xlu2 %2313  ;;  %v2973_v11 = vld [vmem:[#allocation2 + $0x48] sm:$0xc]  ;;  %v3905_v21 = vrot.slane %v2976_v4, 10 }
 0x24a   : > { %2407 = vst.msk [vmem:[#allocation3 + $0xc] sm:$0xf] %vm2403_vm4, %v2314_v12  ;;  %v2799_v12 = vsel %vm4160_vm5, %v3896_v5, %v2798_v6  ;;  %v3904_v24 = vrot.slane %v2973_v11, 10  ;;  %v2444_v5 = vld [vmem:[#allocation2 + $0x58] sm:$0xf]  ;;  %v2807_v11 = vrot.slane %v2805_v0, 4 }
 0x24b   : > { %2537 = vrot.lane.b32.xlu0 %v2455_v13, %s4082_s10  ;;  %v2800_v13 = vrot.slane %v2798_v6, 4  ;;  %v2808_v6 = vrot.slane %v2665_v20, 5  ;;  %v2462_v20 = vld [vmem:[#allocation2 + $0xc4] sm:$0xf] }
 0x24d   : > { %v2025_v22 = vpop.permute.xlu0 %2024  ;;  %v2802_v25 = vsel %vm4160_vm5, %v2800_v13, %v2801_v15  ;;  %v3002_v13 = vld [vmem:[#allocation2 + $0xbc] sm:$0x3] }
 0x24e   : > { %2094 = vst.msk [vmem:[#allocation3 + $0x6c] sm:$0xf] %vm2066_vm3, %v2025_v22  ;;  %2507 = vrot.lane.b32.xlu1 %v2440_v23, %s4082_s10 }
 0x24f   : > { %2874 = vrot.lane.b32.xlu2 %v2792_v56, %s4084_s12  ;;  %v3079_v56 = vrot.slane %v2974_v16, 6 }
 0x250   : > { %v2312_v17 = vpop.permute.xlu1 %2311 }
 0x251   : > { %2406 = vst.msk [vmem:[#allocation3 + $0x8] sm:$0xf] %vm2403_vm4, %v2312_v17  ;;  %v2320_v29 = vpop.permute.xlu2 %2319  ;;  %v3080_v17 = vsel %vm4293_vm9, %v3904_v24, %v3079_v56  ;;  %v3081_v48 = vrot.slane %v3079_v56, 4  ;;  %v2809_v24 = vsel %vm4160_vm5, %v2807_v11, %v2808_v6  ;;  %v3144_v56 = vrot.slane %v3142_v47, 4 }
 0x252   : > { %2410 = vst.msk [vmem:[#allocation3 + $0x18] sm:$0xf] %vm2403_vm4, %v2320_v29  ;;  %v3139_v29 = vsel %vm4293_vm9, %v3137_v26, %v3138_v27 }
 0x253   : > { %2876 = vrot.lane.b32.xlu0 %v2795_v45, %s4084_s12 }
 0x255   : > { %v2031_v19 = vpop.permute.xlu0 %2030 }
 0x256   : > { %2097 = vst.msk [vmem:[#allocation3 + $0x78] sm:$0xf] %vm2066_vm3, %v2031_v19  ;;  %3179 = vrot.lane.b32.xlu1 %v3073_v8, %s4083_s11  ;;  %v2742_v19 = vrot.slane %v2637_v31, 5  ;;  %v3888_v8 = vrot.slane %v2636_v33, 9 }
 0x257   : > { %3213 = vrot.lane.b32.xlu2 %v3132_v38, %s4083_s11  ;;  %v2638_v38 = vld [vmem:[#allocation2 + $0x50] sm:$0x1] }
 0x258   : > { %v2318_v28 = vpop.permute.xlu1 %2317 }
 0x259   : > { %2409 = vst.msk [vmem:[#allocation3 + $0x14] sm:$0xf] %vm2403_vm4, %v2318_v28  ;;  %v2326_v36 = vpop.permute.xlu2 %2325  ;;  %v2744_v28 = vrot.slane %v2742_v19, 4 }
 0x25a   : > { %2413 = vst.msk [vmem:[#allocation3 + $0x24] sm:$0xf] %vm2403_vm4, %v2326_v36  ;;  %v2745_v36 = vrot.slane %v2638_v38, 5 }
 0x25b   : > { %2505 = vrot.lane.b32.xlu0 %v2439_v40, %s4082_s10  ;;  %v2743_v40 = vsel %vm4160_vm5, %v3888_v8, %v2742_v19  ;;  %v5237_v19 = vld [vmem:[#allocation2 + $0xc4] sm:$0xf]  ;;  %v2641_v8 = vld [vmem:[#allocation2 + $0x5c] sm:$0x1] }
 0x25d   : > { %v2310_v43 = vpop.permute.xlu0 %2309 }
 0x25e   : > { %2405 = vst.msk [vmem:[#allocation3 + $0x4] sm:$0xf] %vm2403_vm4, %v2310_v43  ;;  %2543 = vrot.lane.b32.xlu1 %v2458_v44, %s4082_s10 }
 0x25f   : > { %2842 = vrot.lane.b32.xlu2 %v2736_v37, %s4084_s12  ;;  %v2746_v37 = vsel %vm4160_vm5, %v2744_v28, %v2745_v36 }
 0x260   : > { %v2324_v50 = vpop.permute.xlu1 %2323 }
 0x261   : > { %2412 = vst.msk [vmem:[#allocation3 + $0x20] sm:$0xf] %vm2403_vm4, %v2324_v50  ;;  %v2332_v52 = vpop.permute.xlu2 %2331  ;;  %v3143_v50 = vsel %vm4293_vm9, %v3913_v46, %v3142_v47  ;;  %v2815_v46 = vrot.slane %v2668_v2, 5  ;;  %v2981_v2 = vld [vmem:[#allocation2 + $0x68] sm:$0x3] }
 0x262   : > { %2416 = vst.msk [vmem:[#allocation3 + $0x30] sm:$0xf] %vm2403_vm4, %v2332_v52  ;;  %v3083_v52 = vsel %vm4293_vm9, %v3081_v48, %v3082_v49  ;;  %v3089_v48 = vrot.slane %v2978_v30, 6  ;;  %v2137_v49 = vld [vmem:[#allocation2 + $0xb0] sm:$0x3] }
 0x263   : > { %2844 = vrot.lane.b32.xlu0 %v2739_v55, %s4084_s12  ;;  %v3340_v55 = vld [vmem:[%s5637_s3 + $0x10] sm:$0x3]  ;;  %v2284_v54 = vrot.slane %v2137_v49, 6 }
 0x264   : > { %v3434_v60 = vunpack.c.l.b16 %v3340_v55 }
 0x265   : > { %v2316_v61 = vpop.permute.xlu0 %2315 }
 0x266   : > { %2408 = vst.msk [vmem:[#allocation3 + $0x10] sm:$0xf] %vm2403_vm4, %v2316_v61  ;;  %3215 = vrot.lane.b32.xlu1 %v3136_v62, %s4083_s11  ;;  %v2459_v62 = vld [vmem:[#allocation2 + $0xb4] sm:$0xf] }
 0x267   : > { %3181 = vrot.lane.b32.xlu2 %v3076_v63, %s4083_s11  ;;  %v3897_v63 = vrot.slane %v2663_v53, 9  ;;  %v2283_v53 = vrot.slane %v2281_v14, 4 }
 0x268   : > { %v2330_v1 = vpop.permute.xlu1 %2329 }
 0x269   : > { %2415 = vst.msk [vmem:[#allocation3 + $0x2c] sm:$0xf] %vm2403_vm4, %v2330_v1  ;;  %v2338_v3 = vpop.permute.xlu2 %2337  ;;  %v3437_v1 = vpack.c.b16 %v3434_v60, %v3434_v60  ;;  %v2285_v60 = vsel %vm4293_vm9, %v2283_v53, %v2284_v54 }
 0x26a   : > { %2419 = vst.msk [vmem:[#allocation3 + $0x3c] sm:$0xf] %vm2403_vm4, %v2338_v3 }
 0x26b   : > { %2541 = vrot.lane.b32.xlu0 %v2457_v41, %s4082_s10  ;;  %v3491_v3 = vsel %vm1325_vm7, %v3437_v1, 0  ;;  %vm2934_vm7 = vcmask 257248  }
 0x26c   : > { %4045 = vmatpush.bf16.msra.mxu2 %v3491_v3  ;;  %3498 = vmatpush.bf16.msra.mxu1 %v3491_v3  ;;  %v2644_v3 = vld [vmem:[#allocation2 + $0x68] sm:$0x1] }
 0x26d   : > { %v2322_v51 = vpop.permute.xlu0 %2321 }
 0x26e   : > { %2411 = vst.msk [vmem:[#allocation3 + $0x1c] sm:$0xf] %vm2403_vm4, %v2322_v51  ;;  %2511 = vrot.lane.b32.xlu1 %v2442_v10, %s4082_s10  ;;  %v4043_v51 = vld [vmem:[%s5637_s3 + $0x8] sm:$0xff]  ;;  %v2806_v10 = vsel %vm4160_vm5, %v3897_v63, %v2805_v0  ;;  %v2445_v0 = vld [vmem:[#allocation2 + $0x60] sm:$0xf] }
 0x26f   : > { %2878 = vrot.lane.b32.xlu2 %v2799_v12, %s4084_s12  ;;  %v2977_v12 = vld [vmem:[#allocation2 + $0x58] sm:$0xf] }
 0x270   : > { %v2336_v22 = vpop.permute.xlu1 %2335  ;;  %4046 = vmatpush.bf16.msra.mxu2 %v4043_v51  ;;  %3499 = vmatpush.bf16.msra.mxu1 %v4043_v51 }
 0x271   : > { %2418 = vst.msk [vmem:[#allocation3 + $0x38] sm:$0xf] %vm2403_vm4, %v2336_v22  ;;  %v2344_v23 = vpop.permute.xlu2 %2343  ;;  %v3086_v22 = vrot.slane %v2977_v12, 6 }
 0x272   : > { %2422 = vst.msk [vmem:[#allocation3 + $0x48] sm:$0xf] %vm2403_vm4, %v2344_v23  ;;  %v4042_v23 = vld [vmem:[%s5637_s3] sm:$0xff] }
 0x273   : > { %2880 = vrot.lane.b32.xlu0 %v2802_v25, %s4084_s12  ;;  %v3145_v25 = vrot.slane %v3002_v13, 6  ;;  %v3087_v27 = vsel %vm4293_vm9, %v3905_v21, %v3086_v22 }
 0x274   : > { %4047 = vmatpush.bf16.msra.mxu2 %v4042_v23  ;;  %3500 = vmatpush.bf16.msra.mxu1 %v4042_v23 }
 0x275   : > { %v2328_v7 = vpop.permute.xlu0 %2327 }
 0x276   : > { %2414 = vst.msk [vmem:[#allocation3 + $0x28] sm:$0xf] %vm2403_vm4, %v2328_v7  ;;  %3183 = vrot.lane.b32.xlu1 %v3080_v17, %s4083_s11  ;;  %v3146_v7 = vsel %vm4293_vm9, %v3144_v56, %v3145_v25  ;;  %v2639_v17 = vld [vmem:[#allocation2 + $0x54] sm:$0xe]  ;;  %v2139_v25 = vld [vmem:[#allocation2 + $0xb8] sm:$0xf] }
 0x277   : > { %3217 = vrot.lane.b32.xlu2 %v3139_v29, %s4083_s11  ;;  %v2640_v29 = vld [vmem:[#allocation2 + $0x58] sm:$0xf] }
 0x278   : > { %v2342_v45 = vpop.permute.xlu1 %2341 }
 0x279   : > { %2421 = vst.msk [vmem:[#allocation3 + $0x44] sm:$0xf] %vm2403_vm4, %v2342_v45  ;;  %v2350_v34 = vpop.permute.xlu2 %2349  ;;  %v2443_v45 = vld [vmem:[#allocation2 + $0x54] sm:$0xf] }
 0x27a   : > { %2425 = vst.msk [vmem:[#allocation3 + $0x54] sm:$0xf] %vm2403_vm4, %v2350_v34  ;;  %v3889_v34 = vrot.slane %v2639_v17, 9  ;;  %v2288_v17 = vrot.slane %v2139_v25, 6  ;;  %v5333_v25 = vld [vmem:[#allocation2 + $0xc4] sm:$0xf] }
 0x27b   : > { %2509 = vrot.lane.b32.xlu0 %v2441_v35, %s4082_s10  ;;  %v2749_v35 = vrot.slane %v2640_v29, 5 }
 0x27c   : > { %v2290_v54 = vrot.slane %v2288_v17, 4 }
 0x27d   : > { %v2334_v57 = vpop.permute.xlu0 %2333  ;;  %v2750_v28 = vsel %vm4160_vm5, %v3889_v34, %v2749_v35  ;;  %v2751_v36 = vrot.slane %v2749_v35, 4  ;;  %v2446_v34 = vld [vmem:[#allocation2 + $0x64] sm:$0xf] }
 0x27e   : > { %2417 = vst.msk [vmem:[#allocation3 + $0x34] sm:$0xf] %vm2403_vm4, %v2334_v57  ;;  %2547 = vrot.lane.b32.xlu1 %v2460_v39, %s4082_s10  ;;  %v2461_v57 = vld [vmem:[#allocation2 + $0xc0] sm:$0xf]  ;;  %v2812_v39 = vrot.slane %v5237_v19, 5 }
 0x27f   : > { %2846 = vrot.lane.b32.xlu2 %v2743_v40, %s4084_s12  ;;  %v2752_v40 = vrot.slane %v2641_v8, 5  ;;  %v2979_v8 = vld [vmem:[#allocation2 + $0x60] sm:$0xc] }
 0x280   : > { %v2348_v43 = vpop.permute.xlu1 %2347 }
 0x281   : > { %2424 = vst.msk [vmem:[#allocation3 + $0x50] sm:$0xf] %vm2403_vm4, %v2348_v43  ;;  %v2356_v44 = vpop.permute.xlu2 %2355  ;;  %v2753_v47 = vsel %vm4160_vm5, %v2751_v36, %v2752_v40  ;;  %v3906_v36 = vrot.slane %v2979_v8, 10 }
 0x282   : > { %2428 = vst.msk [vmem:[#allocation3 + $0x60] sm:$0xf] %vm2403_vm4, %v2356_v44  ;;  %v2814_v44 = vrot.slane %v2812_v39, 4 }
 0x283   : > { %2848 = vrot.lane.b32.xlu0 %v2746_v37, %s4084_s12  ;;  %v3088_v37 = vrot.slane %v3086_v22, 4  ;;  %v2138_v22 = vld [vmem:[#allocation2 + $0xb4] sm:$0xc] }
 0x285   : > { %v2340_v18 = vpop.permute.xlu0 %2339 }
 0x286   : > { %2420 = vst.msk [vmem:[#allocation3 + $0x40] sm:$0xf] %vm2403_vm4, %v2340_v18  ;;  %3219 = vrot.lane.b32.xlu1 %v3143_v50, %s4083_s11  ;;  %v2816_v50 = vsel %vm4160_vm5, %v2814_v44, %v2815_v46 }
 0x287   : > { %3185 = vrot.lane.b32.xlu2 %v3083_v52, %s4083_s11  ;;  %v3090_v52 = vsel %vm4293_vm9, %v3088_v37, %v3089_v48  ;;  %v3007_v37 = vld [vmem:[#allocation2 + $0xd0] sm:$0xf]  ;;  %v2140_v48 = vld [vmem:[#allocation2 + $0xbc] sm:$0x3] }
 0x288   : > { %v2354_v58 = vpop.permute.xlu1 %2353 }
 0x289   : > { %2427 = vst.msk [vmem:[#allocation3 + $0x5c] sm:$0xf] %vm2403_vm4, %v2354_v58  ;;  %v5211_v61 = vpop.permute.xlu2 %2870 }
 0x28b   : > { %2545 = vrot.lane.b32.xlu0 %v2459_v62, %s4082_s10  ;;  %v2666_v62 = vld [vmem:[#allocation2 + $0xc0] sm:$0xe] }
 0x28c   : > { %v3898_v1 = vrot.slane %v2666_v62, 9 }
 0x28d   : > { %v2346_v41 = vpop.permute.xlu0 %2345 }
 0x28e   : > { %2423 = vst.msk [vmem:[#allocation3 + $0x4c] sm:$0xf] %vm2403_vm4, %v2346_v41  ;;  %2515 = vrot.lane.b32.xlu1 %v2444_v5, %s4082_s10  ;;  %v3003_v41 = vld [vmem:[#allocation2 + $0xc0] sm:$0xc]  ;;  %v3004_v5 = vld [vmem:[#allocation2 + $0xc4] sm:$0xf]  ;;  %v2813_v11 = vsel %vm4160_vm5, %v3898_v1, %v2812_v39 }
 0x28f   : > { %2882 = vrot.lane.b32.xlu2 %v2806_v10, %s4084_s12  ;;  %v2759_v10 = vrot.slane %v2644_v3, 5  ;;  %v3914_v12 = vrot.slane %v3003_v41, 10  ;;  %v3149_v13 = vrot.slane %v3004_v5, 6  ;;  %v2671_v41 = vld [vmem:[#allocation2 + $0xd4] sm:$0x1] }
 0x290   : > { %v2536_v15 = vpop.permute.xlu1 %2535 }
 0x291   : > { %2615 = vst.msk [vmem:[#allocation3 + $0x44] sm:$0xf] %vm2597_vm6, %v2536_v15  ;;  %v3210_v16 = vpop.permute.xlu2 %3209  ;;  %v3005_v15 = vld [vmem:[#allocation2 + $0xc8] sm:$0x3]  ;;  %v3150_v23 = vsel %vm4293_vm9, %v3914_v12, %v3149_v13  ;;  %v2983_v12 = vld [vmem:[#allocation2 + $0x70] sm:$0xf] }
 0x292   : > { %v3152_v56 = vrot.slane %v3005_v15, 6 }
 0x293   : > { %2884 = vrot.lane.b32.xlu0 %v2809_v24, %s4084_s12  ;;  %v3151_v24 = vrot.slane %v3149_v13, 4  ;;  %v3008_v13 = vld [vmem:[#allocation2 + $0xd4] sm:$0x3] }
 0x295   : > { %v2352_v26 = vpop.permute.xlu0 %2351  ;;  %v3153_v29 = vsel %vm4293_vm9, %v3151_v24, %v3152_v56  ;;  %v3159_v56 = vrot.slane %v3008_v13, 6 }
 0x296   : > { %2426 = vst.msk [vmem:[#allocation3 + $0x58] sm:$0xf] %vm2403_vm4, %v2352_v26  ;;  %3187 = vrot.lane.b32.xlu1 %v3087_v27, %s4083_s11 }
 0x297   : > { %3221 = vrot.lane.b32.xlu2 %v3146_v7, %s4083_s11  ;;  %v3883_v7 = vrot.slane %v2138_v22, 10  ;;  %v3100_v22 = vrot.slane %v2983_v12, 6  ;;  %v2466_v12 = vld [vmem:[#allocation2 + $0xdc] sm:$0xf] }
 0x298   : > { %v3208_v31 = vpop.permute.xlu1 %3207 }
 0x299   : > { %v2839_v33 = vpop.permute.xlu2 %2838 }
 0x29b   : > { %2513 = vrot.lane.b32.xlu0 %v2443_v45, %s4082_s10  ;;  %v2289_v45 = vsel %vm4293_vm9, %v3883_v7, %v2288_v17  ;;  %v2295_v7 = vrot.slane %v5333_v25, 6 }
 0x29d   : > { %v2534_v38 = vpop.permute.xlu0 %2533 }
 0x29e   : > { %2614 = vst.msk [vmem:[#allocation3 + $0x40] sm:$0xf] %vm2597_vm6, %v2534_v38  ;;  %2549 = vrot.lane.b32.xlu1 %v2461_v57, %s4082_s10  ;;  %v2980_v38 = vld [vmem:[#allocation2 + $0x64] sm:$0xf] }
 0x29f   : > { %2951 = vst.msk [vmem:[#allocation3 + $0x40] sm:$0xf] %vm2934_vm7, %v5211_v61  ;;  %2850 = vrot.lane.b32.xlu2 %v2750_v28, %s4084_s12  ;;  %v5265_v61 = vld [vmem:[#allocation2 + $0x64] sm:$0xf]  ;;  %v3093_v40 = vrot.slane %v2980_v38, 6 }
 0x2a0   : > { %3288 = vst.msk [vmem:[#allocation3 + $0x40] sm:$0xf] %vm3271_vm8, %v3208_v31  ;;  %v2504_v42 = vpop.permute.xlu1 %2503  ;;  %v2756_v59 = vrot.slane %v5265_v61, 5  ;;  %v2642_v31 = vld [vmem:[#allocation2 + $0x60] sm:$0xe] }
 0x2a1   : > { %2599 = vst.msk [vmem:[#allocation3 + $0x4] sm:$0xf] %vm2597_vm6, %v2504_v42  ;;  %v3178_v43 = vpop.permute.xlu2 %3177  ;;  %v3890_v19 = vrot.slane %v2642_v31, 9  ;;  %v2464_v42 = vld [vmem:[#allocation2 + $0xd0] sm:$0xf]  ;;  %v3094_v44 = vsel %vm4293_vm9, %v3906_v36, %v3093_v40  ;;  %v3095_v46 = vrot.slane %v3093_v40, 4 }
 0x2a2   : > { %v2758_v51 = vrot.slane %v2756_v59, 4  ;;  %v2143_v31 = vld [vmem:[#allocation2 + $0xc8] sm:$0x3]  ;;  %v2447_v38 = vld [vmem:[#allocation2 + $0x6c] sm:$0xf] }
 0x2a3   : > { %2852 = vrot.lane.b32.xlu0 %v2753_v47, %s4084_s12  ;;  %v2757_v28 = vsel %vm4160_vm5, %v3890_v19, %v2756_v59  ;;  %v3096_v47 = vrot.slane %v2981_v2, 6  ;;  %v2297_v19 = vrot.slane %v2295_v7, 4  ;;  %v2298_v8 = vrot.slane %v2143_v31, 6  ;;  %v2672_v36 = vld [vmem:[#allocation2 + $0xd8] sm:$0xe] }
 0x2a4   : > { %v2760_v21 = vsel %vm4160_vm5, %v2758_v51, %v2759_v10  ;;  %v2673_v40 = vld [vmem:[#allocation2 + $0xdc] sm:$0xf] }
 0x2a5   : > { %v2873_v18 = vpop.permute.xlu0 %2872  ;;  %v3097_v53 = vsel %vm4293_vm9, %v3095_v46, %v3096_v47  ;;  %v3900_v46 = vrot.slane %v2672_v36, 9  ;;  %v2826_v47 = vrot.slane %v2673_v40, 5  ;;  %v2450_v40 = vld [vmem:[#allocation2 + $0x7c] sm:$0xf] }
 0x2a6   : > { %2952 = vst.msk [vmem:[#allocation3 + $0x44] sm:$0xf] %vm2934_vm7, %v2873_v18  ;;  %2888 = vrot.lane.b32.xlu1 %v2816_v50, %s4084_s12 }
 0x2a7   : > { %3289 = vst.msk [vmem:[#allocation3 + $0x44] sm:$0xf] %vm3271_vm8, %v3210_v16  ;;  %3189 = vrot.lane.b32.xlu2 %v3090_v52, %s4083_s11  ;;  %v3156_v52 = vrot.slane %v3007_v37, 6  ;;  %v2984_v37 = vld [vmem:[#allocation2 + $0x74] sm:$0x3]  ;;  %v2828_v13 = vrot.slane %v2826_v47, 4 }
 0x2a8   : > { %v3176_v55 = vpop.permute.xlu1 %3175 }
 0x2a9   : > { %v2875_v58 = vpop.permute.xlu2 %2874  ;;  %v3158_v24 = vrot.slane %v3156_v52, 4 }
 0x2ab   : > { %2357 = vrot.lane.b32.xlu0 %v2285_v60, %s4081_s9  ;;  %v3160_v17 = vsel %vm4293_vm9, %v3158_v24, %v3159_v56  ;;  %v2986_v24 = vld [vmem:[#allocation2 + $0x7c] sm:$0xf] }
 0x2ad   : > { %v2502_v63 = vpop.permute.xlu0 %2501 }
 0x2ae   : > { %2598 = vst.msk [vmem:[#allocation3] sm:$0xf] %vm2597_vm6, %v2502_v63  ;;  %2517 = vrot.lane.b32.xlu1 %v2445_v0, %s4082_s10  ;;  %v4034_v14 = vld [vmem:[#allocation3 + $0x40] sm:$0xff]  ;;  %v2669_v63 = vld [vmem:[#allocation2 + $0xcc] sm:$0xe] }
 0x2af   : > { %2935 = vst.msk [vmem:[#allocation3] sm:$0xf] %vm2934_vm7, %v2839_v33  ;;  %2551 = vrot.lane.b32.xlu2 %v2462_v20, %s4082_s10  ;;  %3998 = vmatmul.msk.bf16.vlgmr.msra.gmra.mxu2 %vm3440_vm10, %v4034_v14  ;;  %v2670_v0 = vld [vmem:[#allocation2 + $0xd0] sm:$0xf]  ;;  %v2463_v14 = vld [vmem:[#allocation2 + $0xcc] sm:$0xf] }
 0x2b0   : > { %3272 = vst.msk [vmem:[#allocation3] sm:$0xf] %vm3271_vm8, %v3176_v55  ;;  %v2540_v6 = vpop.permute.xlu1 %2539  ;;  %v2291_v55 = vrot.slane %v2140_v48, 6  ;;  %v3899_v1 = vrot.slane %v2669_v63, 9  ;;  %v2819_v3 = vrot.slane %v2670_v0, 5 }
 0x2b1   : > { %2617 = vst.msk [vmem:[#allocation3 + $0x4c] sm:$0xf] %vm2597_vm6, %v2540_v6  ;;  %v3214_v4 = vpop.permute.xlu2 %3213  ;;  %v2448_v6 = vld [vmem:[#allocation2 + $0x70] sm:$0xf] }
 0x2b2   : > { %v2292_v61 = vsel %vm4293_vm9, %v2290_v54, %v2291_v55  ;;  %v2820_v51 = vsel %vm4160_vm5, %v3899_v1, %v2819_v3  ;;  %v2821_v10 = vrot.slane %v2819_v3, 4  ;;  %v2827_v54 = vsel %vm4160_vm5, %v3900_v46, %v2826_v47  ;;  %v2141_v55 = vld [vmem:[#allocation2 + $0xc0] sm:$0xc]  ;;  %v2677_v46 = vld [vmem:[#allocation2 + $0xec] sm:$0x1] }
 0x2b3   : > { %2886 = vrot.lane.b32.xlu0 %v2813_v11, %s4084_s12  ;;  %v2822_v11 = vrot.slane %v2671_v41, 5  ;;  %v3884_v0 = vrot.slane %v2141_v55, 10 }
 0x2b5   : > { %v2841_v16 = vpop.permute.xlu0 %2840  ;;  %v2296_v3 = vsel %vm4293_vm9, %v3884_v0, %v2295_v7  ;;  %v3107_v7 = vrot.slane %v2986_v24, 6 }
 0x2b6   : > { %2936 = vst.msk [vmem:[#allocation3 + $0x4] sm:$0xf] %vm2934_vm7, %v2841_v16  ;;  %2856 = vrot.lane.b32.xlu1 %v2760_v21, %s4084_s12 }
 0x2b7   : > { %3273 = vst.msk [vmem:[#allocation3 + $0x4] sm:$0xf] %vm3271_vm8, %v3178_v43  ;;  %3223 = vrot.lane.b32.xlu2 %v3150_v23, %s4083_s11  ;;  %v3006_v43 = vld [vmem:[#allocation2 + $0xcc] sm:$0xc]  ;;  %v2823_v23 = vsel %vm4160_vm5, %v2821_v10, %v2822_v11  ;;  %v2649_v10 = vld [vmem:[#allocation2 + $0x7c] sm:$0xf] }
 0x2b8   : > { %v3212_v26 = vpop.permute.xlu1 %3211  ;;  %v3915_v50 = vrot.slane %v3006_v43, 10 }
 0x2b9   : > { %v2843_v27 = vpop.permute.xlu2 %2842 }
 0x2ba   : > { %v3157_v60 = vsel %vm4293_vm9, %v3915_v50, %v3156_v52  ;;  %v3102_v52 = vrot.slane %v3100_v22, 4 }
 0x2bb   : > { %3225 = vrot.lane.b32.xlu0 %v3153_v29, %s4083_s11 }
 0x2bd   : > { %v2538_v33 = vpop.permute.xlu0 %2537 }
 0x2be   : > { %2616 = vst.msk [vmem:[#allocation3 + $0x48] sm:$0xf] %vm2597_vm6, %v2538_v33  ;;  %2359 = vrot.lane.b32.xlu1 %v2289_v45, %s4081_s9  ;;  %v4026_v35 = vld [vmem:[#allocation3] sm:$0xff]  ;;  %v2645_v33 = vld [vmem:[#allocation2 + $0x6c] sm:$0xe] }
 0x2bf   : > { %2953 = vst.msk [vmem:[#allocation3 + $0x48] sm:$0xf] %vm2934_vm7, %v2875_v58  ;;  %2519 = vrot.lane.b32.xlu2 %v2446_v34, %s4082_s10  ;;  %3990 = vmatmul.msk.bf16.vlgmr.msra.gmra.mxu1 %vm3440_vm10, %v4026_v35  ;;  %v2646_v45 = vld [vmem:[#allocation2 + $0x70] sm:$0xf] }
 0x2c0   : > { %3290 = vst.msk [vmem:[#allocation3 + $0x48] sm:$0xf] %vm3271_vm8, %v3212_v26  ;;  %v2508_v57 = vpop.permute.xlu1 %2507 }
 0x2c1   : > { %2601 = vst.msk [vmem:[#allocation3 + $0xc] sm:$0xf] %vm2597_vm6, %v2508_v57  ;;  %v3182_v39 = vpop.permute.xlu2 %3181  ;;  %v3891_v57 = vrot.slane %v2645_v33, 9 }
 0x2c3   : > { %2854 = vrot.lane.b32.xlu0 %v2757_v28, %s4084_s12  ;;  %v2647_v28 = vld [vmem:[#allocation2 + $0x74] sm:$0x1] }
 0x2c5   : > { %v2877_v30 = vpop.permute.xlu0 %2876 }
 0x2c6   : > { %2954 = vst.msk [vmem:[#allocation3 + $0x4c] sm:$0xf] %vm2934_vm7, %v2877_v30  ;;  %2555 = vrot.lane.b32.xlu1 %v2464_v42, %s4082_s10  ;;  %v2299_v30 = vsel %vm4293_vm9, %v2297_v19, %v2298_v8 }
 0x2c7   : > { %3291 = vst.msk [vmem:[#allocation3 + $0x4c] sm:$0xf] %vm3271_vm8, %v3214_v4  ;;  %3191 = vrot.lane.b32.xlu2 %v3094_v44, %s4083_s11  ;;  %v2982_v4 = vld [vmem:[#allocation2 + $0x6c] sm:$0xc]  ;;  %v2766_v44 = vrot.slane %v2647_v28, 5 }
 0x2c8   : > { %v3180_v49 = vpop.permute.xlu1 %3179  ;;  %v3907_v21 = vrot.slane %v2982_v4, 10  ;;  %v2674_v4 = vld [vmem:[#allocation2 + $0xe0] sm:$0x1]  ;;  %v5409_v28 = vld [vmem:[#allocation2 + $0xe8] sm:$0xf] }
 0x2c9   : > { %v2879_v18 = vpop.permute.xlu2 %2878 }
 0x2cb   : > { %3193 = vrot.lane.b32.xlu0 %v3097_v53, %s4083_s11  ;;  %v3103_v53 = vrot.slane %v2984_v37, 6 }
 0x2cd   : > { %v2506_v58 = vpop.permute.xlu0 %2505 }
 0x2ce   : > { %2600 = vst.msk [vmem:[#allocation3 + $0x8] sm:$0xf] %vm2597_vm6, %v2506_v58  ;;  %3227 = vrot.lane.b32.xlu1 %v3157_v60, %s4083_s11  ;;  %v4035_v62 = vld [vmem:[#allocation3 + $0x48] sm:$0xff]  ;;  %v3011_v60 = vld [vmem:[#allocation2 + $0xe0] sm:$0x3] }
 0x2cf   : > { %2937 = vst.msk [vmem:[#allocation3 + $0x8] sm:$0xf] %vm2934_vm7, %v2843_v27  ;;  %2361 = vrot.lane.b32.xlu2 %v2292_v61, %s4081_s9  ;;  %3999 = vmatmul.msk.bf16.gmra.mxu2 %vm3440_vm10, %v4035_v62  ;;  %v3101_v27 = vsel %vm4293_vm9, %v3907_v21, %v3100_v22  ;;  %v3104_v62 = vsel %vm4293_vm9, %v3102_v52, %v3103_v53  ;;  %v2770_v22 = vrot.slane %v2649_v10, 5  ;;  %v2836_v52 = vrot.slane %v2677_v46, 5  ;;  %v2145_v53 = vld [vmem:[#allocation2 + $0xd0] sm:$0xf] }
 0x2d0   : > { %3274 = vst.msk [vmem:[#allocation3 + $0x8] sm:$0xf] %vm3271_vm8, %v3180_v49  ;;  %v2544_v20 = vpop.permute.xlu1 %2543  ;;  %v5359_v49 = vld [vmem:[#allocation2 + $0xdc] sm:$0xf] }
 0x2d1   : > { %2619 = vst.msk [vmem:[#allocation3 + $0x54] sm:$0xf] %vm2597_vm6, %v2544_v20  ;;  %v3218_v59 = vpop.permute.xlu2 %3217  ;;  %v3163_v58 = vrot.slane %v5359_v49, 6 }
 0x2d3   : > { %2553 = vrot.lane.b32.xlu0 %v2463_v14, %s4082_s10  ;;  %v3165_v20 = vrot.slane %v3163_v58, 4 }
 0x2d5   : > { %v2845_v5 = vpop.permute.xlu0 %2844 }
 0x2d6   : > { %2938 = vst.msk [vmem:[#allocation3 + $0xc] sm:$0xf] %vm2934_vm7, %v2845_v5  ;;  %2523 = vrot.lane.b32.xlu1 %v2448_v6, %s4082_s10  ;;  %v2465_v5 = vld [vmem:[#allocation2 + $0xd8] sm:$0xf] }
 0x2d7   : > { %3275 = vst.msk [vmem:[#allocation3 + $0xc] sm:$0xf] %vm3271_vm8, %v3182_v39  ;;  %2890 = vrot.lane.b32.xlu2 %v2820_v51, %s4084_s12  ;;  %v2763_v39 = vrot.slane %v2646_v45, 5  ;;  %v2648_v51 = vld [vmem:[#allocation2 + $0x78] sm:$0xe] }
 0x2d8   : > { %v3216_v15 = vpop.permute.xlu1 %3215  ;;  %v3892_v21 = vrot.slane %v2648_v51, 9  ;;  %v2468_v51 = vld [vmem:[#allocation2 + $0xe8] sm:$0xf] }
 0x2d9   : > { %v5329_v16 = vpop.permute.xlu2 %2846  ;;  %v2764_v42 = vsel %vm4160_vm5, %v3891_v57, %v2763_v39  ;;  %v2765_v43 = vrot.slane %v2763_v39, 4  ;;  %v2650_v57 = vld [vmem:[#allocation2 + $0x80] sm:$0x1] }
 0x2db   : > { %2892 = vrot.lane.b32.xlu0 %v2823_v23, %s4084_s12  ;;  %v2767_v50 = vsel %vm4160_vm5, %v2765_v43, %v2766_v44  ;;  %v3009_v23 = vld [vmem:[#allocation2 + $0xd8] sm:$0xc]  ;;  %v2833_v44 = vrot.slane %v5409_v28, 5  ;;  %v2988_v28 = vld [vmem:[#allocation2 + $0x84] sm:$0xc] }
 0x2dc   : > { %v3916_v25 = vrot.slane %v3009_v23, 10  ;;  %v2985_v43 = vld [vmem:[#allocation2 + $0x78] sm:$0xc] }
 0x2dd   : > { %v2542_v26 = vpop.permute.xlu0 %2541  ;;  %v3908_v49 = vrot.slane %v2985_v43, 10  ;;  %v3909_v43 = vrot.slane %v2988_v28, 10 }
 0x2de   : > { %2618 = vst.msk [vmem:[#allocation3 + $0x50] sm:$0xf] %vm2597_vm6, %v2542_v26  ;;  %3195 = vrot.lane.b32.xlu1 %v3101_v27, %s4083_s11  ;;  %v4027_v29 = vld [vmem:[#allocation3 + $0x8] sm:$0xff]  ;;  %v2771_v27 = vsel %vm4160_vm5, %v3892_v21, %v2770_v22  ;;  %v3164_v33 = vsel %vm4293_vm9, %v3916_v25, %v3163_v58  ;;  %v2653_v21 = vld [vmem:[#allocation2 + $0x8c] sm:$0x1] }
 0x2df   : > { %2955 = vst.msk [vmem:[#allocation3 + $0x50] sm:$0xf] %vm2934_vm7, %v2879_v18  ;;  %3229 = vrot.lane.b32.xlu2 %v3160_v17, %s4083_s11  ;;  %3991 = vmatmul.msk.bf16.gmra.mxu1 %vm3440_vm10, %v4027_v29  ;;  %v2987_v29 = vld [vmem:[#allocation2 + $0x80] sm:$0x3]  ;;  %v3108_v58 = vsel %vm4293_vm9, %v3908_v49, %v3107_v7 }
 0x2e0   : > { %3292 = vst.msk [vmem:[#allocation3 + $0x50] sm:$0xf] %vm3271_vm8, %v3216_v15  ;;  %v2512_v34 = vpop.permute.xlu1 %2511  ;;  %v2829_v15 = vrot.slane %v2674_v4, 5  ;;  %v2451_v4 = vld [vmem:[#allocation2 + $0x84] sm:$0xf] }
 0x2e1   : > { %2603 = vst.msk [vmem:[#allocation3 + $0x14] sm:$0xf] %vm2597_vm6, %v2512_v34  ;;  %v3186_v35 = vpop.permute.xlu2 %3185  ;;  %v3109_v34 = vrot.slane %v3107_v7, 4  ;;  %v3014_v7 = vld [vmem:[#allocation2 + $0xec] sm:$0x3] }
 0x2e2   : > { %v2830_v56 = vsel %vm4160_vm5, %v2828_v13, %v2829_v15  ;;  %v3012_v13 = vld [vmem:[#allocation2 + $0xe4] sm:$0xc]  ;;  %v3013_v15 = vld [vmem:[#allocation2 + $0xe8] sm:$0xf] }
 0x2e3   : > { %2521 = vrot.lane.b32.xlu0 %v2447_v38, %s4082_s10  ;;  %v2449_v38 = vld [vmem:[#allocation2 + $0x78] sm:$0xf]  ;;  %v3917_v24 = vrot.slane %v3012_v13, 10 }
 0x2e5   : > { %v2881_v2 = vpop.permute.xlu0 %2880 }
 0x2e6   : > { %2956 = vst.msk [vmem:[#allocation3 + $0x54] sm:$0xf] %vm2934_vm7, %v2881_v2  ;;  %2365 = vrot.lane.b32.xlu1 %v2299_v30, %s4081_s9  ;;  %v2772_v2 = vrot.slane %v2770_v22, 4  ;;  %v2773_v30 = vrot.slane %v2650_v57, 5  ;;  %v2452_v57 = vld [vmem:[#allocation2 + $0x88] sm:$0xf] }
 0x2e7   : > { %3293 = vst.msk [vmem:[#allocation3 + $0x54] sm:$0xf] %vm3271_vm8, %v3218_v59  ;;  %2858 = vrot.lane.b32.xlu2 %v2764_v42, %s4084_s12  ;;  %v3166_v59 = vrot.slane %v3011_v60, 6  ;;  %v2467_v42 = vld [vmem:[#allocation2 + $0xe4] sm:$0xf] }
 0x2e8   : > { %v3184_v48 = vpop.permute.xlu1 %3183  ;;  %v2774_v37 = vsel %vm4160_vm5, %v2772_v2, %v2773_v30  ;;  %v5465_v2 = vld [vmem:[%s5638_s4] ss:$0 sm:$0xff] }
 0x2e9   : > { %v2883_v18 = vpop.permute.xlu2 %2882  ;;  %v3167_v41 = vsel %vm4293_vm9, %v3165_v20, %v3166_v59 }
 0x2eb   : > { %2860 = vrot.lane.b32.xlu0 %v2767_v50, %s4084_s12  ;;  %v2835_v50 = vrot.slane %v2833_v44, 4 }
 0x2ed   : > { %v2510_v61 = vpop.permute.xlu0 %2509 }
 0x2ee   : > { %2602 = vst.msk [vmem:[#allocation3 + $0x10] sm:$0xf] %vm2597_vm6, %v2510_v61  ;;  %2894 = vrot.lane.b32.xlu1 %v2827_v54, %s4084_s12  ;;  %v4036_v63 = vld [vmem:[#allocation3 + $0x50] sm:$0xff]  ;;  %v2302_v61 = vrot.slane %v2145_v53, 6 }
 0x2ef   : > { %2939 = vst.msk [vmem:[#allocation3 + $0x10] sm:$0xf] %vm2934_vm7, %v5329_v16  ;;  %3197 = vrot.lane.b32.xlu2 %v3104_v62, %s4083_s11  ;;  %4000 = vmatmul.msk.bf16.gmra.mxu2 %vm3440_vm10, %v4036_v63  ;;  %v2837_v62 = vsel %vm4160_vm5, %v2835_v50, %v2836_v52  ;;  %v2146_v63 = vld [vmem:[#allocation2 + $0xd4] sm:$0x3] }
 0x2f0   : > { %3276 = vst.msk [vmem:[#allocation3 + $0x10] sm:$0xf] %vm3271_vm8, %v3184_v48  ;;  %v2548_v14 = vpop.permute.xlu1 %2547  ;;  %v2304_v59 = vrot.slane %v2302_v61, 4 }
 0x2f1   : > { %2621 = vst.msk [vmem:[#allocation3 + $0x5c] sm:$0xf] %vm2597_vm6, %v2548_v14  ;;  %v3222_v1 = vpop.permute.xlu2 %3221  ;;  %v2305_v14 = vrot.slane %v2146_v63, 6 }
 0x2f3   : > { %2363 = vrot.lane.b32.xlu0 %v2296_v3, %s4081_s9 }
 0x2f5   : > { %v2849_v6 = vpop.permute.xlu0 %2848 }
 0x2f6   : > { %2940 = vst.msk [vmem:[#allocation3 + $0x14] sm:$0xf] %vm2934_vm7, %v2849_v6  ;;  %3233 = vrot.lane.b32.xlu1 %v3167_v41, %s4083_s11  ;;  %v2675_v41 = vld [vmem:[#allocation2 + $0xe4] sm:$0xe]  ;;  %v2652_v6 = vld [vmem:[#allocation2 + $0x88] sm:$0xf] }
 0x2f7   : > { %3277 = vst.msk [vmem:[#allocation3 + $0x14] sm:$0xf] %vm3271_vm8, %v3186_v35  ;;  %2557 = vrot.lane.b32.xlu2 %v2465_v5, %s4082_s10  ;;  %v3110_v35 = vrot.slane %v2987_v29, 6  ;;  %v2306_v5 = vsel %vm4293_vm9, %v2304_v59, %v2305_v14  ;;  %v3901_v10 = vrot.slane %v2675_v41, 9 }
 0x2f8   : > { %v3220_v11 = vpop.permute.xlu1 %3219 }
 0x2f9   : > { %v2851_v16 = vpop.permute.xlu2 %2850  ;;  %v3111_v8 = vsel %vm4293_vm9, %v3109_v34, %v3110_v35  ;;  %v2834_v23 = vsel %vm4160_vm5, %v3901_v10, %v2833_v44 }
 0x2fb   : > { %2559 = vrot.lane.b32.xlu0 %v2466_v12, %s4082_s10  ;;  %v2777_v12 = vrot.slane %v2652_v6, 5 }
 0x2fd   : > { %v2546_v26 = vpop.permute.xlu0 %2545 }
 0x2fe   : > { %2620 = vst.msk [vmem:[#allocation3 + $0x58] sm:$0xf] %vm2597_vm6, %v2546_v26  ;;  %2862 = vrot.lane.b32.xlu1 %v2771_v27, %s4084_s12  ;;  %v4028_v17 = vld [vmem:[#allocation3 + $0x10] sm:$0xff]  ;;  %v2779_v26 = vrot.slane %v2777_v12, 4  ;;  %v2780_v27 = vrot.slane %v2653_v21, 5 }
 0x2ff   : > { %2957 = vst.msk [vmem:[#allocation3 + $0x58] sm:$0xf] %vm2934_vm7, %v2883_v18  ;;  %2896 = vrot.lane.b32.xlu2 %v2830_v56, %s4084_s12  ;;  %3992 = vmatmul.msk.bf16.gmra.mxu1 %vm3440_vm10, %v4028_v17  ;;  %v2144_v18 = vld [vmem:[#allocation2 + $0xcc] sm:$0xc]  ;;  %v3170_v56 = vrot.slane %v3013_v15, 6 }
 0x300   : > { %3294 = vst.msk [vmem:[#allocation3 + $0x58] sm:$0xf] %vm3271_vm8, %v3220_v11  ;;  %v2516_v31 = vpop.permute.xlu1 %2515  ;;  %v3885_v60 = vrot.slane %v2144_v18, 10 }
 0x301   : > { %2605 = vst.msk [vmem:[#allocation3 + $0x1c] sm:$0xf] %vm2597_vm6, %v2516_v31  ;;  %v3190_v45 = vpop.permute.xlu2 %3189  ;;  %v3171_v17 = vsel %vm4293_vm9, %v3917_v24, %v3170_v56  ;;  %v3172_v29 = vrot.slane %v3170_v56, 4  ;;  %v3173_v31 = vrot.slane %v3014_v7, 6 }
 0x302   : > { %v2303_v20 = vsel %vm4293_vm9, %v3885_v60, %v2302_v61 }
 0x303   : > { %3231 = vrot.lane.b32.xlu0 %v3164_v33, %s4083_s11  ;;  %v3174_v35 = vsel %vm4293_vm9, %v3172_v29, %v3173_v31 }
 0x305   : > { %v2885_v19 = vpop.permute.xlu0 %2884 }
 0x306   : > { %2958 = vst.msk [vmem:[#allocation3 + $0x5c] sm:$0xf] %vm2934_vm7, %v2885_v19  ;;  %3201 = vrot.lane.b32.xlu1 %v3111_v8, %s4083_s11  ;;  %v2651_v8 = vld [vmem:[#allocation2 + $0x84] sm:$0xe] }
 0x307   : > { %3295 = vst.msk [vmem:[#allocation3 + $0x5c] sm:$0xf] %vm3271_vm8, %v3222_v1  ;;  %2525 = vrot.lane.b32.xlu2 %v2449_v38, %s4082_s10 }
 0x308   : > { %v3188_v39 = vpop.permute.xlu1 %3187 }
 0x309   : > { %v2552_v36 = vpop.permute.xlu2 %2551 }
 0x30b   : > { %2527 = vrot.lane.b32.xlu0 %v2450_v40, %s4082_s10 }
 0x30d   : > { %v2514_v47 = vpop.permute.xlu0 %2513 }
 0x30e   : > { %2604 = vst.msk [vmem:[#allocation3 + $0x18] sm:$0xf] %vm2597_vm6, %v2514_v47  ;;  %2561 = vrot.lane.b32.xlu1 %v2467_v42, %s4082_s10  ;;  %v4037_v48 = vld [vmem:[#allocation3 + $0x58] sm:$0xff] }
 0x30f   : > { %2941 = vst.msk [vmem:[#allocation3 + $0x18] sm:$0xf] %vm2934_vm7, %v2851_v16  ;;  %2864 = vrot.lane.b32.xlu2 %v2774_v37, %s4084_s12  ;;  %4001 = vmatmul.msk.bf16.gmra.mxu2 %vm3440_vm10, %v4037_v48  ;;  %v2990_v47 = vld [vmem:[#allocation2 + $0x8c] sm:$0x3] }
 0x310   : > { %3278 = vst.msk [vmem:[#allocation3 + $0x18] sm:$0xf] %vm3271_vm8, %v3188_v39  ;;  %v2550_v54 = vpop.permute.xlu1 %2549  ;;  %v3893_v39 = vrot.slane %v2651_v8, 9  ;;  %v3117_v53 = vrot.slane %v2990_v47, 6 }
 0x311   : > { %2622 = vst.msk [vmem:[#allocation3 + $0x60] sm:$0xf] %vm2597_vm6, %v2550_v54  ;;  %v3224_v55 = vpop.permute.xlu2 %3223 }
 0x312   : > { %v2778_v42 = vsel %vm4160_vm5, %v3893_v39, %v2777_v12 }
 0x313   : > { %3199 = vrot.lane.b32.xlu0 %v3108_v58, %s4083_s11 }
 0x315   : > { %v2853_v0 = vpop.permute.xlu0 %2852 }
 0x316   : > { %2942 = vst.msk [vmem:[#allocation3 + $0x1c] sm:$0xf] %vm2934_vm7, %v2853_v0  ;;  %2900 = vrot.lane.b32.xlu1 %v2837_v62, %s4084_s12 }
 0x317   : > { %3279 = vst.msk [vmem:[#allocation3 + $0x1c] sm:$0xf] %vm3271_vm8, %v3190_v45  ;;  %2367 = vrot.lane.b32.xlu2 %v2303_v20, %s4081_s9  ;;  %v2781_v45 = vsel %vm4160_vm5, %v2779_v26, %v2780_v27 }
 0x318   : > { %v2889_v1 = vpop.permute.xlu1 %2888 }
 0x319   : > { %v2520_v3 = vpop.permute.xlu2 %2519 }
 0x31a   : > { %2607 = vst.msk [vmem:[#allocation3 + $0x24] sm:$0xf] %vm2597_vm6, %v2520_v3 }
 0x31b   : > { %2369 = vrot.lane.b32.xlu0 %v2306_v5, %s4081_s9 }
 0x31d   : > { %v2358_v11 = vpop.permute.xlu0 %2357 }
 0x31e   : > { %2429 = vst.msk [vmem:[#allocation3 + $0x64] sm:$0xf] %vm2403_vm4, %v2358_v11  ;;  %2529 = vrot.lane.b32.xlu1 %v2451_v4, %s4082_s10  ;;  %v4029_v16 = vld [vmem:[#allocation3 + $0x18] sm:$0xff] }
 0x31f   : > { %2623 = vst.msk [vmem:[#allocation3 + $0x64] sm:$0xf] %vm2597_vm6, %v2552_v36  ;;  %2563 = vrot.lane.b32.xlu2 %v2468_v51, %s4082_s10  ;;  %3993 = vmatmul.msk.bf16.gmra.mxu1 %vm3440_vm10, %v4029_v16  ;;  %v2989_v36 = vld [vmem:[#allocation2 + $0x88] sm:$0xf] }
 0x320   : > { %2960 = vst.msk [vmem:[#allocation3 + $0x64] sm:$0xf] %vm2934_vm7, %v2889_v1  ;;  %v2518_v22 = vpop.permute.xlu1 %2517  ;;  %v3114_v44 = vrot.slane %v2989_v36, 6 }
 0x321   : > { %2606 = vst.msk [vmem:[#allocation3 + $0x20] sm:$0xf] %vm2597_vm6, %v2518_v22  ;;  %v3192_v25 = vpop.permute.xlu2 %3191 }
 0x322   : > { %v3115_v50 = vsel %vm4293_vm9, %v3909_v43, %v3114_v44  ;;  %v3116_v52 = vrot.slane %v3114_v44, 4 }
 0x323   : > { %2898 = vrot.lane.b32.xlu0 %v2834_v23, %s4084_s12 }
 0x324   : > { %v3118_v58 = vsel %vm4293_vm9, %v3116_v52, %v3117_v53 }
 0x325   : > { %v2887_v33 = vpop.permute.xlu0 %2886 }
 0x326   : > { %2959 = vst.msk [vmem:[#allocation3 + $0x60] sm:$0xf] %vm2934_vm7, %v2887_v33  ;;  %2868 = vrot.lane.b32.xlu1 %v2781_v45, %s4084_s12 }
 0x327   : > { %3296 = vst.msk [vmem:[#allocation3 + $0x60] sm:$0xf] %vm3271_vm8, %v3224_v55  ;;  %3235 = vrot.lane.b32.xlu2 %v3171_v17, %s4083_s11 }
 0x328   : > { %v2857_v34 = vpop.permute.xlu1 %2856 }
 0x329   : > { %2944 = vst.msk [vmem:[#allocation3 + $0x24] sm:$0xf] %vm2934_vm7, %v2857_v34  ;;  %v2362_v19 = vpop.permute.xlu2 %2361 }
 0x32a   : > { %2431 = vst.msk [vmem:[#allocation3 + $0x6c] sm:$0xf] %vm2403_vm4, %v2362_v19 }
 0x32b   : > { %3237 = vrot.lane.b32.xlu0 %v3174_v35, %s4083_s11 }
 0x32d   : > { %v3226_v38 = vpop.permute.xlu0 %3225 }
 0x32e   : > { %3297 = vst.msk [vmem:[#allocation3 + $0x64] sm:$0xf] %vm3271_vm8, %v3226_v38 }
 0x32f   : > { %2531 = vrot.lane.b32.xlu2 %v2452_v57, %s4082_s10 }
 0x330   : > { %v2360_v40 = vpop.permute.xlu1 %2359 }
 0x331   : > { %2430 = vst.msk [vmem:[#allocation3 + $0x68] sm:$0xf] %vm2403_vm4, %v2360_v40  ;;  %v2891_v30 = vpop.permute.xlu2 %2890 }
 0x332   : > { %v3542_v46 = vpop.f32.mrf.mxu2 }
 0x333   : > { %2866 = vrot.lane.b32.xlu0 %v2778_v42, %s4084_s12  ;;  %v3543_v37 = vadd.f32 %v5465_v2, %v3542_v46 }
 0x335   : > { %v2855_v48 = vpop.permute.xlu0 %2854  ;;  %v4038_v49 = vld [vmem:[#allocation3 + $0x60] sm:$0xff]  ;;  %v3598_v18 = vmax.f32 %v3543_v37, 0.0 }
 0x336   : > { %2943 = vst.msk [vmem:[#allocation3 + $0x20] sm:$0xf] %vm2934_vm7, %v2855_v48  ;;  %4002 = vmatmul.msk.bf16.gmra.mxu2 %vm3440_vm10, %v4038_v49 }
 0x337   : > { %3280 = vst.msk [vmem:[#allocation3 + $0x20] sm:$0xf] %vm3271_vm8, %v3192_v25  ;;  %3203 = vrot.lane.b32.xlu2 %v3115_v50, %s4083_s11  ;;  %v3630_v9 = vpack.c.bf16 %v3598_v18, %v3598_v18 }
 0x338   : > { %v2556_v54 = vpop.permute.xlu1 %2555 }
 0x339   : > { %2625 = vst.msk [vmem:[#allocation3 + $0x6c] sm:$0xf] %vm2597_vm6, %v2556_v54  ;;  %v3230_v55 = vpop.permute.xlu2 %3229 }
 0x33a   : > { %3662 = vst.msk [vmem:[%s5480_s26 + $0x40] sm:$0xf] %vm517_vm2, %v3630_v9  ;;  %v3544_v60 = vpop.f32.mrf.mxu2 }
 0x33b   : > { %3205 = vrot.lane.b32.xlu0 %v3118_v58, %s4083_s11  ;;  %v3545_v61 = vadd.f32 %v5465_v2, %v3544_v60 }
 0x33c   : > { %v3502_v63 = vpop.f32.mrf.mxu1 }
 0x33d   : > { %v3194_v62 = vpop.permute.xlu0 %3193  ;;  %v3599_v0 = vmax.f32 %v3545_v61, 0.0  ;;  %v3503_v20 = vadd.f32 %v5465_v2, %v3502_v63 }
 0x33e   : > { %3281 = vst.msk [vmem:[#allocation3 + $0x24] sm:$0xf] %vm3271_vm8, %v3194_v62 }
 0x33f   : > { %v3631_v59 = vpack.c.bf16 %v3599_v0, %v3599_v0  ;;  %v3582_v14 = vmax.f32 %v3503_v20, 0.0 }
 0x340   : > { %v3228_v1 = vpop.permute.xlu1 %3227 }
 0x341   : > { %v2859_v3 = vpop.permute.xlu2 %2858  ;;  %3663 = vst.msk [vmem:[%s5480_s26 + $0x44] sm:$0xf] %vm517_vm2, %v3631_v59  ;;  %v3614_v32 = vpack.c.bf16 %v3582_v14, %v3582_v14 }
 0x343   : > { %3646 = vst.msk [vmem:[%s5480_s26] sm:$0xf] %vm517_vm2, %v3614_v32 }
 0x344   : > { %v3504_v5 = vpop.f32.mrf.mxu1 }
 0x345   : > { %v2554_v41 = vpop.permute.xlu0 %2553  ;;  %v4030_v6 = vld [vmem:[#allocation3 + $0x20] sm:$0xff]  ;;  %v3505_v4 = vadd.f32 %v5465_v2, %v3504_v5 }
 0x346   : > { %2624 = vst.msk [vmem:[#allocation3 + $0x68] sm:$0xf] %vm2597_vm6, %v2554_v41  ;;  %3994 = vmatmul.msk.bf16.gmra.mxu1 %vm3440_vm10, %v4030_v6 }
 0x347   : > { %2961 = vst.msk [vmem:[#allocation3 + $0x68] sm:$0xf] %vm2934_vm7, %v2891_v30  ;;  %v3583_v51 = vmax.f32 %v3505_v4, 0.0 }
 0x348   : > { %3298 = vst.msk [vmem:[#allocation3 + $0x68] sm:$0xf] %vm3271_vm8, %v3228_v1  ;;  %v2524_v10 = vpop.permute.xlu1 %2523 }
 0x349   : > { %2609 = vst.msk [vmem:[#allocation3 + $0x2c] sm:$0xf] %vm2597_vm6, %v2524_v10  ;;  %v3198_v11 = vpop.permute.xlu2 %3197  ;;  %v3615_v12 = vpack.c.bf16 %v3583_v51, %v3583_v51 }
 0x34b   : > { %3647 = vst.msk [vmem:[%s5480_s26 + $0x4] sm:$0xf] %vm517_vm2, %v3615_v12 }
 0x34d   : > { %v2893_v13 = vpop.permute.xlu0 %2892 }
 0x34e   : > { %2962 = vst.msk [vmem:[#allocation3 + $0x6c] sm:$0xf] %vm2934_vm7, %v2893_v13 }
 0x34f   : > { %3299 = vst.msk [vmem:[#allocation3 + $0x6c] sm:$0xf] %vm3271_vm8, %v3230_v55 }
 0x350   : > { %v3196_v15 = vpop.permute.xlu1 %3195 }
 0x351   : > { %v2558_v16 = vpop.permute.xlu2 %2557 }
 0x352   : > { %v3547_v21 = vpop.f32.mrf.mxu2 }
 0x353   : > { %v3548_v22 = vadd.f32 %v5465_v2, %v3547_v21 }
 0x355   : > { %v2522_v23 = vpop.permute.xlu0 %2521  ;;  %v3600_v24 = vmax.f32 %v3548_v22, 0.0 }
 0x356   : > { %2608 = vst.msk [vmem:[#allocation3 + $0x28] sm:$0xf] %vm2597_vm6, %v2522_v23  ;;  %v4039_v56 = vld [vmem:[#allocation3 + $0x68] sm:$0xff] }
 0x357   : > { %2945 = vst.msk [vmem:[#allocation3 + $0x28] sm:$0xf] %vm2934_vm7, %v2859_v3  ;;  %v3632_v25 = vpack.c.bf16 %v3600_v24, %v3600_v24  ;;  %4003 = vmatmul.msk.bf16.gmra.mxu2 %vm3440_vm10, %v4039_v56 }
 0x358   : > { %3282 = vst.msk [vmem:[#allocation3 + $0x28] sm:$0xf] %vm3271_vm8, %v3196_v15  ;;  %v2366_v26 = vpop.permute.xlu1 %2365 }
 0x359   : > { %2433 = vst.msk [vmem:[#allocation3 + $0x74] sm:$0xf] %vm2403_vm4, %v2366_v26  ;;  %v2897_v27 = vpop.permute.xlu2 %2896 }
 0x35a   : > { %3664 = vst.msk [vmem:[%s5480_s26 + $0x48] sm:$0xf] %vm517_vm2, %v3632_v25  ;;  %v3549_v7 = vpop.f32.mrf.mxu2 }
 0x35b   : > { %v3550_v17 = vadd.f32 %v5465_v2, %v3549_v7 }
 0x35c   : > { %v3507_v31 = vpop.f32.mrf.mxu1 }
 0x35d   : > { %v2861_v29 = vpop.permute.xlu0 %2860  ;;  %v3601_v33 = vmax.f32 %v3550_v17, 0.0  ;;  %v3508_v45 = vadd.f32 %v5465_v2, %v3507_v31 }
 0x35e   : > { %2946 = vst.msk [vmem:[#allocation3 + $0x2c] sm:$0xf] %vm2934_vm7, %v2861_v29 }
 0x35f   : > { %3283 = vst.msk [vmem:[#allocation3 + $0x2c] sm:$0xf] %vm3271_vm8, %v3198_v11  ;;  %v3633_v34 = vpack.c.bf16 %v3601_v33, %v3601_v33  ;;  %v3584_v35 = vmax.f32 %v3508_v45, 0.0 }
 0x360   : > { %v2895_v19 = vpop.permute.xlu1 %2894 }
 0x361   : > { %v2526_v8 = vpop.permute.xlu2 %2525  ;;  %3665 = vst.msk [vmem:[%s5480_s26 + $0x4c] sm:$0xf] %vm517_vm2, %v3633_v34  ;;  %v3616_v38 = vpack.c.bf16 %v3584_v35, %v3584_v35 }
 0x362   : > { %2610 = vst.msk [vmem:[#allocation3 + $0x30] sm:$0xf] %vm2597_vm6, %v2526_v8 }
 0x363   : > { %3648 = vst.msk [vmem:[%s5480_s26 + $0x8] sm:$0xf] %vm517_vm2, %v3616_v38 }
 0x364   : > { %v3509_v39 = vpop.f32.mrf.mxu1 }
 0x365   : > { %v2364_v57 = vpop.permute.xlu0 %2363  ;;  %v3510_v28 = vadd.f32 %v5465_v2, %v3509_v39 }
 0x366   : > { %2432 = vst.msk [vmem:[#allocation3 + $0x70] sm:$0xf] %vm2403_vm4, %v2364_v57  ;;  %v4031_v36 = vld [vmem:[#allocation3 + $0x28] sm:$0xff] }
 0x367   : > { %2626 = vst.msk [vmem:[#allocation3 + $0x70] sm:$0xf] %vm2597_vm6, %v2558_v16  ;;  %v3585_v40 = vmax.f32 %v3510_v28, 0.0  ;;  %3995 = vmatmul.msk.bf16.gmra.mxu1 %vm3440_vm10, %v4031_v36 }
 0x368   : > { %2963 = vst.msk [vmem:[#allocation3 + $0x70] sm:$0xf] %vm2934_vm7, %v2895_v19  ;;  %v3234_v30 = vpop.permute.xlu1 %3233 }
 0x369   : > { %v2865_v42 = vpop.permute.xlu2 %2864  ;;  %v3617_v43 = vpack.c.bf16 %v3585_v40, %v3585_v40 }
 0x36b   : > { %3649 = vst.msk [vmem:[%s5480_s26 + $0xc] sm:$0xf] %vm517_vm2, %v3617_v43 }
 0x36d   : > { %v2560_v44 = vpop.permute.xlu0 %2559 }
 0x36e   : > { %2627 = vst.msk [vmem:[#allocation3 + $0x74] sm:$0xf] %vm2597_vm6, %v2560_v44 }
 0x36f   : > { %2964 = vst.msk [vmem:[#allocation3 + $0x74] sm:$0xf] %vm2934_vm7, %v2897_v27 }
 0x370   : > { %3301 = vst.msk [vmem:[#allocation3 + $0x74] sm:$0xf] %vm3271_vm8, %v3234_v30  ;;  %v2863_v46 = vpop.permute.xlu1 %2862 }
 0x371   : > { %2947 = vst.msk [vmem:[#allocation3 + $0x30] sm:$0xf] %vm2934_vm7, %v2863_v46  ;;  %v2368_v47 = vpop.permute.xlu2 %2367 }
 0x372   : > { %2434 = vst.msk [vmem:[#allocation3 + $0x78] sm:$0xf] %vm2403_vm4, %v2368_v47  ;;  %v3552_v37 = vpop.f32.mrf.mxu2 }
 0x373   : > { %v3553_v48 = vadd.f32 %v5465_v2, %v3552_v37 }
 0x375   : > { %v3232_v49 = vpop.permute.xlu0 %3231  ;;  %v3602_v18 = vmax.f32 %v3553_v48, 0.0 }
 0x376   : > { %3300 = vst.msk [vmem:[#allocation3 + $0x70] sm:$0xf] %vm3271_vm8, %v3232_v49 }
 0x377   : > { %v3634_v50 = vpack.c.bf16 %v3602_v18, %v3602_v18 }
 0x378   : > { %v3202_v52 = vpop.permute.xlu1 %3201 }
 0x379   : > { %v2564_v53 = vpop.permute.xlu2 %2563  ;;  %3666 = vst.msk [vmem:[%s5480_s26 + $0x50] sm:$0xf] %vm517_vm2, %v3634_v50 }
 0x37a   : > { %v3554_v9 = vpop.f32.mrf.mxu2 }
 0x37b   : > { %v3555_v54 = vadd.f32 %v5465_v2, %v3554_v9 }
 0x37c   : > { %v3512_v58 = vpop.f32.mrf.mxu1 }
 0x37d   : > { %v2528_v55 = vpop.permute.xlu0 %2527  ;;  %v4040_v60 = vld [vmem:[#allocation3 + $0x70] sm:$0xff]  ;;  %v3603_v61 = vmax.f32 %v3555_v54, 0.0  ;;  %v3513_v62 = vadd.f32 %v5465_v2, %v3512_v58 }
 0x37e   : > { %2611 = vst.msk [vmem:[#allocation3 + $0x34] sm:$0xf] %vm2597_vm6, %v2528_v55  ;;  %4004 = vmatmul.msk.bf16.gmra.mxu2 %vm3440_vm10, %v4040_v60 }
 0x37f   : > { %2948 = vst.msk [vmem:[#allocation3 + $0x34] sm:$0xf] %vm2934_vm7, %v2865_v42  ;;  %v3635_v63 = vpack.c.bf16 %v3603_v61, %v3603_v61  ;;  %v3586_v0 = vmax.f32 %v3513_v62, 0.0 }
 0x380   : > { %3285 = vst.msk [vmem:[#allocation3 + $0x34] sm:$0xf] %vm3271_vm8, %v3202_v52  ;;  %v2562_v20 = vpop.permute.xlu1 %2561 }
 0x381   : > { %2628 = vst.msk [vmem:[#allocation3 + $0x78] sm:$0xf] %vm2597_vm6, %v2562_v20  ;;  %v3236_v59 = vpop.permute.xlu2 %3235  ;;  %v3618_v14 = vpack.c.bf16 %v3586_v0, %v3586_v0 }
 0x382   : > { %3667 = vst.msk [vmem:[%s5480_s26 + $0x54] sm:$0xf] %vm517_vm2, %v3635_v63 }
 0x383   : > { %3650 = vst.msk [vmem:[%s5480_s26 + $0x10] sm:$0xf] %vm517_vm2, %v3618_v14 }
 0x384   : > { %v3514_v3 = vpop.f32.mrf.mxu1 }
 0x385   : > { %v3200_v1 = vpop.permute.xlu0 %3199  ;;  %v3515_v32 = vadd.f32 %v5465_v2, %v3514_v3 }
 0x386   : > { %3284 = vst.msk [vmem:[#allocation3 + $0x30] sm:$0xf] %vm3271_vm8, %v3200_v1 }
 0x387   : > { %v3587_v41 = vmax.f32 %v3515_v32, 0.0 }
 0x388   : > { %v2901_v5 = vpop.permute.xlu1 %2900 }
 0x389   : > { %v2532_v6 = vpop.permute.xlu2 %2531  ;;  %v3619_v4 = vpack.c.bf16 %v3587_v41, %v3587_v41 }
 0x38a   : > { %2613 = vst.msk [vmem:[#allocation3 + $0x3c] sm:$0xf] %vm2597_vm6, %v2532_v6 }
 0x38b   : > { %3651 = vst.msk [vmem:[%s5480_s26 + $0x14] sm:$0xf] %vm517_vm2, %v3619_v4 }
 0x38d   : > { %v2370_v51 = vpop.permute.xlu0 %2369  ;;  %v4032_v10 = vld [vmem:[#allocation3 + $0x30] sm:$0xff] }
 0x38e   : > { %2435 = vst.msk [vmem:[#allocation3 + $0x7c] sm:$0xf] %vm2403_vm4, %v2370_v51  ;;  %3996 = vmatmul.msk.bf16.gmra.mxu1 %vm3440_vm10, %v4032_v10 }
 0x38f   : > { %2629 = vst.msk [vmem:[#allocation3 + $0x7c] sm:$0xf] %vm2597_vm6, %v2564_v53 }
 0x390   : > { %2966 = vst.msk [vmem:[#allocation3 + $0x7c] sm:$0xf] %vm2934_vm7, %v2901_v5  ;;  %v2530_v11 = vpop.permute.xlu1 %2529 }
 0x391   : > { %2612 = vst.msk [vmem:[#allocation3 + $0x38] sm:$0xf] %vm2597_vm6, %v2530_v11  ;;  %v3204_v34 = vpop.permute.xlu2 %3203 }
 0x392   : > { %v3557_v12 = vpop.f32.mrf.mxu2 }
 0x393   : > { %v3558_v13 = vadd.f32 %v5465_v2, %v3557_v12 }
 0x395   : > { %v2899_v15 = vpop.permute.xlu0 %2898  ;;  %v3604_v16 = vmax.f32 %v3558_v13, 0.0 }
 0x396   : > { %2965 = vst.msk [vmem:[#allocation3 + $0x78] sm:$0xf] %vm2934_vm7, %v2899_v15 }
 0x397   : > { %3302 = vst.msk [vmem:[#allocation3 + $0x78] sm:$0xf] %vm3271_vm8, %v3236_v59  ;;  %v3636_v21 = vpack.c.bf16 %v3604_v16, %v3604_v16 }
 0x398   : > { %v2869_v22 = vpop.permute.xlu1 %2868 }
 0x399   : > { %2950 = vst.msk [vmem:[#allocation3 + $0x3c] sm:$0xf] %vm2934_vm7, %v2869_v22 }
 0x39a   : > { %3668 = vst.msk [vmem:[%s5480_s26 + $0x58] sm:$0xf] %vm517_vm2, %v3636_v21  ;;  %v3559_v23 = vpop.f32.mrf.mxu2 }
 0x39b   : > { %v3560_v24 = vadd.f32 %v5465_v2, %v3559_v23 }
 0x39c   : > { %v3517_v25 = vpop.f32.mrf.mxu1 }
 0x39d   : > { %v3238_v56 = vpop.permute.xlu0 %3237  ;;  %v3605_v26 = vmax.f32 %v3560_v24, 0.0  ;;  %v3518_v27 = vadd.f32 %v5465_v2, %v3517_v25 }
 0x39e   : > { %3303 = vst.msk [vmem:[#allocation3 + $0x7c] sm:$0xf] %vm3271_vm8, %v3238_v56 }
 0x39f   : > { %v3637_v7 = vpack.c.bf16 %v3605_v26, %v3605_v26  ;;  %v3588_v17 = vmax.f32 %v3518_v27, 0.0 }
 0x3a1   : > { %3669 = vst.msk [vmem:[%s5480_s26 + $0x5c] sm:$0xf] %vm517_vm2, %v3637_v7  ;;  %v3620_v29 = vpack.c.bf16 %v3588_v17, %v3588_v17 }
 0x3a3   : > { %3652 = vst.msk [vmem:[%s5480_s26 + $0x18] sm:$0xf] %vm517_vm2, %v3620_v29 }
 0x3a4   : > { %v3519_v33 = vpop.f32.mrf.mxu1 }
 0x3a5   : > { %v2867_v31 = vpop.permute.xlu0 %2866  ;;  %v4041_v45 = vld [vmem:[#allocation3 + $0x78] sm:$0xff]  ;;  %v3520_v35 = vadd.f32 %v5465_v2, %v3519_v33 }
 0x3a6   : > { %2949 = vst.msk [vmem:[#allocation3 + $0x38] sm:$0xf] %vm2934_vm7, %v2867_v31  ;;  %4005 = vmatmul.msk.bf16.gmra.mxu2 %vm3440_vm10, %v4041_v45 }
 0x3a7   : > { %3286 = vst.msk [vmem:[#allocation3 + $0x38] sm:$0xf] %vm3271_vm8, %v3204_v34  ;;  %v3589_v19 = vmax.f32 %v3520_v35, 0.0 }
 0x3a9   : > { %v3621_v8 = vpack.c.bf16 %v3589_v19, %v3589_v19 }
 0x3ab   : > { %3653 = vst.msk [vmem:[%s5480_s26 + $0x1c] sm:$0xf] %vm517_vm2, %v3621_v8 }
 0x3ad   : > { %v3206_v38 = vpop.permute.xlu0 %3205 }
 0x3ae   : > { %3287 = vst.msk [vmem:[#allocation3 + $0x3c] sm:$0xf] %vm3271_vm8, %v3206_v38 }
 0x3b5   : > { %v4033_v57 = vld [vmem:[#allocation3 + $0x38] sm:$0xff] }
 0x3b6   : > { %3997 = vmatmul.msk.bf16.gmra.mxu1 %vm3440_vm10, %v4033_v57 }
 0x3b9   : > { %v3562_v39 = vpop.f32.mrf.mxu2 }
 0x3ba   : > { %v3563_v28 = vadd.f32 %v5465_v2, %v3562_v39 }
 0x3bc   : > { %v3606_v36 = vmax.f32 %v3563_v28, 0.0 }
 0x3be   : > { %v3638_v40 = vpack.c.bf16 %v3606_v36, %v3606_v36 }
 0x3c0   : > { %3670 = vst.msk [vmem:[%s5480_s26 + $0x60] sm:$0xf] %vm517_vm2, %v3638_v40 }
 0x3c1   : > { %v3564_v30 = vpop.f32.mrf.mxu2 }
 0x3c2   : > { %v3565_v42 = vadd.f32 %v5465_v2, %v3564_v30 }
 0x3c3   : > { %v3522_v43 = vpop.f32.mrf.mxu1 }
 0x3c4   : > { %v3607_v44 = vmax.f32 %v3565_v42, 0.0  ;;  %v3523_v46 = vadd.f32 %v5465_v2, %v3522_v43 }
 0x3c6   : > { %v3639_v47 = vpack.c.bf16 %v3607_v44, %v3607_v44  ;;  %v3590_v37 = vmax.f32 %v3523_v46, 0.0 }
 0x3c8   : > { %3671 = vst.msk [vmem:[%s5480_s26 + $0x64] sm:$0xf] %vm517_vm2, %v3639_v47  ;;  %v3622_v48 = vpack.c.bf16 %v3590_v37, %v3590_v37 }
 0x3ca   : > { %3654 = vst.msk [vmem:[%s5480_s26 + $0x20] sm:$0xf] %vm517_vm2, %v3622_v48 }
 0x3cb   : > { %v3524_v49 = vpop.f32.mrf.mxu1 }
 0x3cc   : > { %v3525_v18 = vadd.f32 %v5465_v2, %v3524_v49 }
 0x3ce   : > { %v3591_v50 = vmax.f32 %v3525_v18, 0.0 }
 0x3d0   : > { %v3623_v52 = vpack.c.bf16 %v3591_v50, %v3591_v50 }
 0x3d2   : > { %3655 = vst.msk [vmem:[%s5480_s26 + $0x24] sm:$0xf] %vm517_vm2, %v3623_v52 }
 0x3da   : > { %v3567_v53 = vpop.f32.mrf.mxu2 }
 0x3db   : > { %v3568_v9 = vadd.f32 %v5465_v2, %v3567_v53 }
 0x3dd   : > { %v3608_v54 = vmax.f32 %v3568_v9, 0.0 }
 0x3df   : > { %v3640_v55 = vpack.c.bf16 %v3608_v54, %v3608_v54 }
 0x3e1   : > { %3672 = vst.msk [vmem:[%s5480_s26 + $0x68] sm:$0xf] %vm517_vm2, %v3640_v55 }
 0x3e2   : > { %v3569_v58 = vpop.f32.mrf.mxu2 }
 0x3e3   : > { %v3570_v60 = vadd.f32 %v5465_v2, %v3569_v58 }
 0x3e4   : > { %v3527_v61 = vpop.f32.mrf.mxu1 }
 0x3e5   : > { %v3609_v62 = vmax.f32 %v3570_v60, 0.0  ;;  %v3528_v63 = vadd.f32 %v5465_v2, %v3527_v61 }
 0x3e7   : > { %v3641_v0 = vpack.c.bf16 %v3609_v62, %v3609_v62  ;;  %v3592_v20 = vmax.f32 %v3528_v63, 0.0 }
 0x3e9   : > { %3673 = vst.msk [vmem:[%s5480_s26 + $0x6c] sm:$0xf] %vm517_vm2, %v3641_v0  ;;  %v3624_v59 = vpack.c.bf16 %v3592_v20, %v3592_v20 }
 0x3eb   : > { %3656 = vst.msk [vmem:[%s5480_s26 + $0x28] sm:$0xf] %vm517_vm2, %v3624_v59 }
 0x3ec   : > { %v3529_v14 = vpop.f32.mrf.mxu1 }
 0x3ed   : > { %v3530_v1 = vadd.f32 %v5465_v2, %v3529_v14 }
 0x3ef   : > { %v3593_v3 = vmax.f32 %v3530_v1, 0.0 }
 0x3f1   : > { %v3625_v32 = vpack.c.bf16 %v3593_v3, %v3593_v3 }
 0x3f3   : > { %3657 = vst.msk [vmem:[%s5480_s26 + $0x2c] sm:$0xf] %vm517_vm2, %v3625_v32 }
 0x401   : > { %v3572_v41 = vpop.f32.mrf.mxu2 }
 0x402   : > { %v3573_v5 = vadd.f32 %v5465_v2, %v3572_v41 }
 0x404   : > { %v3610_v6 = vmax.f32 %v3573_v5, 0.0 }
 0x406   : > { %v3642_v4 = vpack.c.bf16 %v3610_v6, %v3610_v6 }
 0x408   : > { %3674 = vst.msk [vmem:[%s5480_s26 + $0x70] sm:$0xf] %vm517_vm2, %v3642_v4 }
 0x409   : > { %v3574_v51 = vpop.f32.mrf.mxu2 }
 0x40a   : > { %v3575_v10 = vadd.f32 %v5465_v2, %v3574_v51 }
 0x40b   : > { %v3532_v11 = vpop.f32.mrf.mxu1 }
 0x40c   : > { %v3611_v12 = vmax.f32 %v3575_v10, 0.0  ;;  %v3533_v13 = vadd.f32 %v5465_v2, %v3532_v11 }
 0x40e   : > { %v3643_v15 = vpack.c.bf16 %v3611_v12, %v3611_v12  ;;  %v3594_v16 = vmax.f32 %v3533_v13, 0.0 }
 0x410   : > { %3675 = vst.msk [vmem:[%s5480_s26 + $0x74] sm:$0xf] %vm517_vm2, %v3643_v15  ;;  %v3626_v21 = vpack.c.bf16 %v3594_v16, %v3594_v16 }
 0x412   : > { %3658 = vst.msk [vmem:[%s5480_s26 + $0x30] sm:$0xf] %vm517_vm2, %v3626_v21 }
 0x413   : > { %v3534_v22 = vpop.f32.mrf.mxu1 }
 0x414   : > { %v3535_v23 = vadd.f32 %v5465_v2, %v3534_v22 }
 0x416   : > { %v3595_v24 = vmax.f32 %v3535_v23, 0.0 }
 0x418   : > { %v3627_v56 = vpack.c.bf16 %v3595_v24, %v3595_v24 }
 0x41a   : > { %3659 = vst.msk [vmem:[%s5480_s26 + $0x34] sm:$0xf] %vm517_vm2, %v3627_v56 }
 0x429   : > { %v3577_v25 = vpop.f32.mrf.mxu2 }
 0x42a   : > { %v3578_v26 = vadd.f32 %v5465_v2, %v3577_v25 }
 0x42c   : > { %v3612_v27 = vmax.f32 %v3578_v26, 0.0 }
 0x42e   : > { %v3644_v7 = vpack.c.bf16 %v3612_v27, %v3612_v27 }
 0x430   : > { %3676 = vst.msk [vmem:[%s5480_s26 + $0x78] sm:$0xf] %vm517_vm2, %v3644_v7 }
 0x431   : > { %v3579_v17 = vpop.f32.mrf.mxu2 }
 0x432   : > { %v3580_v29 = vadd.f32 %v5465_v2, %v3579_v17 }
 0x433   : > { %v3537_v31 = vpop.f32.mrf.mxu1 }
 0x434   : > { %v3613_v33 = vmax.f32 %v3580_v29, 0.0  ;;  %v3538_v45 = vadd.f32 %v5465_v2, %v3537_v31 }
 0x436   : > { %v3645_v34 = vpack.c.bf16 %v3613_v33, %v3613_v33  ;;  %v3596_v35 = vmax.f32 %v3538_v45, 0.0 }
 0x438   : > { %3677 = vst.msk [vmem:[%s5480_s26 + $0x7c] sm:$0xf] %vm517_vm2, %v3645_v34  ;;  %v3628_v19 = vpack.c.bf16 %v3596_v35, %v3596_v35 }
 0x43a   : > { %3660 = vst.msk [vmem:[%s5480_s26 + $0x38] sm:$0xf] %vm517_vm2, %v3628_v19 }
 0x43b   : > { %v3539_v8 = vpop.f32.mrf.mxu1 }
 0x43c   : > { %v3540_v38 = vadd.f32 %v5465_v2, %v3539_v8 }
 0x43e   : > { %v3597_v57 = vmax.f32 %v3540_v38, 0.0 }
 0x440   : > { %v3629_v39 = vpack.c.bf16 %v3597_v57, %v3597_v57 }
 0x442   : > { %3661 = vst.msk [vmem:[%s5480_s26 + $0x3c] sm:$0xf] %vm517_vm2, %v3629_v39 }
 0x443 PF: > { %s15_s18 = sadd.s32 1, %s4074_s18  }
 0x444   : > { %p12_p4 = scmp.ge.s32.totalorder %s15_s18, 4  }
 0x446   :  { %14 = sbr.rel (!%p12_p4) target bundleno = 1 (0x1), region = 72 }

</bundles_post_ra>
